<compile_context>
chip_gen: v7x
topology: tpu7x:2x2x1
jax: 0.10.0
libtpu: 0.0.40
codegen_flags: <defaults>
</compile_context>

<pallas_src>
import functools

import jax
import jax.numpy as jnp
from jax.experimental import pallas as pl
from jax.experimental.pallas import tpu as pltpu

INPUT_SIZE = 11
HIDDEN_SIZE = 18
NUM_LAYERS = 2
OUTPUT_SIZE = 3

SUB = 8                          # f32 sublane count: batch padded to 8 rows
LANE = 128                       # each gate / state slab is one 128-lane tile
GATES = 4 * LANE                 # padded gate width (i, f, g, o)
BIAS_LANE = LANE - 1             # constant-1 lane in x used to fold b0


def _use_split_k128() -> bool:
    """v5e has 128-deep MXUs -> prefer two K=128 dots over one K=256 dot."""
    try:
        kind = jax.devices()[0].device_kind.lower()
    except Exception:
        return False
    return ("v5 lite" in kind) or ("v5e" in kind) or ("v5litepod" in kind)


def _rnn_kernel(x_ref, w0_ref, w1_ref, b1_ref, wfc_ref, bfc_ref, out_ref,
                *, seq_len, split_k128):
    """Single-invocation kernel: whole (tiny) sequence resident in VMEM.

    x_ref  : (S, 8, 128)   padded inputs, lane BIAS_LANE == 1.0 (bias lane)
    w0_ref : (256, 512)    rows [0:11]=Wx0, row 127=b0, rows [128:146]=Wh0
    w1_ref : (256, 512)    rows [0:18]=W1x (from h1), rows [128:146]=W1h
    b1_ref : (1, 512)      layer-1 bias (gate-slab aligned)
    wfc_ref: (128, 3), bfc_ref: (1, 3)
    out_ref: (8, 3)        softmax probabilities (rows >= B are pad rows)
    """
    # Only the small bias broadcast is hoisted (4 vregs); weights are read
    # from VMEM at each dot site (3 vld slots/cycle -> no spill pressure).
    b1 = jnp.broadcast_to(b1_ref[...], (SUB, GATES))

    def gates_to_state(g, c):
        # Lane-aligned gate slabs (PyTorch order i, f, g, o).
        i_g = jax.nn.sigmoid(g[:, 0 * LANE:1 * LANE])
        f_g = jax.nn.sigmoid(g[:, 1 * LANE:2 * LANE])
        g_g = jnp.tanh(g[:, 2 * LANE:3 * LANE])
        o_g = jax.nn.sigmoid(g[:, 3 * LANE:4 * LANE])
        c_new = f_g * c + i_g * g_g
        return o_g * jnp.tanh(c_new), c_new

    z = jnp.zeros((SUB, LANE), jnp.float32)
    h1, c1, h2, c2 = z, z, z, z

    # Fully-unrolled time loop: straight-line code lets the scheduler overlap
    # EUP sigmoid/tanh of one step with MXU pushes of the neighboring dots.
    for t in range(seq_len):
        x_t = x_ref[t]                                   # (8, 128), not on h-chain

        # ---- Layer 0 (b0 is folded into the matmul via x's constant-1 lane).
        if split_k128:
            # v5e: two independent K=128 pushes (x-projection off the chain).
            g0 = (jnp.dot(x_t, w0_ref[:LANE, :],
                          preferred_element_type=jnp.float32)
                  + jnp.dot(h1, w0_ref[LANE:, :],
                            preferred_element_type=jnp.float32))
        else:
            # v6e/v7x: one K=256 push; lane-aligned full-vreg concat lowers to
            # vreg placement (no VMEM round-trip).
            g0 = jnp.dot(jnp.concatenate([x_t, h1], axis=1), w0_ref[...],
                         preferred_element_type=jnp.float32)
        h1, c1 = gates_to_state(g0, c1)

        # ---- Layer 1.
        if split_k128:
            g1 = (jnp.dot(h1, w1_ref[:LANE, :],
                          preferred_element_type=jnp.float32)
                  + jnp.dot(h2, w1_ref[LANE:, :],
                            preferred_element_type=jnp.float32)
                  + b1)
        else:
            g1 = (jnp.dot(jnp.concatenate([h1, h2], axis=1), w1_ref[...],
                          preferred_element_type=jnp.float32)
                  + b1)
        h2, c2 = gates_to_state(g1, c2)

    # TODO(synk): Dropout2d(p=0.05) is identity in eval mode; training-mode
    # channel dropout would need pltpu.prng_* masking here.

    # Final FC on the last hidden state + softmax.  wfc has only the 3 real
    # output columns, so the softmax denominator sees no pad lanes.  Exact
    # division kept (runs once; approx reciprocal would relax exactness).
    logits = (jnp.dot(h2, wfc_ref[...], preferred_element_type=jnp.float32)
              + bfc_ref[...])
    m = jnp.max(logits, axis=1, keepdims=True)
    e = jnp.exp(logits - m)
    out_ref[...] = e / jnp.sum(e, axis=1, keepdims=True)


# ----------------------------- weight packing -----------------------------

def _pack_gate_cols(w, h):
    """(rows, 4*h) gate-ordered -> (rows, 4*LANE), each gate lane-aligned."""
    rows = w.shape[0]
    out = jnp.zeros((rows, GATES), jnp.float32)
    for g in range(4):
        out = out.at[:, g * LANE: g * LANE + h].set(w[:, g * h:(g + 1) * h])
    return out


def pack_params(p):
    """Pack PyTorch-layout weights into the kernel's padded/stacked layout."""
    H = HIDDEN_SIZE

    # Layer 0: stacked [Wx0_pad ; Wh0_pad], with b0 in row BIAS_LANE of the
    # x slab (paired with the constant-1 lane in x).
    w0x = _pack_gate_cols(p["w_ih_l0"].T, H)                           # (11, 512)
    w0h = _pack_gate_cols(p["w_hh_l0"].T, H)                           # (18, 512)
    b0 = _pack_gate_cols((p["b_ih_l0"] + p["b_hh_l0"])[None, :], H)    # (1, 512)
    w0 = jnp.zeros((2 * LANE, GATES), jnp.float32)
    w0 = w0.at[:INPUT_SIZE, :].set(w0x)
    w0 = w0.at[BIAS_LANE, :].set(b0[0])
    w0 = w0.at[LANE:LANE + H, :].set(w0h)

    # Layer 1: stacked [W1x_pad ; W1h_pad]; bias kept separate (hoisted add).
    w1x = _pack_gate_cols(p["w_ih_l1"].T, H)
    w1h = _pack_gate_cols(p["w_hh_l1"].T, H)
    w1 = jnp.zeros((2 * LANE, GATES), jnp.float32)
    w1 = w1.at[:H, :].set(w1x)
    w1 = w1.at[LANE:LANE + H, :].set(w1h)
    b1 = _pack_gate_cols((p["b_ih_l1"] + p["b_hh_l1"])[None, :], H)

    wfc = jnp.zeros((LANE, OUTPUT_SIZE), jnp.float32).at[:H, :].set(p["w_fc"].T)
    bfc = p["b_fc"][None, :]
    return (w0, w1, b1, wfc, bfc)


# ------------------------------- entry point -------------------------------

def rnn_forward(x, packed):
    """x: (B, S, INPUT_SIZE) float32 (batch_first, like PyTorch)."""
    B, S, I = x.shape
    assert I == INPUT_SIZE
    assert B <= SUB, "batch > 8 needs a batch-tile grid axis (see TODO above)"

    # Time-major, batch padded to 8 sublanes, lanes padded to 128 with a
    # constant-1 lane at BIAS_LANE (folds b0 into the layer-0 matmul).
    xt = jnp.transpose(x, (1, 0, 2))                        # (S, B, I)
    x_pad = jnp.zeros((S, SUB, LANE), jnp.float32)
    x_pad = x_pad.at[:, :B, :I].set(xt)
    x_pad = x_pad.at[:, :, BIAS_LANE].set(1.0)

    w0, w1, b1, wfc, bfc = packed
    kernel = functools.partial(_rnn_kernel, seq_len=S,
                               split_k128=_use_split_k128())
    vmem = lambda: pl.BlockSpec(memory_space=pltpu.MemorySpace.VMEM)

    out = pl.pallas_call(
        kernel,
        out_shape=jax.ShapeDtypeStruct((SUB, OUTPUT_SIZE), jnp.float32),
        in_specs=[vmem() for _ in range(6)],
        out_specs=vmem(),
    )(x_pad, w0, w1, b1, wfc, bfc)
    return out[:B]


# ------------------------------ init / reference ---------------------------

def init_params(key):
    """Deterministic init mimicking PyTorch's U(-1/sqrt(H), 1/sqrt(H))."""
    H, I, O = HIDDEN_SIZE, INPUT_SIZE, OUTPUT_SIZE
    k = 1.0 / jnp.sqrt(jnp.float32(H))
    keys = jax.random.split(key, 10)
    u = lambda kk, shape: jax.random.uniform(kk, shape, jnp.float32, -k, k)
    return dict(
        w_ih_l0=u(keys[0], (4 * H, I)),
        w_hh_l0=u(keys[1], (4 * H, H)),
        b_ih_l0=u(keys[2], (4 * H,)),
        b_hh_l0=u(keys[3], (4 * H,)),
        w_ih_l1=u(keys[4], (4 * H, H)),
        w_hh_l1=u(keys[5], (4 * H, H)),
        b_ih_l1=u(keys[6], (4 * H,)),
        b_hh_l1=u(keys[7], (4 * H,)),
        w_fc=jax.random.uniform(keys[8], (O, H), jnp.float32, -k, k),
        b_fc=jax.random.uniform(keys[9], (O,), jnp.float32, -k, k),
    )


def reference_forward(x, p):
    """Pure-JAX reference mirroring torch semantics (eval mode)."""
    H = HIDDEN_SIZE
    B, S, _ = x.shape
    wx0, wh0 = p["w_ih_l0"].T, p["w_hh_l0"].T
    b0 = p["b_ih_l0"] + p["b_hh_l0"]
    wx1, wh1 = p["w_ih_l1"].T, p["w_hh_l1"].T
    b1 = p["b_ih_l1"] + p["b_hh_l1"]
    wfc, bfc = p["w_fc"].T, p["b_fc"]

    def cell(inp, h, c, wx, wh, b):
        g = inp @ wx + h @ wh + b
        i = jax.nn.sigmoid(g[:, :H]); f = jax.nn.sigmoid(g[:, H:2 * H])
        gg = jnp.tanh(g[:, 2 * H:3 * H]); o = jax.nn.sigmoid(g[:, 3 * H:])
        c = f * c + i * gg
        return o * jnp.tanh(c), c

    h1 = c1 = h2 = c2 = jnp.zeros((B, H), jnp.float32)
    for t in range(S):
        h1, c1 = cell(x[:, t, :], h1, c1, wx0, wh0, b0)
        h2, c2 = cell(h1, h2, c2, wx1, wh1, b1)
    return jax.nn.softmax(h2 @ wfc + bfc, axis=1)


if __name__ == "__main__":
    key = jax.random.PRNGKey(0)
    k_param, k_x = jax.random.split(key)
    raw = init_params(k_param)
    packed = pack_params(raw)

    B, S = 2, 8
    x = jax.random.normal(k_x, (B, S, INPUT_SIZE), jnp.float32)

    out = jax.block_until_ready(rnn_forward(x, packed))
    ref = reference_forward(x, raw)

    assert out.shape == (B, OUTPUT_SIZE)
    assert jnp.allclose(out, ref, atol=1e-4, rtol=1e-4), (out, ref)
    assert jnp.allclose(jnp.sum(out, axis=1), 1.0, atol=1e-5)

    print("KERNEL_OK")
</pallas_src>

<mosaic_0001>
module attributes {stable_mosaic.version = 11 : i64} {
  func.func @_rnn_kernel(%arg0: memref<8x8x128xf32, #tpu.memory_space<vmem>>, %arg1: memref<256x512xf32, #tpu.memory_space<vmem>>, %arg2: memref<256x512xf32, #tpu.memory_space<vmem>>, %arg3: memref<1x512xf32, #tpu.memory_space<vmem>>, %arg4: memref<128x3xf32, #tpu.memory_space<vmem>>, %arg5: memref<1x3xf32, #tpu.memory_space<vmem>>, %arg6: memref<8x3xf32, #tpu.memory_space<vmem>>) attributes {dimension_semantics = [], scalar_prefetch = 0 : i64, scratch_operands = 0 : i64, tpu.core_type = #tpu.core_type<tc>} {
    %c0 = arith.constant 0 : index
    %c0_0 = arith.constant 0 : index
    %0 = vector.load %arg3[%c0, %c0_0] : memref<1x512xf32, #tpu.memory_space<vmem>>, vector<1x512xf32>
    %1 = vector.shape_cast %0 : vector<1x512xf32> to vector<1x512xf32>
    %2 = vector.broadcast %1 : vector<1x512xf32> to vector<8x512xf32>
    %cst = arith.constant 0.000000e+00 : f32
    %3 = vector.broadcast %cst : f32 to vector<8x128xf32>
    %c0_1 = arith.constant 0 : index
    %c0_2 = arith.constant 0 : index
    %c0_3 = arith.constant 0 : index
    %4 = vector.load %arg0[%c0_1, %c0_2, %c0_3] : memref<8x8x128xf32, #tpu.memory_space<vmem>>, vector<1x8x128xf32>
    %5 = vector.shape_cast %4 : vector<1x8x128xf32> to vector<8x128xf32>
    %6 = tpu.concatenate %5, %3 in 1 : vector<8x128xf32>, vector<8x128xf32> -> vector<8x256xf32>
    %c0_4 = arith.constant 0 : index
    %c0_5 = arith.constant 0 : index
    %7 = vector.load %arg1[%c0_4, %c0_5] : memref<256x512xf32, #tpu.memory_space<vmem>>, vector<256x512xf32>
    %cst_6 = arith.constant dense<0.000000e+00> : vector<8x512xf32>
    %8 = tpu.matmul %6, %7, %cst_6 {dimension_numbers = #tpu.dot_dimension_numbers<[1], [0], [0], [1], [0, 0, 1, 1], [], []>} : vector<8x256xf32>, vector<256x512xf32>, vector<8x512xf32> -> vector<8x512xf32>
    %9 = vector.extract_strided_slice %8 {offsets = [0, 0], sizes = [8, 128], strides = [1, 1]} : vector<8x512xf32> to vector<8x128xf32>
    %10 = arith.negf %9 : vector<8x128xf32>
    %11 = math.exp %10 : vector<8x128xf32>
    %cst_7 = arith.constant 1.000000e+00 : f32
    %12 = vector.broadcast %cst_7 : f32 to vector<8x128xf32>
    %13 = arith.addf %12, %11 : vector<8x128xf32>
    %14 = arith.divf %12, %13 : vector<8x128xf32>
    %15 = vector.extract_strided_slice %8 {offsets = [0, 128], sizes = [8, 128], strides = [1, 1]} : vector<8x512xf32> to vector<8x128xf32>
    %16 = arith.negf %15 : vector<8x128xf32>
    %17 = math.exp %16 : vector<8x128xf32>
    %cst_8 = arith.constant 1.000000e+00 : f32
    %18 = vector.broadcast %cst_8 : f32 to vector<8x128xf32>
    %19 = arith.addf %18, %17 : vector<8x128xf32>
    %20 = arith.divf %18, %19 : vector<8x128xf32>
    %21 = vector.extract_strided_slice %8 {offsets = [0, 256], sizes = [8, 128], strides = [1, 1]} : vector<8x512xf32> to vector<8x128xf32>
    %22 = math.tanh %21 : vector<8x128xf32>
    %23 = vector.extract_strided_slice %8 {offsets = [0, 384], sizes = [8, 128], strides = [1, 1]} : vector<8x512xf32> to vector<8x128xf32>
    %24 = arith.negf %23 : vector<8x128xf32>
    %25 = math.exp %24 : vector<8x128xf32>
    %cst_9 = arith.constant 1.000000e+00 : f32
    %26 = vector.broadcast %cst_9 : f32 to vector<8x128xf32>
    %27 = arith.addf %26, %25 : vector<8x128xf32>
    %28 = arith.divf %26, %27 : vector<8x128xf32>
    %29 = arith.mulf %20, %3 : vector<8x128xf32>
    %30 = arith.mulf %14, %22 : vector<8x128xf32>
    %31 = arith.addf %29, %30 : vector<8x128xf32>
    %32 = math.tanh %31 : vector<8x128xf32>
    %33 = arith.mulf %28, %32 : vector<8x128xf32>
    %34 = tpu.concatenate %33, %3 in 1 : vector<8x128xf32>, vector<8x128xf32> -> vector<8x256xf32>
    %c0_10 = arith.constant 0 : index
    %c0_11 = arith.constant 0 : index
    %35 = vector.load %arg2[%c0_10, %c0_11] : memref<256x512xf32, #tpu.memory_space<vmem>>, vector<256x512xf32>
    %cst_12 = arith.constant dense<0.000000e+00> : vector<8x512xf32>
    %36 = tpu.matmul %34, %35, %cst_12 {dimension_numbers = #tpu.dot_dimension_numbers<[1], [0], [0], [1], [0, 0, 1, 1], [], []>} : vector<8x256xf32>, vector<256x512xf32>, vector<8x512xf32> -> vector<8x512xf32>
    %37 = arith.addf %36, %2 : vector<8x512xf32>
    %38 = vector.extract_strided_slice %37 {offsets = [0, 0], sizes = [8, 128], strides = [1, 1]} : vector<8x512xf32> to vector<8x128xf32>
    %39 = arith.negf %38 : vector<8x128xf32>
    %40 = math.exp %39 : vector<8x128xf32>
    %cst_13 = arith.constant 1.000000e+00 : f32
    %41 = vector.broadcast %cst_13 : f32 to vector<8x128xf32>
    %42 = arith.addf %41, %40 : vector<8x128xf32>
    %43 = arith.divf %41, %42 : vector<8x128xf32>
    %44 = vector.extract_strided_slice %37 {offsets = [0, 128], sizes = [8, 128], strides = [1, 1]} : vector<8x512xf32> to vector<8x128xf32>
    %45 = arith.negf %44 : vector<8x128xf32>
    %46 = math.exp %45 : vector<8x128xf32>
    %cst_14 = arith.constant 1.000000e+00 : f32
    %47 = vector.broadcast %cst_14 : f32 to vector<8x128xf32>
    %48 = arith.addf %47, %46 : vector<8x128xf32>
    %49 = arith.divf %47, %48 : vector<8x128xf32>
    %50 = vector.extract_strided_slice %37 {offsets = [0, 256], sizes = [8, 128], strides = [1, 1]} : vector<8x512xf32> to vector<8x128xf32>
    %51 = math.tanh %50 : vector<8x128xf32>
    %52 = vector.extract_strided_slice %37 {offsets = [0, 384], sizes = [8, 128], strides = [1, 1]} : vector<8x512xf32> to vector<8x128xf32>
    %53 = arith.negf %52 : vector<8x128xf32>
    %54 = math.exp %53 : vector<8x128xf32>
    %cst_15 = arith.constant 1.000000e+00 : f32
    %55 = vector.broadcast %cst_15 : f32 to vector<8x128xf32>
    %56 = arith.addf %55, %54 : vector<8x128xf32>
    %57 = arith.divf %55, %56 : vector<8x128xf32>
    %58 = arith.mulf %49, %3 : vector<8x128xf32>
    %59 = arith.mulf %43, %51 : vector<8x128xf32>
    %60 = arith.addf %58, %59 : vector<8x128xf32>
    %61 = math.tanh %60 : vector<8x128xf32>
    %62 = arith.mulf %57, %61 : vector<8x128xf32>
    %c1 = arith.constant 1 : index
    %c0_16 = arith.constant 0 : index
    %c0_17 = arith.constant 0 : index
    %63 = vector.load %arg0[%c1, %c0_16, %c0_17] : memref<8x8x128xf32, #tpu.memory_space<vmem>>, vector<1x8x128xf32>
    %64 = vector.shape_cast %63 : vector<1x8x128xf32> to vector<8x128xf32>
    %65 = tpu.concatenate %64, %33 in 1 : vector<8x128xf32>, vector<8x128xf32> -> vector<8x256xf32>
    %c0_18 = arith.constant 0 : index
    %c0_19 = arith.constant 0 : index
    %66 = vector.load %arg1[%c0_18, %c0_19] : memref<256x512xf32, #tpu.memory_space<vmem>>, vector<256x512xf32>
    %cst_20 = arith.constant dense<0.000000e+00> : vector<8x512xf32>
    %67 = tpu.matmul %65, %66, %cst_20 {dimension_numbers = #tpu.dot_dimension_numbers<[1], [0], [0], [1], [0, 0, 1, 1], [], []>} : vector<8x256xf32>, vector<256x512xf32>, vector<8x512xf32> -> vector<8x512xf32>
    %68 = vector.extract_strided_slice %67 {offsets = [0, 0], sizes = [8, 128], strides = [1, 1]} : vector<8x512xf32> to vector<8x128xf32>
    %69 = arith.negf %68 : vector<8x128xf32>
    %70 = math.exp %69 : vector<8x128xf32>
    %cst_21 = arith.constant 1.000000e+00 : f32
    %71 = vector.broadcast %cst_21 : f32 to vector<8x128xf32>
    %72 = arith.addf %71, %70 : vector<8x128xf32>
    %73 = arith.divf %71, %72 : vector<8x128xf32>
    %74 = vector.extract_strided_slice %67 {offsets = [0, 128], sizes = [8, 128], strides = [1, 1]} : vector<8x512xf32> to vector<8x128xf32>
    %75 = arith.negf %74 : vector<8x128xf32>
    %76 = math.exp %75 : vector<8x128xf32>
    %cst_22 = arith.constant 1.000000e+00 : f32
    %77 = vector.broadcast %cst_22 : f32 to vector<8x128xf32>
    %78 = arith.addf %77, %76 : vector<8x128xf32>
    %79 = arith.divf %77, %78 : vector<8x128xf32>
    %80 = vector.extract_strided_slice %67 {offsets = [0, 256], sizes = [8, 128], strides = [1, 1]} : vector<8x512xf32> to vector<8x128xf32>
    %81 = math.tanh %80 : vector<8x128xf32>
    %82 = vector.extract_strided_slice %67 {offsets = [0, 384], sizes = [8, 128], strides = [1, 1]} : vector<8x512xf32> to vector<8x128xf32>
    %83 = arith.negf %82 : vector<8x128xf32>
    %84 = math.exp %83 : vector<8x128xf32>
    %cst_23 = arith.constant 1.000000e+00 : f32
    %85 = vector.broadcast %cst_23 : f32 to vector<8x128xf32>
    %86 = arith.addf %85, %84 : vector<8x128xf32>
    %87 = arith.divf %85, %86 : vector<8x128xf32>
    %88 = arith.mulf %79, %31 : vector<8x128xf32>
    %89 = arith.mulf %73, %81 : vector<8x128xf32>
    %90 = arith.addf %88, %89 : vector<8x128xf32>
    %91 = math.tanh %90 : vector<8x128xf32>
    %92 = arith.mulf %87, %91 : vector<8x128xf32>
    %93 = tpu.concatenate %92, %62 in 1 : vector<8x128xf32>, vector<8x128xf32> -> vector<8x256xf32>
    %c0_24 = arith.constant 0 : index
    %c0_25 = arith.constant 0 : index
    %94 = vector.load %arg2[%c0_24, %c0_25] : memref<256x512xf32, #tpu.memory_space<vmem>>, vector<256x512xf32>
    %cst_26 = arith.constant dense<0.000000e+00> : vector<8x512xf32>
    %95 = tpu.matmul %93, %94, %cst_26 {dimension_numbers = #tpu.dot_dimension_numbers<[1], [0], [0], [1], [0, 0, 1, 1], [], []>} : vector<8x256xf32>, vector<256x512xf32>, vector<8x512xf32> -> vector<8x512xf32>
    %96 = arith.addf %95, %2 : vector<8x512xf32>
    %97 = vector.extract_strided_slice %96 {offsets = [0, 0], sizes = [8, 128], strides = [1, 1]} : vector<8x512xf32> to vector<8x128xf32>
    %98 = arith.negf %97 : vector<8x128xf32>
    %99 = math.exp %98 : vector<8x128xf32>
    %cst_27 = arith.constant 1.000000e+00 : f32
    %100 = vector.broadcast %cst_27 : f32 to vector<8x128xf32>
    %101 = arith.addf %100, %99 : vector<8x128xf32>
    %102 = arith.divf %100, %101 : vector<8x128xf32>
    %103 = vector.extract_strided_slice %96 {offsets = [0, 128], sizes = [8, 128], strides = [1, 1]} : vector<8x512xf32> to vector<8x128xf32>
    %104 = arith.negf %103 : vector<8x128xf32>
    %105 = math.exp %104 : vector<8x128xf32>
    %cst_28 = arith.constant 1.000000e+00 : f32
    %106 = vector.broadcast %cst_28 : f32 to vector<8x128xf32>
    %107 = arith.addf %106, %105 : vector<8x128xf32>
    %108 = arith.divf %106, %107 : vector<8x128xf32>
    %109 = vector.extract_strided_slice %96 {offsets = [0, 256], sizes = [8, 128], strides = [1, 1]} : vector<8x512xf32> to vector<8x128xf32>
    %110 = math.tanh %109 : vector<8x128xf32>
    %111 = vector.extract_strided_slice %96 {offsets = [0, 384], sizes = [8, 128], strides = [1, 1]} : vector<8x512xf32> to vector<8x128xf32>
    %112 = arith.negf %111 : vector<8x128xf32>
    %113 = math.exp %112 : vector<8x128xf32>
    %cst_29 = arith.constant 1.000000e+00 : f32
    %114 = vector.broadcast %cst_29 : f32 to vector<8x128xf32>
    %115 = arith.addf %114, %113 : vector<8x128xf32>
    %116 = arith.divf %114, %115 : vector<8x128xf32>
    %117 = arith.mulf %108, %60 : vector<8x128xf32>
    %118 = arith.mulf %102, %110 : vector<8x128xf32>
    %119 = arith.addf %117, %118 : vector<8x128xf32>
    %120 = math.tanh %119 : vector<8x128xf32>
    %121 = arith.mulf %116, %120 : vector<8x128xf32>
    %c2 = arith.constant 2 : index
    %c0_30 = arith.constant 0 : index
    %c0_31 = arith.constant 0 : index
    %122 = vector.load %arg0[%c2, %c0_30, %c0_31] : memref<8x8x128xf32, #tpu.memory_space<vmem>>, vector<1x8x128xf32>
    %123 = vector.shape_cast %122 : vector<1x8x128xf32> to vector<8x128xf32>
    %124 = tpu.concatenate %123, %92 in 1 : vector<8x128xf32>, vector<8x128xf32> -> vector<8x256xf32>
    %c0_32 = arith.constant 0 : index
    %c0_33 = arith.constant 0 : index
    %125 = vector.load %arg1[%c0_32, %c0_33] : memref<256x512xf32, #tpu.memory_space<vmem>>, vector<256x512xf32>
    %cst_34 = arith.constant dense<0.000000e+00> : vector<8x512xf32>
    %126 = tpu.matmul %124, %125, %cst_34 {dimension_numbers = #tpu.dot_dimension_numbers<[1], [0], [0], [1], [0, 0, 1, 1], [], []>} : vector<8x256xf32>, vector<256x512xf32>, vector<8x512xf32> -> vector<8x512xf32>
    %127 = vector.extract_strided_slice %126 {offsets = [0, 0], sizes = [8, 128], strides = [1, 1]} : vector<8x512xf32> to vector<8x128xf32>
    %128 = arith.negf %127 : vector<8x128xf32>
    %129 = math.exp %128 : vector<8x128xf32>
    %cst_35 = arith.constant 1.000000e+00 : f32
    %130 = vector.broadcast %cst_35 : f32 to vector<8x128xf32>
    %131 = arith.addf %130, %129 : vector<8x128xf32>
    %132 = arith.divf %130, %131 : vector<8x128xf32>
    %133 = vector.extract_strided_slice %126 {offsets = [0, 128], sizes = [8, 128], strides = [1, 1]} : vector<8x512xf32> to vector<8x128xf32>
    %134 = arith.negf %133 : vector<8x128xf32>
    %135 = math.exp %134 : vector<8x128xf32>
    %cst_36 = arith.constant 1.000000e+00 : f32
    %136 = vector.broadcast %cst_36 : f32 to vector<8x128xf32>
    %137 = arith.addf %136, %135 : vector<8x128xf32>
    %138 = arith.divf %136, %137 : vector<8x128xf32>
    %139 = vector.extract_strided_slice %126 {offsets = [0, 256], sizes = [8, 128], strides = [1, 1]} : vector<8x512xf32> to vector<8x128xf32>
    %140 = math.tanh %139 : vector<8x128xf32>
    %141 = vector.extract_strided_slice %126 {offsets = [0, 384], sizes = [8, 128], strides = [1, 1]} : vector<8x512xf32> to vector<8x128xf32>
    %142 = arith.negf %141 : vector<8x128xf32>
    %143 = math.exp %142 : vector<8x128xf32>
    %cst_37 = arith.constant 1.000000e+00 : f32
    %144 = vector.broadcast %cst_37 : f32 to vector<8x128xf32>
    %145 = arith.addf %144, %143 : vector<8x128xf32>
    %146 = arith.divf %144, %145 : vector<8x128xf32>
    %147 = arith.mulf %138, %90 : vector<8x128xf32>
    %148 = arith.mulf %132, %140 : vector<8x128xf32>
    %149 = arith.addf %147, %148 : vector<8x128xf32>
    %150 = math.tanh %149 : vector<8x128xf32>
    %151 = arith.mulf %146, %150 : vector<8x128xf32>
    %152 = tpu.concatenate %151, %121 in 1 : vector<8x128xf32>, vector<8x128xf32> -> vector<8x256xf32>
    %c0_38 = arith.constant 0 : index
    %c0_39 = arith.constant 0 : index
    %153 = vector.load %arg2[%c0_38, %c0_39] : memref<256x512xf32, #tpu.memory_space<vmem>>, vector<256x512xf32>
    %cst_40 = arith.constant dense<0.000000e+00> : vector<8x512xf32>
    %154 = tpu.matmul %152, %153, %cst_40 {dimension_numbers = #tpu.dot_dimension_numbers<[1], [0], [0], [1], [0, 0, 1, 1], [], []>} : vector<8x256xf32>, vector<256x512xf32>, vector<8x512xf32> -> vector<8x512xf32>
    %155 = arith.addf %154, %2 : vector<8x512xf32>
    %156 = vector.extract_strided_slice %155 {offsets = [0, 0], sizes = [8, 128], strides = [1, 1]} : vector<8x512xf32> to vector<8x128xf32>
    %157 = arith.negf %156 : vector<8x128xf32>
    %158 = math.exp %157 : vector<8x128xf32>
    %cst_41 = arith.constant 1.000000e+00 : f32
    %159 = vector.broadcast %cst_41 : f32 to vector<8x128xf32>
    %160 = arith.addf %159, %158 : vector<8x128xf32>
    %161 = arith.divf %159, %160 : vector<8x128xf32>
    %162 = vector.extract_strided_slice %155 {offsets = [0, 128], sizes = [8, 128], strides = [1, 1]} : vector<8x512xf32> to vector<8x128xf32>
    %163 = arith.negf %162 : vector<8x128xf32>
    %164 = math.exp %163 : vector<8x128xf32>
    %cst_42 = arith.constant 1.000000e+00 : f32
    %165 = vector.broadcast %cst_42 : f32 to vector<8x128xf32>
    %166 = arith.addf %165, %164 : vector<8x128xf32>
    %167 = arith.divf %165, %166 : vector<8x128xf32>
    %168 = vector.extract_strided_slice %155 {offsets = [0, 256], sizes = [8, 128], strides = [1, 1]} : vector<8x512xf32> to vector<8x128xf32>
    %169 = math.tanh %168 : vector<8x128xf32>
    %170 = vector.extract_strided_slice %155 {offsets = [0, 384], sizes = [8, 128], strides = [1, 1]} : vector<8x512xf32> to vector<8x128xf32>
    %171 = arith.negf %170 : vector<8x128xf32>
    %172 = math.exp %171 : vector<8x128xf32>
    %cst_43 = arith.constant 1.000000e+00 : f32
    %173 = vector.broadcast %cst_43 : f32 to vector<8x128xf32>
    %174 = arith.addf %173, %172 : vector<8x128xf32>
    %175 = arith.divf %173, %174 : vector<8x128xf32>
    %176 = arith.mulf %167, %119 : vector<8x128xf32>
    %177 = arith.mulf %161, %169 : vector<8x128xf32>
    %178 = arith.addf %176, %177 : vector<8x128xf32>
    %179 = math.tanh %178 : vector<8x128xf32>
    %180 = arith.mulf %175, %179 : vector<8x128xf32>
    %c3 = arith.constant 3 : index
    %c0_44 = arith.constant 0 : index
    %c0_45 = arith.constant 0 : index
    %181 = vector.load %arg0[%c3, %c0_44, %c0_45] : memref<8x8x128xf32, #tpu.memory_space<vmem>>, vector<1x8x128xf32>
    %182 = vector.shape_cast %181 : vector<1x8x128xf32> to vector<8x128xf32>
    %183 = tpu.concatenate %182, %151 in 1 : vector<8x128xf32>, vector<8x128xf32> -> vector<8x256xf32>
    %c0_46 = arith.constant 0 : index
    %c0_47 = arith.constant 0 : index
    %184 = vector.load %arg1[%c0_46, %c0_47] : memref<256x512xf32, #tpu.memory_space<vmem>>, vector<256x512xf32>
    %cst_48 = arith.constant dense<0.000000e+00> : vector<8x512xf32>
    %185 = tpu.matmul %183, %184, %cst_48 {dimension_numbers = #tpu.dot_dimension_numbers<[1], [0], [0], [1], [0, 0, 1, 1], [], []>} : vector<8x256xf32>, vector<256x512xf32>, vector<8x512xf32> -> vector<8x512xf32>
    %186 = vector.extract_strided_slice %185 {offsets = [0, 0], sizes = [8, 128], strides = [1, 1]} : vector<8x512xf32> to vector<8x128xf32>
    %187 = arith.negf %186 : vector<8x128xf32>
    %188 = math.exp %187 : vector<8x128xf32>
    %cst_49 = arith.constant 1.000000e+00 : f32
    %189 = vector.broadcast %cst_49 : f32 to vector<8x128xf32>
    %190 = arith.addf %189, %188 : vector<8x128xf32>
    %191 = arith.divf %189, %190 : vector<8x128xf32>
    %192 = vector.extract_strided_slice %185 {offsets = [0, 128], sizes = [8, 128], strides = [1, 1]} : vector<8x512xf32> to vector<8x128xf32>
    %193 = arith.negf %192 : vector<8x128xf32>
    %194 = math.exp %193 : vector<8x128xf32>
    %cst_50 = arith.constant 1.000000e+00 : f32
    %195 = vector.broadcast %cst_50 : f32 to vector<8x128xf32>
    %196 = arith.addf %195, %194 : vector<8x128xf32>
    %197 = arith.divf %195, %196 : vector<8x128xf32>
    %198 = vector.extract_strided_slice %185 {offsets = [0, 256], sizes = [8, 128], strides = [1, 1]} : vector<8x512xf32> to vector<8x128xf32>
    %199 = math.tanh %198 : vector<8x128xf32>
    %200 = vector.extract_strided_slice %185 {offsets = [0, 384], sizes = [8, 128], strides = [1, 1]} : vector<8x512xf32> to vector<8x128xf32>
    %201 = arith.negf %200 : vector<8x128xf32>
    %202 = math.exp %201 : vector<8x128xf32>
    %cst_51 = arith.constant 1.000000e+00 : f32
    %203 = vector.broadcast %cst_51 : f32 to vector<8x128xf32>
    %204 = arith.addf %203, %202 : vector<8x128xf32>
    %205 = arith.divf %203, %204 : vector<8x128xf32>
    %206 = arith.mulf %197, %149 : vector<8x128xf32>
    %207 = arith.mulf %191, %199 : vector<8x128xf32>
    %208 = arith.addf %206, %207 : vector<8x128xf32>
    %209 = math.tanh %208 : vector<8x128xf32>
    %210 = arith.mulf %205, %209 : vector<8x128xf32>
    %211 = tpu.concatenate %210, %180 in 1 : vector<8x128xf32>, vector<8x128xf32> -> vector<8x256xf32>
    %c0_52 = arith.constant 0 : index
    %c0_53 = arith.constant 0 : index
    %212 = vector.load %arg2[%c0_52, %c0_53] : memref<256x512xf32, #tpu.memory_space<vmem>>, vector<256x512xf32>
    %cst_54 = arith.constant dense<0.000000e+00> : vector<8x512xf32>
    %213 = tpu.matmul %211, %212, %cst_54 {dimension_numbers = #tpu.dot_dimension_numbers<[1], [0], [0], [1], [0, 0, 1, 1], [], []>} : vector<8x256xf32>, vector<256x512xf32>, vector<8x512xf32> -> vector<8x512xf32>
    %214 = arith.addf %213, %2 : vector<8x512xf32>
    %215 = vector.extract_strided_slice %214 {offsets = [0, 0], sizes = [8, 128], strides = [1, 1]} : vector<8x512xf32> to vector<8x128xf32>
    %216 = arith.negf %215 : vector<8x128xf32>
    %217 = math.exp %216 : vector<8x128xf32>
    %cst_55 = arith.constant 1.000000e+00 : f32
    %218 = vector.broadcast %cst_55 : f32 to vector<8x128xf32>
    %219 = arith.addf %218, %217 : vector<8x128xf32>
    %220 = arith.divf %218, %219 : vector<8x128xf32>
    %221 = vector.extract_strided_slice %214 {offsets = [0, 128], sizes = [8, 128], strides = [1, 1]} : vector<8x512xf32> to vector<8x128xf32>
    %222 = arith.negf %221 : vector<8x128xf32>
    %223 = math.exp %222 : vector<8x128xf32>
    %cst_56 = arith.constant 1.000000e+00 : f32
    %224 = vector.broadcast %cst_56 : f32 to vector<8x128xf32>
    %225 = arith.addf %224, %223 : vector<8x128xf32>
    %226 = arith.divf %224, %225 : vector<8x128xf32>
    %227 = vector.extract_strided_slice %214 {offsets = [0, 256], sizes = [8, 128], strides = [1, 1]} : vector<8x512xf32> to vector<8x128xf32>
    %228 = math.tanh %227 : vector<8x128xf32>
    %229 = vector.extract_strided_slice %214 {offsets = [0, 384], sizes = [8, 128], strides = [1, 1]} : vector<8x512xf32> to vector<8x128xf32>
    %230 = arith.negf %229 : vector<8x128xf32>
    %231 = math.exp %230 : vector<8x128xf32>
    %cst_57 = arith.constant 1.000000e+00 : f32
    %232 = vector.broadcast %cst_57 : f32 to vector<8x128xf32>
    %233 = arith.addf %232, %231 : vector<8x128xf32>
    %234 = arith.divf %232, %233 : vector<8x128xf32>
    %235 = arith.mulf %226, %178 : vector<8x128xf32>
    %236 = arith.mulf %220, %228 : vector<8x128xf32>
    %237 = arith.addf %235, %236 : vector<8x128xf32>
    %238 = math.tanh %237 : vector<8x128xf32>
    %239 = arith.mulf %234, %238 : vector<8x128xf32>
    %c4 = arith.constant 4 : index
    %c0_58 = arith.constant 0 : index
    %c0_59 = arith.constant 0 : index
    %240 = vector.load %arg0[%c4, %c0_58, %c0_59] : memref<8x8x128xf32, #tpu.memory_space<vmem>>, vector<1x8x128xf32>
    %241 = vector.shape_cast %240 : vector<1x8x128xf32> to vector<8x128xf32>
    %242 = tpu.concatenate %241, %210 in 1 : vector<8x128xf32>, vector<8x128xf32> -> vector<8x256xf32>
    %c0_60 = arith.constant 0 : index
    %c0_61 = arith.constant 0 : index
    %243 = vector.load %arg1[%c0_60, %c0_61] : memref<256x512xf32, #tpu.memory_space<vmem>>, vector<256x512xf32>
    %cst_62 = arith.constant dense<0.000000e+00> : vector<8x512xf32>
    %244 = tpu.matmul %242, %243, %cst_62 {dimension_numbers = #tpu.dot_dimension_numbers<[1], [0], [0], [1], [0, 0, 1, 1], [], []>} : vector<8x256xf32>, vector<256x512xf32>, vector<8x512xf32> -> vector<8x512xf32>
    %245 = vector.extract_strided_slice %244 {offsets = [0, 0], sizes = [8, 128], strides = [1, 1]} : vector<8x512xf32> to vector<8x128xf32>
    %246 = arith.negf %245 : vector<8x128xf32>
    %247 = math.exp %246 : vector<8x128xf32>
    %cst_63 = arith.constant 1.000000e+00 : f32
    %248 = vector.broadcast %cst_63 : f32 to vector<8x128xf32>
    %249 = arith.addf %248, %247 : vector<8x128xf32>
    %250 = arith.divf %248, %249 : vector<8x128xf32>
    %251 = vector.extract_strided_slice %244 {offsets = [0, 128], sizes = [8, 128], strides = [1, 1]} : vector<8x512xf32> to vector<8x128xf32>
    %252 = arith.negf %251 : vector<8x128xf32>
    %253 = math.exp %252 : vector<8x128xf32>
    %cst_64 = arith.constant 1.000000e+00 : f32
    %254 = vector.broadcast %cst_64 : f32 to vector<8x128xf32>
    %255 = arith.addf %254, %253 : vector<8x128xf32>
    %256 = arith.divf %254, %255 : vector<8x128xf32>
    %257 = vector.extract_strided_slice %244 {offsets = [0, 256], sizes = [8, 128], strides = [1, 1]} : vector<8x512xf32> to vector<8x128xf32>
    %258 = math.tanh %257 : vector<8x128xf32>
    %259 = vector.extract_strided_slice %244 {offsets = [0, 384], sizes = [8, 128], strides = [1, 1]} : vector<8x512xf32> to vector<8x128xf32>
    %260 = arith.negf %259 : vector<8x128xf32>
    %261 = math.exp %260 : vector<8x128xf32>
    %cst_65 = arith.constant 1.000000e+00 : f32
    %262 = vector.broadcast %cst_65 : f32 to vector<8x128xf32>
    %263 = arith.addf %262, %261 : vector<8x128xf32>
    %264 = arith.divf %262, %263 : vector<8x128xf32>
    %265 = arith.mulf %256, %208 : vector<8x128xf32>
    %266 = arith.mulf %250, %258 : vector<8x128xf32>
    %267 = arith.addf %265, %266 : vector<8x128xf32>
    %268 = math.tanh %267 : vector<8x128xf32>
    %269 = arith.mulf %264, %268 : vector<8x128xf32>
    %270 = tpu.concatenate %269, %239 in 1 : vector<8x128xf32>, vector<8x128xf32> -> vector<8x256xf32>
    %c0_66 = arith.constant 0 : index
    %c0_67 = arith.constant 0 : index
    %271 = vector.load %arg2[%c0_66, %c0_67] : memref<256x512xf32, #tpu.memory_space<vmem>>, vector<256x512xf32>
    %cst_68 = arith.constant dense<0.000000e+00> : vector<8x512xf32>
    %272 = tpu.matmul %270, %271, %cst_68 {dimension_numbers = #tpu.dot_dimension_numbers<[1], [0], [0], [1], [0, 0, 1, 1], [], []>} : vector<8x256xf32>, vector<256x512xf32>, vector<8x512xf32> -> vector<8x512xf32>
    %273 = arith.addf %272, %2 : vector<8x512xf32>
    %274 = vector.extract_strided_slice %273 {offsets = [0, 0], sizes = [8, 128], strides = [1, 1]} : vector<8x512xf32> to vector<8x128xf32>
    %275 = arith.negf %274 : vector<8x128xf32>
    %276 = math.exp %275 : vector<8x128xf32>
    %cst_69 = arith.constant 1.000000e+00 : f32
    %277 = vector.broadcast %cst_69 : f32 to vector<8x128xf32>
    %278 = arith.addf %277, %276 : vector<8x128xf32>
    %279 = arith.divf %277, %278 : vector<8x128xf32>
    %280 = vector.extract_strided_slice %273 {offsets = [0, 128], sizes = [8, 128], strides = [1, 1]} : vector<8x512xf32> to vector<8x128xf32>
    %281 = arith.negf %280 : vector<8x128xf32>
    %282 = math.exp %281 : vector<8x128xf32>
    %cst_70 = arith.constant 1.000000e+00 : f32
    %283 = vector.broadcast %cst_70 : f32 to vector<8x128xf32>
    %284 = arith.addf %283, %282 : vector<8x128xf32>
    %285 = arith.divf %283, %284 : vector<8x128xf32>
    %286 = vector.extract_strided_slice %273 {offsets = [0, 256], sizes = [8, 128], strides = [1, 1]} : vector<8x512xf32> to vector<8x128xf32>
    %287 = math.tanh %286 : vector<8x128xf32>
    %288 = vector.extract_strided_slice %273 {offsets = [0, 384], sizes = [8, 128], strides = [1, 1]} : vector<8x512xf32> to vector<8x128xf32>
    %289 = arith.negf %288 : vector<8x128xf32>
    %290 = math.exp %289 : vector<8x128xf32>
    %cst_71 = arith.constant 1.000000e+00 : f32
    %291 = vector.broadcast %cst_71 : f32 to vector<8x128xf32>
    %292 = arith.addf %291, %290 : vector<8x128xf32>
    %293 = arith.divf %291, %292 : vector<8x128xf32>
    %294 = arith.mulf %285, %237 : vector<8x128xf32>
    %295 = arith.mulf %279, %287 : vector<8x128xf32>
    %296 = arith.addf %294, %295 : vector<8x128xf32>
    %297 = math.tanh %296 : vector<8x128xf32>
    %298 = arith.mulf %293, %297 : vector<8x128xf32>
    %c5 = arith.constant 5 : index
    %c0_72 = arith.constant 0 : index
    %c0_73 = arith.constant 0 : index
    %299 = vector.load %arg0[%c5, %c0_72, %c0_73] : memref<8x8x128xf32, #tpu.memory_space<vmem>>, vector<1x8x128xf32>
    %300 = vector.shape_cast %299 : vector<1x8x128xf32> to vector<8x128xf32>
    %301 = tpu.concatenate %300, %269 in 1 : vector<8x128xf32>, vector<8x128xf32> -> vector<8x256xf32>
    %c0_74 = arith.constant 0 : index
    %c0_75 = arith.constant 0 : index
    %302 = vector.load %arg1[%c0_74, %c0_75] : memref<256x512xf32, #tpu.memory_space<vmem>>, vector<256x512xf32>
    %cst_76 = arith.constant dense<0.000000e+00> : vector<8x512xf32>
    %303 = tpu.matmul %301, %302, %cst_76 {dimension_numbers = #tpu.dot_dimension_numbers<[1], [0], [0], [1], [0, 0, 1, 1], [], []>} : vector<8x256xf32>, vector<256x512xf32>, vector<8x512xf32> -> vector<8x512xf32>
    %304 = vector.extract_strided_slice %303 {offsets = [0, 0], sizes = [8, 128], strides = [1, 1]} : vector<8x512xf32> to vector<8x128xf32>
    %305 = arith.negf %304 : vector<8x128xf32>
    %306 = math.exp %305 : vector<8x128xf32>
    %cst_77 = arith.constant 1.000000e+00 : f32
    %307 = vector.broadcast %cst_77 : f32 to vector<8x128xf32>
    %308 = arith.addf %307, %306 : vector<8x128xf32>
    %309 = arith.divf %307, %308 : vector<8x128xf32>
    %310 = vector.extract_strided_slice %303 {offsets = [0, 128], sizes = [8, 128], strides = [1, 1]} : vector<8x512xf32> to vector<8x128xf32>
    %311 = arith.negf %310 : vector<8x128xf32>
    %312 = math.exp %311 : vector<8x128xf32>
    %cst_78 = arith.constant 1.000000e+00 : f32
    %313 = vector.broadcast %cst_78 : f32 to vector<8x128xf32>
    %314 = arith.addf %313, %312 : vector<8x128xf32>
    %315 = arith.divf %313, %314 : vector<8x128xf32>
    %316 = vector.extract_strided_slice %303 {offsets = [0, 256], sizes = [8, 128], strides = [1, 1]} : vector<8x512xf32> to vector<8x128xf32>
    %317 = math.tanh %316 : vector<8x128xf32>
    %318 = vector.extract_strided_slice %303 {offsets = [0, 384], sizes = [8, 128], strides = [1, 1]} : vector<8x512xf32> to vector<8x128xf32>
    %319 = arith.negf %318 : vector<8x128xf32>
    %320 = math.exp %319 : vector<8x128xf32>
    %cst_79 = arith.constant 1.000000e+00 : f32
    %321 = vector.broadcast %cst_79 : f32 to vector<8x128xf32>
    %322 = arith.addf %321, %320 : vector<8x128xf32>
    %323 = arith.divf %321, %322 : vector<8x128xf32>
    %324 = arith.mulf %315, %267 : vector<8x128xf32>
    %325 = arith.mulf %309, %317 : vector<8x128xf32>
    %326 = arith.addf %324, %325 : vector<8x128xf32>
    %327 = math.tanh %326 : vector<8x128xf32>
    %328 = arith.mulf %323, %327 : vector<8x128xf32>
    %329 = tpu.concatenate %328, %298 in 1 : vector<8x128xf32>, vector<8x128xf32> -> vector<8x256xf32>
    %c0_80 = arith.constant 0 : index
    %c0_81 = arith.constant 0 : index
    %330 = vector.load %arg2[%c0_80, %c0_81] : memref<256x512xf32, #tpu.memory_space<vmem>>, vector<256x512xf32>
    %cst_82 = arith.constant dense<0.000000e+00> : vector<8x512xf32>
    %331 = tpu.matmul %329, %330, %cst_82 {dimension_numbers = #tpu.dot_dimension_numbers<[1], [0], [0], [1], [0, 0, 1, 1], [], []>} : vector<8x256xf32>, vector<256x512xf32>, vector<8x512xf32> -> vector<8x512xf32>
    %332 = arith.addf %331, %2 : vector<8x512xf32>
    %333 = vector.extract_strided_slice %332 {offsets = [0, 0], sizes = [8, 128], strides = [1, 1]} : vector<8x512xf32> to vector<8x128xf32>
    %334 = arith.negf %333 : vector<8x128xf32>
    %335 = math.exp %334 : vector<8x128xf32>
    %cst_83 = arith.constant 1.000000e+00 : f32
    %336 = vector.broadcast %cst_83 : f32 to vector<8x128xf32>
    %337 = arith.addf %336, %335 : vector<8x128xf32>
    %338 = arith.divf %336, %337 : vector<8x128xf32>
    %339 = vector.extract_strided_slice %332 {offsets = [0, 128], sizes = [8, 128], strides = [1, 1]} : vector<8x512xf32> to vector<8x128xf32>
    %340 = arith.negf %339 : vector<8x128xf32>
    %341 = math.exp %340 : vector<8x128xf32>
    %cst_84 = arith.constant 1.000000e+00 : f32
    %342 = vector.broadcast %cst_84 : f32 to vector<8x128xf32>
    %343 = arith.addf %342, %341 : vector<8x128xf32>
    %344 = arith.divf %342, %343 : vector<8x128xf32>
    %345 = vector.extract_strided_slice %332 {offsets = [0, 256], sizes = [8, 128], strides = [1, 1]} : vector<8x512xf32> to vector<8x128xf32>
    %346 = math.tanh %345 : vector<8x128xf32>
    %347 = vector.extract_strided_slice %332 {offsets = [0, 384], sizes = [8, 128], strides = [1, 1]} : vector<8x512xf32> to vector<8x128xf32>
    %348 = arith.negf %347 : vector<8x128xf32>
    %349 = math.exp %348 : vector<8x128xf32>
    %cst_85 = arith.constant 1.000000e+00 : f32
    %350 = vector.broadcast %cst_85 : f32 to vector<8x128xf32>
    %351 = arith.addf %350, %349 : vector<8x128xf32>
    %352 = arith.divf %350, %351 : vector<8x128xf32>
    %353 = arith.mulf %344, %296 : vector<8x128xf32>
    %354 = arith.mulf %338, %346 : vector<8x128xf32>
    %355 = arith.addf %353, %354 : vector<8x128xf32>
    %356 = math.tanh %355 : vector<8x128xf32>
    %357 = arith.mulf %352, %356 : vector<8x128xf32>
    %c6 = arith.constant 6 : index
    %c0_86 = arith.constant 0 : index
    %c0_87 = arith.constant 0 : index
    %358 = vector.load %arg0[%c6, %c0_86, %c0_87] : memref<8x8x128xf32, #tpu.memory_space<vmem>>, vector<1x8x128xf32>
    %359 = vector.shape_cast %358 : vector<1x8x128xf32> to vector<8x128xf32>
    %360 = tpu.concatenate %359, %328 in 1 : vector<8x128xf32>, vector<8x128xf32> -> vector<8x256xf32>
    %c0_88 = arith.constant 0 : index
    %c0_89 = arith.constant 0 : index
    %361 = vector.load %arg1[%c0_88, %c0_89] : memref<256x512xf32, #tpu.memory_space<vmem>>, vector<256x512xf32>
    %cst_90 = arith.constant dense<0.000000e+00> : vector<8x512xf32>
    %362 = tpu.matmul %360, %361, %cst_90 {dimension_numbers = #tpu.dot_dimension_numbers<[1], [0], [0], [1], [0, 0, 1, 1], [], []>} : vector<8x256xf32>, vector<256x512xf32>, vector<8x512xf32> -> vector<8x512xf32>
    %363 = vector.extract_strided_slice %362 {offsets = [0, 0], sizes = [8, 128], strides = [1, 1]} : vector<8x512xf32> to vector<8x128xf32>
    %364 = arith.negf %363 : vector<8x128xf32>
    %365 = math.exp %364 : vector<8x128xf32>
    %cst_91 = arith.constant 1.000000e+00 : f32
    %366 = vector.broadcast %cst_91 : f32 to vector<8x128xf32>
    %367 = arith.addf %366, %365 : vector<8x128xf32>
    %368 = arith.divf %366, %367 : vector<8x128xf32>
    %369 = vector.extract_strided_slice %362 {offsets = [0, 128], sizes = [8, 128], strides = [1, 1]} : vector<8x512xf32> to vector<8x128xf32>
    %370 = arith.negf %369 : vector<8x128xf32>
    %371 = math.exp %370 : vector<8x128xf32>
    %cst_92 = arith.constant 1.000000e+00 : f32
    %372 = vector.broadcast %cst_92 : f32 to vector<8x128xf32>
    %373 = arith.addf %372, %371 : vector<8x128xf32>
    %374 = arith.divf %372, %373 : vector<8x128xf32>
    %375 = vector.extract_strided_slice %362 {offsets = [0, 256], sizes = [8, 128], strides = [1, 1]} : vector<8x512xf32> to vector<8x128xf32>
    %376 = math.tanh %375 : vector<8x128xf32>
    %377 = vector.extract_strided_slice %362 {offsets = [0, 384], sizes = [8, 128], strides = [1, 1]} : vector<8x512xf32> to vector<8x128xf32>
    %378 = arith.negf %377 : vector<8x128xf32>
    %379 = math.exp %378 : vector<8x128xf32>
    %cst_93 = arith.constant 1.000000e+00 : f32
    %380 = vector.broadcast %cst_93 : f32 to vector<8x128xf32>
    %381 = arith.addf %380, %379 : vector<8x128xf32>
    %382 = arith.divf %380, %381 : vector<8x128xf32>
    %383 = arith.mulf %374, %326 : vector<8x128xf32>
    %384 = arith.mulf %368, %376 : vector<8x128xf32>
    %385 = arith.addf %383, %384 : vector<8x128xf32>
    %386 = math.tanh %385 : vector<8x128xf32>
    %387 = arith.mulf %382, %386 : vector<8x128xf32>
    %388 = tpu.concatenate %387, %357 in 1 : vector<8x128xf32>, vector<8x128xf32> -> vector<8x256xf32>
    %c0_94 = arith.constant 0 : index
    %c0_95 = arith.constant 0 : index
    %389 = vector.load %arg2[%c0_94, %c0_95] : memref<256x512xf32, #tpu.memory_space<vmem>>, vector<256x512xf32>
    %cst_96 = arith.constant dense<0.000000e+00> : vector<8x512xf32>
    %390 = tpu.matmul %388, %389, %cst_96 {dimension_numbers = #tpu.dot_dimension_numbers<[1], [0], [0], [1], [0, 0, 1, 1], [], []>} : vector<8x256xf32>, vector<256x512xf32>, vector<8x512xf32> -> vector<8x512xf32>
    %391 = arith.addf %390, %2 : vector<8x512xf32>
    %392 = vector.extract_strided_slice %391 {offsets = [0, 0], sizes = [8, 128], strides = [1, 1]} : vector<8x512xf32> to vector<8x128xf32>
    %393 = arith.negf %392 : vector<8x128xf32>
    %394 = math.exp %393 : vector<8x128xf32>
    %cst_97 = arith.constant 1.000000e+00 : f32
    %395 = vector.broadcast %cst_97 : f32 to vector<8x128xf32>
    %396 = arith.addf %395, %394 : vector<8x128xf32>
    %397 = arith.divf %395, %396 : vector<8x128xf32>
    %398 = vector.extract_strided_slice %391 {offsets = [0, 128], sizes = [8, 128], strides = [1, 1]} : vector<8x512xf32> to vector<8x128xf32>
    %399 = arith.negf %398 : vector<8x128xf32>
    %400 = math.exp %399 : vector<8x128xf32>
    %cst_98 = arith.constant 1.000000e+00 : f32
    %401 = vector.broadcast %cst_98 : f32 to vector<8x128xf32>
    %402 = arith.addf %401, %400 : vector<8x128xf32>
    %403 = arith.divf %401, %402 : vector<8x128xf32>
    %404 = vector.extract_strided_slice %391 {offsets = [0, 256], sizes = [8, 128], strides = [1, 1]} : vector<8x512xf32> to vector<8x128xf32>
    %405 = math.tanh %404 : vector<8x128xf32>
    %406 = vector.extract_strided_slice %391 {offsets = [0, 384], sizes = [8, 128], strides = [1, 1]} : vector<8x512xf32> to vector<8x128xf32>
    %407 = arith.negf %406 : vector<8x128xf32>
    %408 = math.exp %407 : vector<8x128xf32>
    %cst_99 = arith.constant 1.000000e+00 : f32
    %409 = vector.broadcast %cst_99 : f32 to vector<8x128xf32>
    %410 = arith.addf %409, %408 : vector<8x128xf32>
    %411 = arith.divf %409, %410 : vector<8x128xf32>
    %412 = arith.mulf %403, %355 : vector<8x128xf32>
    %413 = arith.mulf %397, %405 : vector<8x128xf32>
    %414 = arith.addf %412, %413 : vector<8x128xf32>
    %415 = math.tanh %414 : vector<8x128xf32>
    %416 = arith.mulf %411, %415 : vector<8x128xf32>
    %c7 = arith.constant 7 : index
    %c0_100 = arith.constant 0 : index
    %c0_101 = arith.constant 0 : index
    %417 = vector.load %arg0[%c7, %c0_100, %c0_101] : memref<8x8x128xf32, #tpu.memory_space<vmem>>, vector<1x8x128xf32>
    %418 = vector.shape_cast %417 : vector<1x8x128xf32> to vector<8x128xf32>
    %419 = tpu.concatenate %418, %387 in 1 : vector<8x128xf32>, vector<8x128xf32> -> vector<8x256xf32>
    %c0_102 = arith.constant 0 : index
    %c0_103 = arith.constant 0 : index
    %420 = vector.load %arg1[%c0_102, %c0_103] : memref<256x512xf32, #tpu.memory_space<vmem>>, vector<256x512xf32>
    %cst_104 = arith.constant dense<0.000000e+00> : vector<8x512xf32>
    %421 = tpu.matmul %419, %420, %cst_104 {dimension_numbers = #tpu.dot_dimension_numbers<[1], [0], [0], [1], [0, 0, 1, 1], [], []>} : vector<8x256xf32>, vector<256x512xf32>, vector<8x512xf32> -> vector<8x512xf32>
    %422 = vector.extract_strided_slice %421 {offsets = [0, 0], sizes = [8, 128], strides = [1, 1]} : vector<8x512xf32> to vector<8x128xf32>
    %423 = arith.negf %422 : vector<8x128xf32>
    %424 = math.exp %423 : vector<8x128xf32>
    %cst_105 = arith.constant 1.000000e+00 : f32
    %425 = vector.broadcast %cst_105 : f32 to vector<8x128xf32>
    %426 = arith.addf %425, %424 : vector<8x128xf32>
    %427 = arith.divf %425, %426 : vector<8x128xf32>
    %428 = vector.extract_strided_slice %421 {offsets = [0, 128], sizes = [8, 128], strides = [1, 1]} : vector<8x512xf32> to vector<8x128xf32>
    %429 = arith.negf %428 : vector<8x128xf32>
    %430 = math.exp %429 : vector<8x128xf32>
    %cst_106 = arith.constant 1.000000e+00 : f32
    %431 = vector.broadcast %cst_106 : f32 to vector<8x128xf32>
    %432 = arith.addf %431, %430 : vector<8x128xf32>
    %433 = arith.divf %431, %432 : vector<8x128xf32>
    %434 = vector.extract_strided_slice %421 {offsets = [0, 256], sizes = [8, 128], strides = [1, 1]} : vector<8x512xf32> to vector<8x128xf32>
    %435 = math.tanh %434 : vector<8x128xf32>
    %436 = vector.extract_strided_slice %421 {offsets = [0, 384], sizes = [8, 128], strides = [1, 1]} : vector<8x512xf32> to vector<8x128xf32>
    %437 = arith.negf %436 : vector<8x128xf32>
    %438 = math.exp %437 : vector<8x128xf32>
    %cst_107 = arith.constant 1.000000e+00 : f32
    %439 = vector.broadcast %cst_107 : f32 to vector<8x128xf32>
    %440 = arith.addf %439, %438 : vector<8x128xf32>
    %441 = arith.divf %439, %440 : vector<8x128xf32>
    %442 = arith.mulf %433, %385 : vector<8x128xf32>
    %443 = arith.mulf %427, %435 : vector<8x128xf32>
    %444 = arith.addf %442, %443 : vector<8x128xf32>
    %445 = math.tanh %444 : vector<8x128xf32>
    %446 = arith.mulf %441, %445 : vector<8x128xf32>
    %447 = tpu.concatenate %446, %416 in 1 : vector<8x128xf32>, vector<8x128xf32> -> vector<8x256xf32>
    %c0_108 = arith.constant 0 : index
    %c0_109 = arith.constant 0 : index
    %448 = vector.load %arg2[%c0_108, %c0_109] : memref<256x512xf32, #tpu.memory_space<vmem>>, vector<256x512xf32>
    %cst_110 = arith.constant dense<0.000000e+00> : vector<8x512xf32>
    %449 = tpu.matmul %447, %448, %cst_110 {dimension_numbers = #tpu.dot_dimension_numbers<[1], [0], [0], [1], [0, 0, 1, 1], [], []>} : vector<8x256xf32>, vector<256x512xf32>, vector<8x512xf32> -> vector<8x512xf32>
    %450 = arith.addf %449, %2 : vector<8x512xf32>
    %451 = vector.extract_strided_slice %450 {offsets = [0, 0], sizes = [8, 128], strides = [1, 1]} : vector<8x512xf32> to vector<8x128xf32>
    %452 = arith.negf %451 : vector<8x128xf32>
    %453 = math.exp %452 : vector<8x128xf32>
    %cst_111 = arith.constant 1.000000e+00 : f32
    %454 = vector.broadcast %cst_111 : f32 to vector<8x128xf32>
    %455 = arith.addf %454, %453 : vector<8x128xf32>
    %456 = arith.divf %454, %455 : vector<8x128xf32>
    %457 = vector.extract_strided_slice %450 {offsets = [0, 128], sizes = [8, 128], strides = [1, 1]} : vector<8x512xf32> to vector<8x128xf32>
    %458 = arith.negf %457 : vector<8x128xf32>
    %459 = math.exp %458 : vector<8x128xf32>
    %cst_112 = arith.constant 1.000000e+00 : f32
    %460 = vector.broadcast %cst_112 : f32 to vector<8x128xf32>
    %461 = arith.addf %460, %459 : vector<8x128xf32>
    %462 = arith.divf %460, %461 : vector<8x128xf32>
    %463 = vector.extract_strided_slice %450 {offsets = [0, 256], sizes = [8, 128], strides = [1, 1]} : vector<8x512xf32> to vector<8x128xf32>
    %464 = math.tanh %463 : vector<8x128xf32>
    %465 = vector.extract_strided_slice %450 {offsets = [0, 384], sizes = [8, 128], strides = [1, 1]} : vector<8x512xf32> to vector<8x128xf32>
    %466 = arith.negf %465 : vector<8x128xf32>
    %467 = math.exp %466 : vector<8x128xf32>
    %cst_113 = arith.constant 1.000000e+00 : f32
    %468 = vector.broadcast %cst_113 : f32 to vector<8x128xf32>
    %469 = arith.addf %468, %467 : vector<8x128xf32>
    %470 = arith.divf %468, %469 : vector<8x128xf32>
    %471 = arith.mulf %462, %414 : vector<8x128xf32>
    %472 = arith.mulf %456, %464 : vector<8x128xf32>
    %473 = arith.addf %471, %472 : vector<8x128xf32>
    %474 = math.tanh %473 : vector<8x128xf32>
    %475 = arith.mulf %470, %474 : vector<8x128xf32>
    %c0_114 = arith.constant 0 : index
    %c0_115 = arith.constant 0 : index
    %476 = vector.load %arg4[%c0_114, %c0_115] : memref<128x3xf32, #tpu.memory_space<vmem>>, vector<128x3xf32>
    %cst_116 = arith.constant dense<0.000000e+00> : vector<8x3xf32>
    %477 = tpu.matmul %475, %476, %cst_116 {dimension_numbers = #tpu.dot_dimension_numbers<[1], [0], [0], [1], [0, 0, 1, 1], [], []>} : vector<8x128xf32>, vector<128x3xf32>, vector<8x3xf32> -> vector<8x3xf32>
    %c0_117 = arith.constant 0 : index
    %c0_118 = arith.constant 0 : index
    %478 = vector.load %arg5[%c0_117, %c0_118] : memref<1x3xf32, #tpu.memory_space<vmem>>, vector<1x3xf32>
    %479 = vector.broadcast %478 : vector<1x3xf32> to vector<8x3xf32>
    %480 = arith.addf %477, %479 : vector<8x3xf32>
    %cst_119 = arith.constant dense<0xFF800000> : vector<8xf32>
    %481 = vector.multi_reduction <maximumf>, %480, %cst_119 [1] : vector<8x3xf32> to vector<8xf32>
    %482 = vector.shape_cast %481 : vector<8xf32> to vector<8x1xf32>
    %483 = vector.broadcast %482 : vector<8x1xf32> to vector<8x3xf32>
    %484 = arith.subf %480, %483 : vector<8x3xf32>
    %485 = math.exp %484 : vector<8x3xf32>
    %cst_120 = arith.constant dense<0.000000e+00> : vector<8xf32>
    %486 = vector.multi_reduction <add>, %485, %cst_120 [1] : vector<8x3xf32> to vector<8xf32>
    %487 = vector.shape_cast %486 : vector<8xf32> to vector<8x1xf32>
    %488 = vector.broadcast %487 : vector<8x1xf32> to vector<8x3xf32>
    %489 = arith.divf %485, %488 : vector<8x3xf32>
    %c0_121 = arith.constant 0 : index
    %c0_122 = arith.constant 0 : index
    %490 = vector.load %arg6[%c0_121, %c0_122] : memref<8x3xf32, #tpu.memory_space<vmem>>, vector<8x3xf32>
    tpu.vector_store %arg6[%c0_121, %c0_122], %489 {strides = array<i32>} : memref<8x3xf32, #tpu.memory_space<vmem>>, vector<8x3xf32>,
    return
  }
}

</mosaic_0001>

<bundles_post_ra>
// kernel: tpu_custom_call.1
= control target key start
LH: loop header
LB: loop body
LE: loop exit
PB: predicated region body
PF: predicated region fallthrough
CT: control target
= control target key end

     0   :  { %11 = vsyncpa [#allocation3], 0  ;;  %s7138_s0 = inlined_call_operand.vmem [shape: f32[8,8,128], index: 0, kind: input, shape index: {}]   ;;  %s7139_s1 = inlined_call_operand.hbm [shape: f32[256,512], index: 1, kind: input, shape index: {}]   ;;  %s7140_s2 = inlined_call_operand.hbm [shape: f32[256,512], index: 2, kind: input, shape index: {}]   ;;  %s7141_s3 = inlined_call_operand.vmem [shape: f32[1,512], index: 3, kind: input, shape index: {}]   ;;  %s7142_s4 = inlined_call_operand.vmem [shape: f32[128,3], index: 4, kind: input, shape index: {}]   ;;  %s7143_s5 = inlined_call_operand.vmem [shape: f32[1,3], index: 5, kind: input, shape index: {}]   ;;  %s7144_s6 = inlined_call_operand.vmem [shape: f32[8,3], index: 6, kind: output, shape index: {}]  }
   0x1   :  { %12 = vsyncpa [#allocation5], 0  ;;  %s5607_s21 = smov [#allocation2]   ;;  %s5559_s25 = scalar_lea.hbm %s7139_s1, 16384 }
   0x2   :  { %s20_s22 = sshll.u32 %s5607_s21, 4  ;;  %p5560_p0 = scmp.ne.s32.totalorder %s7139_s1, %s5559_s25  ;;  %s21_s22 = int_to_ptr.vmem [resolvable:$true] %s20_s22 }
   0x3   :  { %p5563_p1 = scmp.lt.u32.totalorder %s5559_s25, %s7139_s1 }
   0x5   :  { %p5565_p2 = pnand %p5563_p1, %p5560_p0 }
   0x7   :  { %5568 = shalt.err (!%p5565_p2)
}
   0x8   :  { %s5569_s30 = scalar_lea.vmem %s21_s22, 16384  ;;  %p5574_p4 = scmp.lt.s32.totalorder %s21_s22, %s21_s22 }
   0x9   :  { %p5570_p3 = scmp.ne.s32.totalorder %s21_s22, %s5569_s30  ;;  %p5575_p5 = scmp.lt.s32.totalorder %s5569_s30, %s5569_s30 }
   0xb   :  { %p5576_p6 = por %p5575_p5, %p5574_p4 }
   0xd   :  { %p5577_p7 = pnand %p5576_p6, %p5570_p3 }
   0xf   :  { %5580 = shalt.err (!%p5577_p7)
}
  0x10   :  { %s5608_s7 = smov 512   ;;  %s5609_s8 = smov 32  }
  0x11   :  { %26 = dma.hbm_to_vmem [thread:$0]  %s7139_s1, 16384, %s21_s22, [#allocation3], %s5608_s7, %s5608_s7, %s5609_s8  }
  0x12   :  { %s5610_s11 = smov [#allocation4]   ;;  %s5581_s15 = scalar_lea.hbm %s7140_s2, 16384 }
  0x13   :  { %s32_s12 = sshll.u32 %s5610_s11, 4  ;;  %p5582_p8 = scmp.ne.s32.totalorder %s7140_s2, %s5581_s15  ;;  %s33_s12 = int_to_ptr.vmem [resolvable:$true] %s32_s12 }
  0x14   :  { %p5585_p9 = scmp.lt.u32.totalorder %s5581_s15, %s7140_s2 }
  0x16   :  { %p5587_p10 = pnand %p5585_p9, %p5582_p8 }
  0x18   :  { %5590 = shalt.err (!%p5587_p10)
}
  0x19   :  { %s5591_s20 = scalar_lea.vmem %s33_s12, 16384  ;;  %p5596_p12 = scmp.lt.s32.totalorder %s33_s12, %s33_s12 }
  0x1a   :  { %p5592_p11 = scmp.ne.s32.totalorder %s33_s12, %s5591_s20  ;;  %p5597_p13 = scmp.lt.s32.totalorder %s5591_s20, %s5591_s20 }
  0x1c   :  { %p5598_p0 = por %p5597_p13, %p5596_p12 }
  0x1e   :  { %p5599_p1 = pnand %p5598_p0, %p5592_p11 }
  0x20   :  { %5602 = shalt.err (!%p5599_p1)
}
  0x21   :  { %38 = dma.hbm_to_vmem [thread:$0]  %s7140_s2, 16384, %s33_s12, [#allocation5], %s5608_s7, %s5608_s7, %s5609_s8  }
  0x22   :  { %5603 = dma.done.wait [#allocation3], 16384  }
  0x23   :  { %5604 = vsyncadd [#allocation3], 4294950912 }
  0x24   :  { %5605 = dma.done.wait [#allocation5], 16384  }
  0x25   :  { %5606 = vsyncadd [#allocation5], 4294950912  ;;  %v7145_v0 = vmov 0.0   ;;  %v75_v1 = vld [vmem:[#allocation2 + $0x8] sm:$0xff]  ;;  %v74_v3 = vld [vmem:[#allocation2] sm:$0xff]  ;;  %vm5613_vm0 = vmmov 0  }
  0x26   :  { %266 = vmatprep.mubr.f32.mxu0 %v7145_v0  ;;  %337 = vmatprep.mubr.f32.mxu1 %v7145_v0  ;;  %v79_v2 = vld [vmem:[#allocation2 + $0x28] sm:$0xff]  ;;  %v78_v5 = vld [vmem:[#allocation2 + $0x20] sm:$0xff]  ;;  %v77_v19 = vld [vmem:[#allocation2 + $0x18] sm:$0xff]  ;;  %vm3093_vm1 = vcmask 23552  }
  0x27   :  { %v5675_v4 = vpack.c.bf16 %v79_v2, %v75_v1  ;;  %v83_v6 = vld [vmem:[#allocation2 + $0x48] sm:$0xff]  ;;  %v5677_v8 = vpack.c.bf16 %v78_v5, %v74_v3  ;;  %v82_v10 = vld [vmem:[#allocation2 + $0x40] sm:$0xff]  ;;  %v81_v20 = vld [vmem:[#allocation2 + $0x38] sm:$0xff] }
  0x28   :  { %v87_v7 = vld [vmem:[#allocation2 + $0x68] sm:$0xff]  ;;  %v86_v11 = vld [vmem:[#allocation2 + $0x60] sm:$0xff]  ;;  %v5688_v22 = vpack.c.bf16 %v81_v20, %v77_v19  ;;  %v76_v23 = vld [vmem:[#allocation2 + $0x10] sm:$0xff] }
  0x29   :  { %7328 = vst [vmem:[#allocation8_spill] sm:$0xff] %v5675_v4  ;;  %v5679_v9 = vpack.c.bf16 %v87_v7, %v83_v6  ;;  %v91_v12 = vld [vmem:[#allocation2 + $0x88] sm:$0xff]  ;;  %3221 = vmatprep.subr.bf16.mxu0 %v5675_v4  ;;  %v5683_v14 = vpack.c.bf16 %v86_v11, %v82_v10  ;;  %v90_v15 = vld [vmem:[#allocation2 + $0x80] sm:$0xff]  ;;  %v80_v24 = vld [vmem:[#allocation2 + $0x30] sm:$0xff] }
  0x2a   :  { %v95_v13 = vld [vmem:[#allocation2 + $0xa8] sm:$0xff]  ;;  %3223 = vmatpush1.bf16.msra.mxu0 %v5677_v8  ;;  %v94_v16 = vld [vmem:[#allocation2 + $0xa0] sm:$0xff]  ;;  %7329 = vst [vmem:[#allocation9_spill] sm:$0xff] %v5688_v22  ;;  %v5690_v25 = vpack.c.bf16 %v80_v24, %v76_v23  ;;  %3285 = vmatprep.subr.bf16.mxu1 %v5688_v22  ;;  %v85_v27 = vld [vmem:[#allocation2 + $0x58] sm:$0xff] }
  0x2b   :  { %3225 = vmatprep.subr.bf16.mxu0 %v5679_v9  ;;  %v5686_v17 = vpack.c.bf16 %v95_v13, %v91_v12  ;;  %v99_v18 = vld [vmem:[#allocation2 + $0xc8] sm:$0xff]  ;;  %v5693_v26 = vpack.c.bf16 %v94_v16, %v90_v15  ;;  %v89_v28 = vld [vmem:[#allocation2 + $0x78] sm:$0xff]  ;;  %v84_v29 = vld [vmem:[#allocation2 + $0x50] sm:$0xff] }
  0x2c   :  { %v103_v21 = vld [vmem:[#allocation2 + $0xe8] sm:$0xff]  ;;  %v98_v31 = vld [vmem:[#allocation2 + $0xc0] sm:$0xff]  ;;  %3287 = vmatpush1.bf16.msra.mxu1 %v5690_v25  ;;  %v5700_v33 = vpack.c.bf16 %v89_v28, %v85_v27  ;;  %v88_v34 = vld [vmem:[#allocation2 + $0x70] sm:$0xff] }
  0x2d   :  { %v5697_v30 = vpack.c.bf16 %v103_v21, %v99_v18  ;;  %v102_v32 = vld [vmem:[#allocation2 + $0xe0] sm:$0xff]  ;;  %v107_v35 = vld [vmem:[#allocation2 + $0x108] sm:$0xff]  ;;  %v5702_v37 = vpack.c.bf16 %v88_v34, %v84_v29  ;;  %v93_v38 = vld [vmem:[#allocation2 + $0x98] sm:$0xff] }
  0x2e   :  { %3227 = vmatpush1.bf16.msra.mxu0 %v5683_v14  ;;  %v111_v36 = vld [vmem:[#allocation2 + $0x128] sm:$0xff]  ;;  %3289 = vmatprep.subr.bf16.mxu1 %v5700_v33  ;;  %v97_v39 = vld [vmem:[#allocation2 + $0xb8] sm:$0xff]  ;;  %v92_v40 = vld [vmem:[#allocation2 + $0x90] sm:$0xff]  ;;  %v5706_v42 = vpack.c.bf16 %v102_v32, %v98_v31 }
  0x2f   :  { %3229 = vmatprep.subr.bf16.mxu0 %v5686_v17  ;;  %v96_v41 = vld [vmem:[#allocation2 + $0xb0] sm:$0xff]  ;;  %v106_v43 = vld [vmem:[#allocation2 + $0x100] sm:$0xff]  ;;  %v5708_v45 = vpack.c.bf16 %v97_v39, %v93_v38  ;;  %v5711_v46 = vpack.c.bf16 %v111_v36, %v107_v35  ;;  %v115_v47 = vld [vmem:[#allocation2 + $0x148] sm:$0xff] }
  0x30   :  { %v110_v44 = vld [vmem:[#allocation2 + $0x120] sm:$0xff]  ;;  %3291 = vmatpush1.bf16.msra.mxu1 %v5702_v37  ;;  %v5714_v48 = vpack.c.bf16 %v96_v41, %v92_v40  ;;  %v101_v49 = vld [vmem:[#allocation2 + $0xd8] sm:$0xff]  ;;  %v119_v51 = vld [vmem:[#allocation2 + $0x168] sm:$0xff] }
  0x31   :  { %v105_v50 = vld [vmem:[#allocation2 + $0xf8] sm:$0xff]  ;;  %3293 = vmatprep.subr.bf16.mxu1 %v5708_v45  ;;  %v100_v53 = vld [vmem:[#allocation2 + $0xd0] sm:$0xff]  ;;  %v5720_v55 = vpack.c.bf16 %v110_v44, %v106_v43  ;;  %v5723_v58 = vpack.c.bf16 %v119_v51, %v115_v47  ;;  %v114_v59 = vld [vmem:[#allocation2 + $0x140] sm:$0xff] }
  0x32   :  { %3231 = vmatpush1.bf16.msra.mxu0 %v5693_v26  ;;  %v5717_v52 = vpack.c.bf16 %v105_v50, %v101_v49  ;;  %v104_v54 = vld [vmem:[#allocation2 + $0xf0] sm:$0xff]  ;;  %v109_v56 = vld [vmem:[#allocation2 + $0x118] sm:$0xff]  ;;  %v118_v60 = vld [vmem:[#allocation2 + $0x160] sm:$0xff] }
  0x33   :  { %3233 = vmatprep.subr.bf16.mxu0 %v5697_v30  ;;  %v113_v57 = vld [vmem:[#allocation2 + $0x138] sm:$0xff]  ;;  %v123_v61 = vld [vmem:[#allocation2 + $0x188] sm:$0xff]  ;;  %v5726_v62 = vpack.c.bf16 %v104_v54, %v100_v53  ;;  %v108_v2 = vld [vmem:[#allocation2 + $0x110] sm:$0xff]  ;;  %v5732_v7 = vpack.c.bf16 %v118_v60, %v114_v59 }
  0x34   :  { %3295 = vmatpush1.bf16.msra.mxu1 %v5714_v48  ;;  %v127_v63 = vld [vmem:[#allocation2 + $0x1a8] sm:$0xff]  ;;  %v5729_v1 = vpack.c.bf16 %v113_v57, %v109_v56  ;;  %v112_v3 = vld [vmem:[#allocation2 + $0x130] sm:$0xff]  ;;  %v117_v5 = vld [vmem:[#allocation2 + $0x158] sm:$0xff] }
  0x35   :  { %3297 = vmatprep.subr.bf16.mxu1 %v5717_v52  ;;  %v121_v6 = vld [vmem:[#allocation2 + $0x178] sm:$0xff]  ;;  %v5735_v10 = vpack.c.bf16 %v127_v63, %v123_v61  ;;  %v122_v11 = vld [vmem:[#allocation2 + $0x180] sm:$0xff]  ;;  %v131_v13 = vld [vmem:[#allocation2 + $0x1c8] sm:$0xff]  ;;  %v5738_v15 = vpack.c.bf16 %v112_v3, %v108_v2 }
  0x36   :  { %3235 = vmatpush1.bf16.msra.mxu0 %v5706_v42  ;;  %v126_v12 = vld [vmem:[#allocation2 + $0x1a0] sm:$0xff]  ;;  %v135_v16 = vld [vmem:[#allocation2 + $0x1e8] sm:$0xff]  ;;  %v5741_v18 = vpack.c.bf16 %v121_v6, %v117_v5  ;;  %v116_v19 = vld [vmem:[#allocation2 + $0x150] sm:$0xff] }
  0x37   :  { %3237 = vmatprep.subr.bf16.mxu0 %v5711_v46  ;;  %v120_v20 = vld [vmem:[#allocation2 + $0x170] sm:$0xff]  ;;  %v125_v21 = vld [vmem:[#allocation2 + $0x198] sm:$0xff]  ;;  %v5744_v24 = vpack.c.bf16 %v126_v12, %v122_v11  ;;  %v5747_v27 = vpack.c.bf16 %v135_v16, %v131_v13  ;;  %v130_v28 = vld [vmem:[#allocation2 + $0x1c0] sm:$0xff] }
  0x38   :  { %3299 = vmatpush1.bf16.msra.mxu1 %v5726_v62  ;;  %v129_v23 = vld [vmem:[#allocation2 + $0x1b8] sm:$0xff]  ;;  %v134_v29 = vld [vmem:[#allocation2 + $0x1e0] sm:$0xff]  ;;  %v139_v31 = vld [vmem:[#allocation2 + $0x208] sm:$0xff]  ;;  %v5750_v32 = vpack.c.bf16 %v120_v20, %v116_v19 }
  0x39   :  { %3301 = vmatprep.subr.bf16.mxu1 %v5729_v1  ;;  %v143_v34 = vld [vmem:[#allocation2 + $0x228] sm:$0xff]  ;;  %v5753_v35 = vpack.c.bf16 %v129_v23, %v125_v21  ;;  %v124_v36 = vld [vmem:[#allocation2 + $0x190] sm:$0xff]  ;;  %v133_v39 = vld [vmem:[#allocation2 + $0x1d8] sm:$0xff]  ;;  %v5756_v41 = vpack.c.bf16 %v134_v29, %v130_v28 }
  0x3a   :  { %3239 = vmatpush1.bf16.msra.mxu0 %v5720_v55  ;;  %v128_v38 = vld [vmem:[#allocation2 + $0x1b0] sm:$0xff]  ;;  %v137_v40 = vld [vmem:[#allocation2 + $0x1f8] sm:$0xff]  ;;  %v5759_v43 = vpack.c.bf16 %v143_v34, %v139_v31  ;;  %v138_v44 = vld [vmem:[#allocation2 + $0x200] sm:$0xff] }
  0x3b   :  { %3241 = vmatprep.subr.bf16.mxu0 %v5723_v58  ;;  %v142_v47 = vld [vmem:[#allocation2 + $0x220] sm:$0xff]  ;;  %v147_v49 = vld [vmem:[#allocation2 + $0x248] sm:$0xff]  ;;  %v5762_v50 = vpack.c.bf16 %v128_v38, %v124_v36  ;;  %v5765_v53 = vpack.c.bf16 %v137_v40, %v133_v39  ;;  %v132_v54 = vld [vmem:[#allocation2 + $0x1d0] sm:$0xff] }
  0x3c   :  { %3303 = vmatpush1.bf16.msra.mxu1 %v5738_v15  ;;  %v151_v51 = vld [vmem:[#allocation2 + $0x268] sm:$0xff]  ;;  %v136_v56 = vld [vmem:[#allocation2 + $0x1f0] sm:$0xff]  ;;  %v141_v57 = vld [vmem:[#allocation2 + $0x218] sm:$0xff]  ;;  %v5768_v60 = vpack.c.bf16 %v142_v47, %v138_v44 }
  0x3d   :  { %3305 = vmatprep.subr.bf16.mxu1 %v5741_v18  ;;  %v145_v59 = vld [vmem:[#allocation2 + $0x238] sm:$0xff]  ;;  %v5771_v61 = vpack.c.bf16 %v151_v51, %v147_v49  ;;  %v146_v63 = vld [vmem:[#allocation2 + $0x240] sm:$0xff]  ;;  %v155_v3 = vld [vmem:[#allocation2 + $0x288] sm:$0xff]  ;;  %v5774_v5 = vpack.c.bf16 %v136_v56, %v132_v54 }
  0x3e   :  { %3243 = vmatpush1.bf16.msra.mxu0 %v5732_v7  ;;  %v150_v2 = vld [vmem:[#allocation2 + $0x260] sm:$0xff]  ;;  %v159_v6 = vld [vmem:[#allocation2 + $0x2a8] sm:$0xff]  ;;  %v5777_v11 = vpack.c.bf16 %v145_v59, %v141_v57  ;;  %v140_v12 = vld [vmem:[#allocation2 + $0x210] sm:$0xff] }
  0x3f   :  { %3245 = vmatprep.subr.bf16.mxu0 %v5735_v10  ;;  %v144_v13 = vld [vmem:[#allocation2 + $0x230] sm:$0xff]  ;;  %v149_v16 = vld [vmem:[#allocation2 + $0x258] sm:$0xff]  ;;  %v5780_v20 = vpack.c.bf16 %v150_v2, %v146_v63  ;;  %v5783_v21 = vpack.c.bf16 %v159_v6, %v155_v3  ;;  %v154_v23 = vld [vmem:[#allocation2 + $0x280] sm:$0xff] }
  0x40   :  { %3307 = vmatpush1.bf16.msra.mxu1 %v5750_v32  ;;  %v153_v19 = vld [vmem:[#allocation2 + $0x278] sm:$0xff]  ;;  %v158_v28 = vld [vmem:[#allocation2 + $0x2a0] sm:$0xff]  ;;  %v163_v29 = vld [vmem:[#allocation2 + $0x2c8] sm:$0xff]  ;;  %v5786_v31 = vpack.c.bf16 %v144_v13, %v140_v12 }
  0x41   :  { %3309 = vmatprep.subr.bf16.mxu1 %v5753_v35  ;;  %v167_v34 = vld [vmem:[#allocation2 + $0x2e8] sm:$0xff]  ;;  %v5789_v36 = vpack.c.bf16 %v153_v19, %v149_v16  ;;  %v148_v38 = vld [vmem:[#allocation2 + $0x250] sm:$0xff]  ;;  %v157_v40 = vld [vmem:[#allocation2 + $0x298] sm:$0xff]  ;;  %v5792_v47 = vpack.c.bf16 %v158_v28, %v154_v23 }
  0x42   :  { %3247 = vmatpush1.bf16.msra.mxu0 %v5744_v24  ;;  %v152_v39 = vld [vmem:[#allocation2 + $0x270] sm:$0xff]  ;;  %v161_v44 = vld [vmem:[#allocation2 + $0x2b8] sm:$0xff]  ;;  %v5795_v49 = vpack.c.bf16 %v167_v34, %v163_v29  ;;  %v162_v51 = vld [vmem:[#allocation2 + $0x2c0] sm:$0xff] }
  0x43   :  { %3249 = vmatprep.subr.bf16.mxu0 %v5747_v27  ;;  %7330 = vst [vmem:[#allocation10_spill] sm:$0xff] %v5792_v47  ;;  %v166_v54 = vld [vmem:[#allocation2 + $0x2e0] sm:$0xff]  ;;  %v171_v56 = vld [vmem:[#allocation2 + $0x308] sm:$0xff]  ;;  %v5798_v57 = vpack.c.bf16 %v152_v39, %v148_v38  ;;  %v5801_v63 = vpack.c.bf16 %v161_v44, %v157_v40  ;;  %v156_v2 = vld [vmem:[#allocation2 + $0x290] sm:$0xff] }
  0x44   :  { %3311 = vmatpush1.bf16.msra.mxu1 %v5762_v50  ;;  %7331 = vst [vmem:[#allocation11_spill] sm:$0xff] %v5795_v49  ;;  %v175_v59 = vld [vmem:[#allocation2 + $0x328] sm:$0xff]  ;;  %v160_v3 = vld [vmem:[#allocation2 + $0x2b0] sm:$0xff]  ;;  %v165_v6 = vld [vmem:[#allocation2 + $0x2d8] sm:$0xff]  ;;  %v5804_v13 = vpack.c.bf16 %v166_v54, %v162_v51 }
  0x45   :  { %3313 = vmatprep.subr.bf16.mxu1 %v5765_v53  ;;  %7332 = vst [vmem:[#allocation12_spill] sm:$0xff] %v5801_v63  ;;  %v169_v12 = vld [vmem:[#allocation2 + $0x2f8] sm:$0xff]  ;;  %v5807_v16 = vpack.c.bf16 %v175_v59, %v171_v56  ;;  %v170_v19 = vld [vmem:[#allocation2 + $0x300] sm:$0xff]  ;;  %v179_v28 = vld [vmem:[#allocation2 + $0x348] sm:$0xff]  ;;  %v5810_v29 = vpack.c.bf16 %v160_v3, %v156_v2 }
  0x46   :  { %3251 = vmatpush1.bf16.msra.mxu0 %v5756_v41  ;;  %7333 = vst [vmem:[#allocation13_spill] sm:$0xff] %v5804_v13  ;;  %v174_v23 = vld [vmem:[#allocation2 + $0x320] sm:$0xff]  ;;  %v183_v34 = vld [vmem:[#allocation2 + $0x368] sm:$0xff]  ;;  %v5813_v38 = vpack.c.bf16 %v169_v12, %v165_v6  ;;  %v164_v39 = vld [vmem:[#allocation2 + $0x2d0] sm:$0xff] }
  0x47   :  { %3253 = vmatprep.subr.bf16.mxu0 %v5759_v43  ;;  %7334 = vst [vmem:[#allocation14_spill] sm:$0xff] %v5807_v16  ;;  %7335 = vst [vmem:[#allocation15_spill] sm:$0xff] %v5810_v29  ;;  %v168_v40 = vld [vmem:[#allocation2 + $0x2f0] sm:$0xff]  ;;  %v173_v44 = vld [vmem:[#allocation2 + $0x318] sm:$0xff]  ;;  %v5816_v54 = vpack.c.bf16 %v174_v23, %v170_v19  ;;  %v5819_v56 = vpack.c.bf16 %v183_v34, %v179_v28 }
  0x48   :  { %3315 = vmatpush1.bf16.msra.mxu1 %v5774_v5  ;;  %7336 = vst [vmem:[#allocation16_spill] sm:$0xff] %v5813_v38  ;;  %v177_v51 = vld [vmem:[#allocation2 + $0x338] sm:$0xff]  ;;  %v178_v59 = vld [vmem:[#allocation2 + $0x340] sm:$0xff]  ;;  %v187_v3 = vld [vmem:[#allocation2 + $0x388] sm:$0xff]  ;;  %v5822_v0 = vpack.c.bf16 %v168_v40, %v164_v39 }
  0x49   :  { %3317 = vmatprep.subr.bf16.mxu1 %v5777_v11  ;;  %7337 = vst [vmem:[#allocation17_spill] sm:$0xff] %v5816_v54  ;;  %7338 = vst [vmem:[#allocation18_spill] sm:$0xff] %v5819_v56  ;;  %v182_v2 = vld [vmem:[#allocation2 + $0x360] sm:$0xff]  ;;  %v191_v6 = vld [vmem:[#allocation2 + $0x3a8] sm:$0xff]  ;;  %v5825_v12 = vpack.c.bf16 %v177_v51, %v173_v44 }
  0x4a   :  { %3255 = vmatpush1.bf16.msra.mxu0 %v5768_v60  ;;  %7339 = vst [vmem:[#allocation19_spill] sm:$0xff] %v5822_v0  ;;  %v181_v19 = vld [vmem:[#allocation2 + $0x358] sm:$0xff]  ;;  %v5828_v28 = vpack.c.bf16 %v182_v2, %v178_v59  ;;  %v5831_v34 = vpack.c.bf16 %v191_v6, %v187_v3  ;;  %v190_v39 = vld [vmem:[#allocation2 + $0x3a0] sm:$0xff]  ;;  %v195_v40 = vld [vmem:[#allocation2 + $0x3c8] sm:$0xff] }
  0x4b   :  { %3257 = vmatprep.subr.bf16.mxu0 %v5771_v61  ;;  %7340 = vst [vmem:[#allocation20_spill] sm:$0xff] %v5825_v12  ;;  %v185_v23 = vld [vmem:[#allocation2 + $0x378] sm:$0xff]  ;;  %v199_v44 = vld [vmem:[#allocation2 + $0x3e8] sm:$0xff] }
  0x4c   :  { %3319 = vmatpush1.bf16.msra.mxu1 %v5786_v31  ;;  %7341 = vst [vmem:[#allocation21_spill] sm:$0xff] %v5828_v28  ;;  %7342 = vst [vmem:[#allocation22_spill] sm:$0xff] %v5831_v34  ;;  %v5837_v51 = vpack.c.bf16 %v185_v23, %v181_v19  ;;  %v189_v59 = vld [vmem:[#allocation2 + $0x398] sm:$0xff]  ;;  %v5843_v6 = vpack.c.bf16 %v199_v44, %v195_v40  ;;  %v188_v19 = vld [vmem:[#allocation2 + $0x390] sm:$0xff] }
  0x4d   :  { %3321 = vmatprep.subr.bf16.mxu1 %v5789_v36  ;;  %v193_v2 = vld [vmem:[#allocation2 + $0x3b8] sm:$0xff] }
  0x4e   :  { %3259 = vmatpush1.bf16.msra.mxu0 %v5780_v20  ;;  %7344 = vst [vmem:[#allocation24_spill] sm:$0xff] %v5837_v51  ;;  %7346 = vst [vmem:[#allocation26_spill] sm:$0xff] %v5843_v6  ;;  %v5849_v23 = vpack.c.bf16 %v193_v2, %v189_v59  ;;  %v368_v59 = vld [vmem:[#allocation4] sm:$0xff] }
  0x4f   :  { %3261 = vmatprep.subr.bf16.mxu0 %v5783_v21  ;;  %v372_v2 = vld [vmem:[#allocation4 + $0x20] sm:$0xff] }
  0x50   :  { %3323 = vmatpush1.bf16.msra.mxu1 %v5798_v57  ;;  %7348 = vst [vmem:[#allocation28_spill] sm:$0xff] %v5849_v23 }
  0x51   :  { %3325 = vmatprep.subr.bf16.mxu1 %v5801_v63  ;;  %v391_v63 = vld [vmem:[#allocation4 + $0xb8] sm:$0xff] }
  0x52   :  { %3263 = vmatpush1.bf16.msra.mxu0 %v5792_v47  ;;  %v389_v47 = vld [vmem:[#allocation4 + $0xa8] sm:$0xff] }
  0x53   :  { %3265 = vmatprep.subr.bf16.mxu0 %v5795_v49  ;;  %v172_v49 = vld [vmem:[#allocation2 + $0x310] sm:$0xff] }
  0x54   :  { %3327 = vmatpush1.bf16.msra.mxu1 %v5810_v29  ;;  %v180_v29 = vld [vmem:[#allocation2 + $0x350] sm:$0xff] }
  0x55   :  { %3329 = vmatprep.subr.bf16.mxu1 %v5813_v38 }
  0x56   :  { %3267 = vmatpush1.bf16.msra.mxu0 %v5804_v13  ;;  %v176_v13 = vld [vmem:[#allocation2 + $0x330] sm:$0xff] }
  0x57   :  { %3269 = vmatprep.subr.bf16.mxu0 %v5807_v16  ;;  %v186_v16 = vld [vmem:[#allocation2 + $0x380] sm:$0xff]  ;;  %v5834_v38 = vpack.c.bf16 %v176_v13, %v172_v49 }
  0x58   :  { %3331 = vmatpush1.bf16.msra.mxu1 %v5822_v0  ;;  %v5840_v3 = vpack.c.bf16 %v190_v39, %v186_v16  ;;  %v198_v49 = vld [vmem:[#allocation2 + $0x3e0] sm:$0xff]  ;;  %v369_v0 = vld [vmem:[#allocation4 + $0x8] sm:$0xff]  ;;  %v197_v16 = vld [vmem:[#allocation2 + $0x3d8] sm:$0xff] }
  0x59   :  { %7343 = vst [vmem:[#allocation23_spill] sm:$0xff] %v5834_v38  ;;  %3333 = vmatprep.subr.bf16.mxu1 %v5825_v12  ;;  %v192_v12 = vld [vmem:[#allocation2 + $0x3b0] sm:$0xff]  ;;  %v201_v39 = vld [vmem:[#allocation2 + $0x3f8] sm:$0xff] }
  0x5a   :  { %3271 = vmatpush1.bf16.msra.mxu0 %v5816_v54  ;;  %v184_v54 = vld [vmem:[#allocation2 + $0x370] sm:$0xff]  ;;  %7345 = vst [vmem:[#allocation25_spill] sm:$0xff] %v5840_v3 }
  0x5b   :  { %3273 = vmatprep.subr.bf16.mxu0 %v5819_v56  ;;  %v194_v56 = vld [vmem:[#allocation2 + $0x3c0] sm:$0xff]  ;;  %v5846_v13 = vpack.c.bf16 %v184_v54, %v180_v29  ;;  %v5856_v29 = vpack.c.bf16 %v192_v12, %v188_v19  ;;  %v196_v54 = vld [vmem:[#allocation2 + $0x3d0] sm:$0xff]  ;;  %v5867_v19 = vpack.c.bf16 %v372_v2, %v368_v59  ;;  %v379_v59 = vld [vmem:[#allocation4 + $0x58] sm:$0xff] }
  0x5c   :  { %3335 = vmatpush1.bf16.msra.mxu1 %v5834_v38  ;;  %v5852_v40 = vpack.c.bf16 %v198_v49, %v194_v56  ;;  %v377_v38 = vld [vmem:[#allocation4 + $0x48] sm:$0xff]  ;;  %v371_v56 = vld [vmem:[#allocation4 + $0x18] sm:$0xff]  ;;  %v73_v12 = vld [vmem:[%s7138_s0] sm:$0xff] }
  0x5d   :  { %7347 = vst [vmem:[#allocation27_spill] sm:$0xff] %v5846_v13  ;;  %3337 = vmatprep.subr.bf16.mxu1 %v5837_v51  ;;  %7350 = vst [vmem:[#allocation30_spill] sm:$0xff] %v5856_v29  ;;  %v200_v51 = vld [vmem:[#allocation2 + $0x3f0] sm:$0xff]  ;;  %v375_v49 = vld [vmem:[#allocation4 + $0x38] sm:$0xff] }
  0x5e   :  { %3275 = vmatpush1.bf16.msra.mxu0 %v5828_v28  ;;  %v373_v28 = vld [vmem:[#allocation4 + $0x28] sm:$0xff]  ;;  %7349 = vst [vmem:[#allocation29_spill] sm:$0xff] %v5852_v40  ;;  %7353 = vst [vmem:[#allocation33_spill] sm:$0xff] %v5867_v19  ;;  %v383_v2 = vld [vmem:[#allocation4 + $0x78] sm:$0xff] }
  0x5f   :  { %3277 = vmatprep.subr.bf16.mxu0 %v5831_v34  ;;  %v5858_v44 = vpack.c.bf16 %v373_v28, %v369_v0  ;;  %v5861_v34 = vpack.c.bf16 %v201_v39, %v197_v16  ;;  %v5870_v0 = vpack.c.bf16 %v200_v51, %v196_v54  ;;  %v370_v28 = vld [vmem:[#allocation4 + $0x10] sm:$0xff]  ;;  %v376_v39 = vld [vmem:[#allocation4 + $0x40] sm:$0xff]  ;;  %v7358_v54 = vmov 0.0  }
  0x60   :  { %3339 = vmatpush1.bf16.msra.mxu1 %v5846_v13  ;;  %v385_v13 = vld [vmem:[#allocation4 + $0x88] sm:$0xff] }
  0x61   :  { %7351 = vst [vmem:[#allocation31_spill] sm:$0xff] %v5858_v44  ;;  %3341 = vmatprep.subr.bf16.mxu1 %v5849_v23  ;;  %7352 = vst [vmem:[#allocation32_spill] sm:$0xff] %v5861_v34  ;;  %v374_v23 = vld [vmem:[#allocation4 + $0x30] sm:$0xff] }
  0x62   :  { %3279 = vmatpush1.bf16.msra.mxu0 %v5840_v3  ;;  %v381_v3 = vld [vmem:[#allocation4 + $0x68] sm:$0xff]  ;;  %7354 = vst [vmem:[#allocation34_spill] sm:$0xff] %v5870_v0 }
  0x63   :  { %3281 = vmatprep.subr.bf16.mxu0 %v5843_v6  ;;  %v5873_v16 = vpack.c.bf16 %v381_v3, %v377_v38  ;;  %v380_v6 = vld [vmem:[#allocation4 + $0x60] sm:$0xff]  ;;  %v5883_v38 = vpack.c.bf16 %v374_v23, %v370_v28  ;;  %v378_v3 = vld [vmem:[#allocation4 + $0x50] sm:$0xff] }
  0x64   :  { %3343 = vmatpush1.bf16.msra.mxu1 %v5856_v29  ;;  %v5879_v51 = vpack.c.bf16 %v380_v6, %v376_v39  ;;  %v393_v6 = vld [vmem:[#allocation4 + $0xc8] sm:$0xff]  ;;  %v387_v29 = vld [vmem:[#allocation4 + $0x98] sm:$0xff] }
  0x65   :  { %7355 = vst [vmem:[#allocation35_spill] sm:$0xff] %v5873_v16  ;;  %3345 = vmatprep.subr.bf16.mxu1 %v5861_v34  ;;  %7359 = vst [vmem:[#allocation38_spill] sm:$0xff] %v5883_v38  ;;  %v5889_v34 = vpack.c.bf16 %v383_v2, %v379_v59  ;;  %v397_v39 = vld [vmem:[#allocation4 + $0xe8] sm:$0xff]  ;;  %v392_v59 = vld [vmem:[#allocation4 + $0xc0] sm:$0xff] }
  0x66   :  { %3283 = vmatpush1.bf16.msra.mxu0 %v5852_v40  ;;  %v5876_v40 = vpack.c.bf16 %v375_v49, %v371_v56  ;;  %7357 = vst [vmem:[#allocation37_spill] sm:$0xff] %v5879_v51  ;;  %v5886_v56 = vpack.c.bf16 %v389_v47, %v385_v13  ;;  %v384_v49 = vld [vmem:[#allocation4 + $0x80] sm:$0xff]  ;;  %v386_v13 = vld [vmem:[#allocation4 + $0x90] sm:$0xff]  ;;  %v5898_v28 = vpack.c.bf16 %v397_v39, %v393_v6 }
  0x67   :  { %3349 = vmatprep.subr.bf16.mxu0 %v5858_v44  ;;  %v388_v44 = vld [vmem:[#allocation4 + $0xa0] sm:$0xff]  ;;  %7361 = vst [vmem:[#allocation40_spill] sm:$0xff] %v5889_v34 }
  0x68   :  { %7356 = vst [vmem:[#allocation36_spill] sm:$0xff] %v5876_v40  ;;  %3347 = vmatpush1.bf16.msra.mxu1 %v5870_v0  ;;  %7360 = vst [vmem:[#allocation39_spill] sm:$0xff] %v5886_v56  ;;  %v5892_v23 = vpack.c.bf16 %v388_v44, %v384_v49  ;;  %v396_v2 = vld [vmem:[#allocation4 + $0xe0] sm:$0xff]  ;;  %v395_v44 = vld [vmem:[#allocation4 + $0xd8] sm:$0xff] }
  0x69   :  { %267 = vmatmul.mubr.f32.vlgmr.msra.gmra.mrb[0].mxu0 %v73_v12  ;;  %3413 = vmatprep.subr.bf16.mxu1 %v5876_v40  ;;  %7364 = vst [vmem:[#allocation43_spill] sm:$0xff] %v5898_v28  ;;  %v401_v40 = vld [vmem:[#allocation4 + $0x108] sm:$0xff]  ;;  %v399_v49 = vld [vmem:[#allocation4 + $0xf8] sm:$0xff] }
  0x6a   :  { %3351 = vmatpush1.bf16.msra.mxu0 %v5867_v19  ;;  %560 = vmatprep.mubr.f32.mxu0 %v7358_v54  ;;  %v382_v19 = vld [vmem:[#allocation4 + $0x70] sm:$0xff]  ;;  %7362 = vst [vmem:[#allocation41_spill] sm:$0xff] %v5892_v23  ;;  %v5914_v39 = vpack.c.bf16 %v399_v49, %v395_v44  ;;  %v408_v49 = vld [vmem:[#allocation4 + $0x140] sm:$0xff] }
  0x6b   :  { %3353 = vmatprep.subr.bf16.mxu0 %v5873_v16  ;;  %338 = vmatmul.mubr.f32.vlgmr.msra.gmra.mrb[0].mxu1 %v73_v12  ;;  %v5895_v47 = vpack.c.bf16 %v382_v19, %v378_v3  ;;  %v5901_v16 = vpack.c.bf16 %v391_v63, %v387_v29  ;;  %v390_v12 = vld [vmem:[#allocation4 + $0xb0] sm:$0xff]  ;;  %v5905_v19 = vpack.c.bf16 %v396_v2, %v392_v59  ;;  %v400_v63 = vld [vmem:[#allocation4 + $0x100] sm:$0xff] }
  0x6c   :  { %3415 = vmatpush1.bf16.msra.mxu1 %v5883_v38  ;;  %631 = vmatprep.mubr.f32.mxu1 %v7358_v54  ;;  %v5908_v3 = vpack.c.bf16 %v390_v12, %v386_v13  ;;  %v404_v29 = vld [vmem:[#allocation4 + $0x120] sm:$0xff]  ;;  %7369 = vst [vmem:[#allocation48_spill] sm:$0xff] %v5914_v39  ;;  %v394_v54 = vld [vmem:[#allocation4 + $0xd0] sm:$0xff] }
  0x6d   :  { %7363 = vst [vmem:[#allocation42_spill] sm:$0xff] %v5895_v47  ;;  %3417 = vmatprep.subr.bf16.mxu1 %v5889_v34  ;;  %7365 = vst [vmem:[#allocation44_spill] sm:$0xff] %v5901_v16  ;;  %v403_v34 = vld [vmem:[#allocation4 + $0x118] sm:$0xff]  ;;  %v5917_v59 = vpack.c.bf16 %v404_v29, %v400_v63  ;;  %v406_v2 = vld [vmem:[#allocation4 + $0x130] sm:$0xff] }
  0x6e   :  { %3355 = vmatpush1.bf16.msra.mxu0 %v5879_v51  ;;  %v405_v51 = vld [vmem:[#allocation4 + $0x128] sm:$0xff]  ;;  %7366 = vst [vmem:[#allocation45_spill] sm:$0xff] %v5905_v19  ;;  %7367 = vst [vmem:[#allocation46_spill] sm:$0xff] %v5908_v3  ;;  %v412_v63 = vld [vmem:[#allocation4 + $0x160] sm:$0xff] }
  0x6f   :  { %3357 = vmatprep.subr.bf16.mxu0 %v5886_v56  ;;  %v5911_v6 = vpack.c.bf16 %v405_v51, %v401_v40  ;;  %v398_v56 = vld [vmem:[#allocation4 + $0xf0] sm:$0xff]  ;;  %7370 = vst [vmem:[#allocation49_spill] sm:$0xff] %v5917_v59  ;;  %v415_v29 = vld [vmem:[#allocation4 + $0x178] sm:$0xff] }
  0x70   :  { %3419 = vmatpush1.bf16.msra.mxu1 %v5895_v47  ;;  %v5920_v13 = vpack.c.bf16 %v398_v56, %v394_v54  ;;  %v402_v51 = vld [vmem:[#allocation4 + $0x110] sm:$0xff]  ;;  %v409_v54 = vld [vmem:[#allocation4 + $0x148] sm:$0xff] }
  0x71   :  { %7368 = vst [vmem:[#allocation47_spill] sm:$0xff] %v5911_v6  ;;  %3421 = vmatprep.subr.bf16.mxu1 %v5901_v16  ;;  %v5928_v12 = vpack.c.bf16 %v406_v2, %v402_v51  ;;  %v413_v56 = vld [vmem:[#allocation4 + $0x168] sm:$0xff] }
  0x72   :  { %3359 = vmatpush1.bf16.msra.mxu0 %v5892_v23  ;;  %v407_v23 = vld [vmem:[#allocation4 + $0x138] sm:$0xff]  ;;  %7371 = vst [vmem:[#allocation50_spill] sm:$0xff] %v5920_v13  ;;  %v5932_v44 = vpack.c.bf16 %v413_v56, %v409_v54  ;;  %v416_v56 = vld [vmem:[#allocation4 + $0x180] sm:$0xff] }
  0x73   :  { %3361 = vmatprep.subr.bf16.mxu0 %v5898_v28  ;;  %v5924_v40 = vpack.c.bf16 %v407_v23, %v403_v34  ;;  %7373 = vst [vmem:[#allocation52_spill] sm:$0xff] %v5928_v12  ;;  %v411_v34 = vld [vmem:[#allocation4 + $0x158] sm:$0xff]  ;;  %v5934_v23 = vpack.c.bf16 %v412_v63, %v408_v49  ;;  %v420_v49 = vld [vmem:[#allocation4 + $0x1a0] sm:$0xff] }
  0x74   :  { %3423 = vmatpush1.bf16.msra.mxu1 %v5908_v3  ;;  %7374 = vst [vmem:[#allocation53_spill] sm:$0xff] %v5932_v44  ;;  %v5937_v51 = vpack.c.bf16 %v415_v29, %v411_v34  ;;  %v419_v63 = vld [vmem:[#allocation4 + $0x198] sm:$0xff]  ;;  %v418_v34 = vld [vmem:[#allocation4 + $0x190] sm:$0xff] }
  0x75   :  { %3425 = vmatprep.subr.bf16.mxu1 %v5914_v39  ;;  %7372 = vst [vmem:[#allocation51_spill] sm:$0xff] %v5924_v40  ;;  %7375 = vst [vmem:[#allocation54_spill] sm:$0xff] %v5934_v23  ;;  %v422_v29 = vld [vmem:[#allocation4 + $0x1b0] sm:$0xff] }
  0x76   :  { %3363 = vmatpush1.bf16.msra.mxu0 %v5905_v19  ;;  %7376 = vst [vmem:[#allocation55_spill] sm:$0xff] %v5937_v51  ;;  %v484_v19 = vld [vmem:[#allocation4 + $0x3a0] sm:$0xff] }
  0x77   :  { %3365 = vmatprep.subr.bf16.mxu0 %v5911_v6  ;;  %v410_v6 = vld [vmem:[#allocation4 + $0x150] sm:$0xff] }
  0x78   :  { %3427 = vmatpush1.bf16.msra.mxu1 %v5920_v13  ;;  %v5946_v13 = vpack.c.bf16 %v420_v49, %v416_v56  ;;  %v428_v56 = vld [vmem:[#allocation4 + $0x1e0] sm:$0xff]  ;;  %v427_v49 = vld [vmem:[#allocation4 + $0x1d8] sm:$0xff] }
  0x79   :  { %3429 = vmatprep.subr.bf16.mxu1 %v5924_v40  ;;  %v421_v40 = vld [vmem:[#allocation4 + $0x1a8] sm:$0xff] }
  0x7a   :  { %3367 = vmatpush1.bf16.msra.mxu0 %v5917_v59  ;;  %v414_v59 = vld [vmem:[#allocation4 + $0x170] sm:$0xff]  ;;  %7379 = vst [vmem:[#allocation58_spill] sm:$0xff] %v5946_v13 }
  0x7b   :  { %3369 = vmatprep.subr.bf16.mxu0 %v5932_v44  ;;  %v5939_v2 = vpack.c.bf16 %v414_v59, %v410_v6  ;;  %v423_v44 = vld [vmem:[#allocation4 + $0x1b8] sm:$0xff]  ;;  %v5951_v59 = vpack.c.bf16 %v422_v29, %v418_v34 }
  0x7c   :  { %3431 = vmatpush1.bf16.msra.mxu1 %v5928_v12  ;;  %v417_v12 = vld [vmem:[#allocation4 + $0x188] sm:$0xff]  ;;  %v5949_v6 = vpack.c.bf16 %v423_v44, %v419_v63  ;;  %v426_v44 = vld [vmem:[#allocation4 + $0x1d0] sm:$0xff] }
  0x7d   :  { %7377 = vst [vmem:[#allocation56_spill] sm:$0xff] %v5939_v2  ;;  %3433 = vmatprep.subr.bf16.mxu1 %v5937_v51  ;;  %v5943_v54 = vpack.c.bf16 %v421_v40, %v417_v12  ;;  %7381 = vst [vmem:[#allocation60_spill] sm:$0xff] %v5951_v59  ;;  %v425_v40 = vld [vmem:[#allocation4 + $0x1c8] sm:$0xff]  ;;  %v430_v63 = vld [vmem:[#allocation4 + $0x1f0] sm:$0xff] }
  0x7e   :  { %3371 = vmatpush1.bf16.msra.mxu0 %v5934_v23  ;;  %7380 = vst [vmem:[#allocation59_spill] sm:$0xff] %v5949_v6  ;;  %v429_v12 = vld [vmem:[#allocation4 + $0x1e8] sm:$0xff]  ;;  %v5963_v29 = vpack.c.bf16 %v430_v63, %v426_v44 }
  0x7f   :  { %7378 = vst [vmem:[#allocation57_spill] sm:$0xff] %v5943_v54  ;;  %3373 = vmatprep.subr.bf16.mxu0 %v5943_v54  ;;  %v5955_v23 = vpack.c.bf16 %v429_v12, %v425_v40  ;;  %v431_v54 = vld [vmem:[#allocation4 + $0x1f8] sm:$0xff]  ;;  %v433_v40 = vld [vmem:[#allocation4 + $0x208] sm:$0xff] }
  0x80   :  { %3435 = vmatpush1.bf16.msra.mxu1 %v5939_v2  ;;  %v424_v2 = vld [vmem:[#allocation4 + $0x1c0] sm:$0xff]  ;;  %v5961_v34 = vpack.c.bf16 %v431_v54, %v427_v49  ;;  %7385 = vst [vmem:[#allocation64_spill] sm:$0xff] %v5963_v29  ;;  %v437_v12 = vld [vmem:[#allocation4 + $0x228] sm:$0xff]  ;;  %v434_v54 = vld [vmem:[#allocation4 + $0x210] sm:$0xff] }
  0x81   :  { %3437 = vmatprep.subr.bf16.mxu1 %v5949_v6  ;;  %7382 = vst [vmem:[#allocation61_spill] sm:$0xff] %v5955_v23  ;;  %v5958_v51 = vpack.c.bf16 %v428_v56, %v424_v2  ;;  %v436_v2 = vld [vmem:[#allocation4 + $0x220] sm:$0xff]  ;;  %v435_v56 = vld [vmem:[#allocation4 + $0x218] sm:$0xff]  ;;  %v438_v49 = vld [vmem:[#allocation4 + $0x230] sm:$0xff] }
  0x82   :  { %3375 = vmatpush1.bf16.msra.mxu0 %v5946_v13  ;;  %7384 = vst [vmem:[#allocation63_spill] sm:$0xff] %v5961_v34  ;;  %v5967_v13 = vpack.c.bf16 %v437_v12, %v433_v40  ;;  %v5975_v63 = vpack.c.bf16 %v438_v49, %v434_v54  ;;  %v441_v40 = vld [vmem:[#allocation4 + $0x248] sm:$0xff] }
  0x83   :  { %7383 = vst [vmem:[#allocation62_spill] sm:$0xff] %v5958_v51  ;;  %3377 = vmatprep.subr.bf16.mxu0 %v5955_v23  ;;  %v439_v23 = vld [vmem:[#allocation4 + $0x238] sm:$0xff]  ;;  %v445_v12 = vld [vmem:[#allocation4 + $0x268] sm:$0xff] }
  0x84   :  { %3439 = vmatpush1.bf16.msra.mxu1 %v5951_v59  ;;  %7386 = vst [vmem:[#allocation65_spill] sm:$0xff] %v5967_v13  ;;  %v432_v59 = vld [vmem:[#allocation4 + $0x200] sm:$0xff]  ;;  %v5973_v44 = vpack.c.bf16 %v439_v23, %v435_v56  ;;  %7389 = vst [vmem:[#allocation68_spill] sm:$0xff] %v5975_v63  ;;  %v442_v23 = vld [vmem:[#allocation4 + $0x250] sm:$0xff] }
  0x85   :  { %3441 = vmatprep.subr.bf16.mxu1 %v5961_v34  ;;  %v5970_v6 = vpack.c.bf16 %v436_v2, %v432_v59  ;;  %v444_v59 = vld [vmem:[#allocation4 + $0x260] sm:$0xff]  ;;  %v443_v2 = vld [vmem:[#allocation4 + $0x258] sm:$0xff]  ;;  %v446_v56 = vld [vmem:[#allocation4 + $0x270] sm:$0xff] }
  0x86   :  { %3379 = vmatpush1.bf16.msra.mxu0 %v5958_v51  ;;  %7388 = vst [vmem:[#allocation67_spill] sm:$0xff] %v5973_v44  ;;  %v5979_v51 = vpack.c.bf16 %v445_v12, %v441_v40  ;;  %v5987_v49 = vpack.c.bf16 %v446_v56, %v442_v23  ;;  %v449_v40 = vld [vmem:[#allocation4 + $0x288] sm:$0xff] }
  0x87   :  { %7387 = vst [vmem:[#allocation66_spill] sm:$0xff] %v5970_v6  ;;  %3381 = vmatprep.subr.bf16.mxu0 %v5967_v13  ;;  %v447_v13 = vld [vmem:[#allocation4 + $0x278] sm:$0xff]  ;;  %v453_v12 = vld [vmem:[#allocation4 + $0x2a8] sm:$0xff] }
  0x88   :  { %3443 = vmatpush1.bf16.msra.mxu1 %v5963_v29  ;;  %7390 = vst [vmem:[#allocation69_spill] sm:$0xff] %v5979_v51  ;;  %v440_v29 = vld [vmem:[#allocation4 + $0x240] sm:$0xff]  ;;  %v5985_v54 = vpack.c.bf16 %v447_v13, %v443_v2  ;;  %7393 = vst [vmem:[#allocation72_spill] sm:$0xff] %v5987_v49  ;;  %v450_v13 = vld [vmem:[#allocation4 + $0x290] sm:$0xff] }
  0x89   :  { %3445 = vmatprep.subr.bf16.mxu1 %v5973_v44  ;;  %v5982_v34 = vpack.c.bf16 %v444_v59, %v440_v29  ;;  %v452_v29 = vld [vmem:[#allocation4 + $0x2a0] sm:$0xff]  ;;  %v451_v59 = vld [vmem:[#allocation4 + $0x298] sm:$0xff]  ;;  %v454_v2 = vld [vmem:[#allocation4 + $0x2b0] sm:$0xff] }
  0x8a   :  { %3383 = vmatpush1.bf16.msra.mxu0 %v5970_v6  ;;  %7392 = vst [vmem:[#allocation71_spill] sm:$0xff] %v5985_v54  ;;  %v5991_v6 = vpack.c.bf16 %v453_v12, %v449_v40  ;;  %v5999_v56 = vpack.c.bf16 %v454_v2, %v450_v13  ;;  %v457_v40 = vld [vmem:[#allocation4 + $0x2c8] sm:$0xff] }
  0x8b   :  { %7391 = vst [vmem:[#allocation70_spill] sm:$0xff] %v5982_v34  ;;  %3385 = vmatprep.subr.bf16.mxu0 %v5979_v51  ;;  %v455_v51 = vld [vmem:[#allocation4 + $0x2b8] sm:$0xff]  ;;  %v461_v12 = vld [vmem:[#allocation4 + $0x2e8] sm:$0xff] }
  0x8c   :  { %3447 = vmatpush1.bf16.msra.mxu1 %v5975_v63  ;;  %7394 = vst [vmem:[#allocation73_spill] sm:$0xff] %v5991_v6  ;;  %v448_v63 = vld [vmem:[#allocation4 + $0x280] sm:$0xff]  ;;  %v5997_v23 = vpack.c.bf16 %v455_v51, %v451_v59  ;;  %7397 = vst [vmem:[#allocation76_spill] sm:$0xff] %v5999_v56  ;;  %v458_v51 = vld [vmem:[#allocation4 + $0x2d0] sm:$0xff] }
  0x8d   :  { %3449 = vmatprep.subr.bf16.mxu1 %v5985_v54  ;;  %v5994_v44 = vpack.c.bf16 %v452_v29, %v448_v63  ;;  %v460_v63 = vld [vmem:[#allocation4 + $0x2e0] sm:$0xff]  ;;  %v459_v29 = vld [vmem:[#allocation4 + $0x2d8] sm:$0xff]  ;;  %v462_v59 = vld [vmem:[#allocation4 + $0x2f0] sm:$0xff] }
  0x8e   :  { %3387 = vmatpush1.bf16.msra.mxu0 %v5982_v34  ;;  %7396 = vst [vmem:[#allocation75_spill] sm:$0xff] %v5997_v23  ;;  %v6003_v34 = vpack.c.bf16 %v461_v12, %v457_v40  ;;  %v6011_v2 = vpack.c.bf16 %v462_v59, %v458_v51  ;;  %v465_v40 = vld [vmem:[#allocation4 + $0x308] sm:$0xff] }
  0x8f   :  { %7395 = vst [vmem:[#allocation74_spill] sm:$0xff] %v5994_v44  ;;  %3389 = vmatprep.subr.bf16.mxu0 %v5991_v6  ;;  %v463_v6 = vld [vmem:[#allocation4 + $0x2f8] sm:$0xff]  ;;  %v469_v12 = vld [vmem:[#allocation4 + $0x328] sm:$0xff] }
  0x90   :  { %3451 = vmatpush1.bf16.msra.mxu1 %v5987_v49  ;;  %7398 = vst [vmem:[#allocation77_spill] sm:$0xff] %v6003_v34  ;;  %v456_v49 = vld [vmem:[#allocation4 + $0x2c0] sm:$0xff]  ;;  %v6009_v13 = vpack.c.bf16 %v463_v6, %v459_v29  ;;  %7401 = vst [vmem:[#allocation80_spill] sm:$0xff] %v6011_v2  ;;  %v466_v6 = vld [vmem:[#allocation4 + $0x310] sm:$0xff] }
  0x91   :  { %3453 = vmatprep.subr.bf16.mxu1 %v5997_v23  ;;  %v6006_v54 = vpack.c.bf16 %v460_v63, %v456_v49  ;;  %v468_v49 = vld [vmem:[#allocation4 + $0x320] sm:$0xff]  ;;  %v467_v63 = vld [vmem:[#allocation4 + $0x318] sm:$0xff]  ;;  %v470_v29 = vld [vmem:[#allocation4 + $0x330] sm:$0xff] }
  0x92   :  { %3391 = vmatpush1.bf16.msra.mxu0 %v5994_v44  ;;  %7400 = vst [vmem:[#allocation79_spill] sm:$0xff] %v6009_v13  ;;  %v6015_v44 = vpack.c.bf16 %v469_v12, %v465_v40  ;;  %v6023_v59 = vpack.c.bf16 %v470_v29, %v466_v6  ;;  %v473_v40 = vld [vmem:[#allocation4 + $0x348] sm:$0xff] }
  0x93   :  { %7399 = vst [vmem:[#allocation78_spill] sm:$0xff] %v6006_v54  ;;  %3393 = vmatprep.subr.bf16.mxu0 %v6003_v34  ;;  %v471_v34 = vld [vmem:[#allocation4 + $0x338] sm:$0xff]  ;;  %v477_v12 = vld [vmem:[#allocation4 + $0x368] sm:$0xff] }
  0x94   :  { %3455 = vmatpush1.bf16.msra.mxu1 %v5999_v56  ;;  %7402 = vst [vmem:[#allocation81_spill] sm:$0xff] %v6015_v44  ;;  %v464_v56 = vld [vmem:[#allocation4 + $0x300] sm:$0xff]  ;;  %v6021_v51 = vpack.c.bf16 %v471_v34, %v467_v63  ;;  %7405 = vst [vmem:[#allocation84_spill] sm:$0xff] %v6023_v59  ;;  %v474_v34 = vld [vmem:[#allocation4 + $0x350] sm:$0xff] }
  0x95   :  { %3457 = vmatprep.subr.bf16.mxu1 %v6009_v13  ;;  %v6018_v23 = vpack.c.bf16 %v468_v49, %v464_v56  ;;  %v476_v56 = vld [vmem:[#allocation4 + $0x360] sm:$0xff]  ;;  %v475_v49 = vld [vmem:[#allocation4 + $0x358] sm:$0xff]  ;;  %v478_v63 = vld [vmem:[#allocation4 + $0x370] sm:$0xff] }
  0x96   :  { %3395 = vmatpush1.bf16.msra.mxu0 %v6006_v54  ;;  %7404 = vst [vmem:[#allocation83_spill] sm:$0xff] %v6021_v51  ;;  %v6027_v54 = vpack.c.bf16 %v477_v12, %v473_v40  ;;  %v6035_v29 = vpack.c.bf16 %v478_v63, %v474_v34  ;;  %v480_v40 = vld [vmem:[#allocation4 + $0x380] sm:$0xff]  ;;  %v489_v34 = vld [vmem:[#allocation4 + $0x3c8] sm:$0xff] }
  0x97   :  { %7403 = vst [vmem:[#allocation82_spill] sm:$0xff] %v6018_v23  ;;  %3397 = vmatprep.subr.bf16.mxu0 %v6015_v44  ;;  %v479_v44 = vld [vmem:[#allocation4 + $0x378] sm:$0xff] }
  0x98   :  { %3459 = vmatpush1.bf16.msra.mxu1 %v6011_v2  ;;  %7406 = vst [vmem:[#allocation85_spill] sm:$0xff] %v6027_v54  ;;  %v472_v2 = vld [vmem:[#allocation4 + $0x340] sm:$0xff]  ;;  %v6033_v6 = vpack.c.bf16 %v479_v44, %v475_v49  ;;  %7409 = vst [vmem:[#allocation88_spill] sm:$0xff] %v6035_v29  ;;  %v482_v44 = vld [vmem:[#allocation4 + $0x390] sm:$0xff] }
  0x99   :  { %3461 = vmatprep.subr.bf16.mxu1 %v6021_v51  ;;  %v6030_v13 = vpack.c.bf16 %v476_v56, %v472_v2  ;;  %v485_v51 = vld [vmem:[#allocation4 + $0x3a8] sm:$0xff]  ;;  %v487_v2 = vld [vmem:[#allocation4 + $0x3b8] sm:$0xff]  ;;  %v6041_v56 = vpack.c.bf16 %v484_v19, %v480_v40  ;;  %v486_v49 = vld [vmem:[#allocation4 + $0x3b0] sm:$0xff] }
  0x9a   :  { %3399 = vmatpush1.bf16.msra.mxu0 %v6018_v23  ;;  %7408 = vst [vmem:[#allocation87_spill] sm:$0xff] %v6033_v6  ;;  %v481_v23 = vld [vmem:[#allocation4 + $0x388] sm:$0xff]  ;;  %v6047_v63 = vpack.c.bf16 %v486_v49, %v482_v44  ;;  %v491_v19 = vld [vmem:[#allocation4 + $0x3d8] sm:$0xff] }
  0x9b   :  { %7407 = vst [vmem:[#allocation86_spill] sm:$0xff] %v6030_v13  ;;  %3401 = vmatprep.subr.bf16.mxu0 %v6027_v54  ;;  %v6038_v12 = vpack.c.bf16 %v485_v51, %v481_v23  ;;  %7411 = vst [vmem:[#allocation90_spill] sm:$0xff] %v6041_v56  ;;  %v493_v23 = vld [vmem:[#allocation4 + $0x3e8] sm:$0xff]  ;;  %v488_v51 = vld [vmem:[#allocation4 + $0x3c0] sm:$0xff] }
  0x9c   :  { %3463 = vmatpush1.bf16.msra.mxu1 %v6023_v59  ;;  %v483_v59 = vld [vmem:[#allocation4 + $0x398] sm:$0xff]  ;;  %7413 = vst [vmem:[#allocation92_spill] sm:$0xff] %v6047_v63  ;;  %v6050_v54 = vpack.c.bf16 %v493_v23, %v489_v34 }
  0x9d   :  { %7410 = vst [vmem:[#allocation89_spill] sm:$0xff] %v6038_v12  ;;  %3465 = vmatprep.subr.bf16.mxu1 %v6033_v6  ;;  %v6043_v39 = vpack.c.bf16 %v487_v2, %v483_v59  ;;  %v495_v40 = vld [vmem:[#allocation4 + $0x3f8] sm:$0xff]  ;;  %v490_v59 = vld [vmem:[#allocation4 + $0x3d0] sm:$0xff] }
  0x9e   :  { %3403 = vmatpush1.bf16.msra.mxu0 %v6030_v13  ;;  %v492_v13 = vld [vmem:[#allocation4 + $0x3e0] sm:$0xff]  ;;  %7414 = vst [vmem:[#allocation93_spill] sm:$0xff] %v6050_v54  ;;  %v6055_v6 = vpack.c.bf16 %v495_v40, %v491_v19 }
  0x9f   :  { %7412 = vst [vmem:[#allocation91_spill] sm:$0xff] %v6043_v39  ;;  %3405 = vmatprep.subr.bf16.mxu0 %v6038_v12  ;;  %v6053_v2 = vpack.c.bf16 %v492_v13, %v488_v51 }
  0xa0   :  { %3467 = vmatpush1.bf16.msra.mxu1 %v6035_v29  ;;  %7416 = vst [vmem:[#allocation95_spill] sm:$0xff] %v6055_v6  ;;  %v494_v29 = vld [vmem:[#allocation4 + $0x3f0] sm:$0xff] }
  0xa1   :  { %3469 = vmatprep.subr.bf16.mxu1 %v6043_v39  ;;  %7415 = vst [vmem:[#allocation94_spill] sm:$0xff] %v6053_v2  ;;  %v6059_v44 = vpack.c.bf16 %v494_v29, %v490_v59 }
  0xa2   :  { %3407 = vmatpush1.bf16.msra.mxu0 %v6041_v56 }
  0xa3   :  { %3409 = vmatprep.subr.bf16.mxu0 %v6050_v54  ;;  %7417 = vst [vmem:[#allocation96_spill] sm:$0xff] %v6059_v44 }
  0xa4   :  { %3471 = vmatpush1.bf16.msra.mxu1 %v6047_v63 }
  0xa5   :  { %3473 = vmatprep.subr.bf16.mxu1 %v6055_v6 }
  0xa6   :  { %3411 = vmatpush1.bf16.msra.mxu0 %v6053_v2 }
  0xa7   :  { %3477 = vmatprep.subr.bf16.mxu0 %v5675_v4 }
  0xa8   :  { %3475 = vmatpush1.bf16.msra.mxu1 %v6059_v44 }
  0xa9   :  { %3541 = vmatprep.subr.bf16.mxu1 %v5688_v22 }
 0x13c   :  { %v268_v13 = vpop.f32.mrb[0].mxu0 }
 0x13d   :  { %v3112_v49 = vmul.f32 -1.442695, %v268_v13  ;;  %v270_v34 = vpop.f32.mrb[1].mxu0 }
 0x13e   :  { %v3113_v23 = vmul.f32 -1.442695, %v270_v34  ;;  %v339_v51 = vpop.f32.mrb[0].mxu1 }
 0x13f   :  { %5299 = vpow2.f32 %v3112_v49  ;;  %v341_v19 = vpop.f32.mrb[1].mxu1 }
 0x140   :  { %5301 = vpow2.f32 %v3113_v23  ;;  %v3114_v29 = vmul.f32 -1.442695, %v341_v19 }
 0x142   :  { %5303 = vpow2.f32 %v3114_v29 }
 0x143   :  { %5305 = vtanh.f32 %v339_v51  ;;  %v7425_v51 = vld [vmem:[#allocation19_spill] sm:$0xff] }
 0x149   :  { %v5300_v40 = vpop.eup %5299 }
 0x14a   :  { %v5302_v59 = vpop.eup %5301  ;;  %v347_v6 = vadd.f32 1.0, %v5300_v40  ;;  %v7426_v40 = vld [vmem:[#allocation20_spill] sm:$0xff] }
 0x14b   :  { %v353_v2 = vadd.f32 1.0, %v5302_v59  ;;  %v7427_v59 = vld [vmem:[#allocation17_spill] sm:$0xff] }
 0x14c   :  { %5307 = vrcp.f32 %v347_v6  ;;  %v5304_v44 = vpop.eup %5303  ;;  %v7421_v6 = vld [vmem:[#allocation15_spill] sm:$0xff] }
 0x14d   :  { %5309 = vrcp.f32 %v353_v2  ;;  %v5306_v4 = vpop.eup %5305  ;;  %v360_v63 = vadd.f32 1.0, %v5304_v44  ;;  %v7423_v2 = vld [vmem:[#allocation13_spill] sm:$0xff]  ;;  %v7424_v44 = vld [vmem:[#allocation14_spill] sm:$0xff] }
 0x14f   :  { %5311 = vrcp.f32 %v360_v63  ;;  %v7422_v63 = vld [vmem:[#allocation16_spill] sm:$0xff] }
 0x156   :  { %v5308_v22 = vpop.eup %5307 }
 0x157   :  { %v5310_v13 = vpop.eup %5309  ;;  %v364_v54 = vmul.f32 %v5308_v22, %v5306_v4  ;;  %v7418_v4 = vld [vmem:[#allocation12_spill] sm:$0xff]  ;;  %v7419_v22 = vld [vmem:[#allocation10_spill] sm:$0xff] }
 0x158   :  { %v363_v34 = vmul.f32 0.0, %v5310_v13  ;;  %v7428_v13 = vld [vmem:[#allocation18_spill] sm:$0xff] }
 0x159   :  { %v5312_v23 = vpop.eup %5311 }
 0x15a   :  { %v6066_v49 = vadd.f32 %v364_v54, %v363_v34  ;;  %v7420_v54 = vld [vmem:[#allocation11_spill] sm:$0xff] }
 0x15b   :  { %v7429_v34 = vld [vmem:[#allocation23_spill] sm:$0xff] }
 0x15c   :  { %5313 = vtanh.f32 %v6066_v49 }
 0x166   :  { %v5314_v19 = vpop.eup %5313 }
 0x167   :  { %v367_v29 = vmul.f32 %v5314_v19, %v5312_v23  ;;  %v7430_v23 = vld [vmem:[#allocation24_spill] sm:$0xff]  ;;  %v7431_v19 = vld [vmem:[#allocation21_spill] sm:$0xff] }
 0x169   :  { %561 = vmatmul.mubr.f32.vlgmr.msra.gmra.mrb[2].mxu0 %v367_v29  ;;  %632 = vmatmul.mubr.f32.vlgmr.msra.gmra.mrb[2].mxu1 %v367_v29 }
 0x16a   :  { %3479 = vmatpush1.bf16.msra.mxu0 %v5677_v8  ;;  %728 = vmatprep.mubr.f32.mxu0 %v367_v29 }
 0x16b   :  { %799 = vmatprep.mubr.f32.mxu1 %v367_v29  ;;  %3481 = vmatprep.subr.bf16.mxu0 %v5679_v9  ;;  %v7432_v29 = vld [vmem:[#allocation22_spill] sm:$0xff] }
 0x16c   :  { %3543 = vmatpush1.bf16.msra.mxu1 %v5690_v25 }
 0x16d   :  { %3545 = vmatprep.subr.bf16.mxu1 %v5700_v33 }
 0x16e   :  { %3483 = vmatpush1.bf16.msra.mxu0 %v5683_v14 }
 0x16f   :  { %3485 = vmatprep.subr.bf16.mxu0 %v5686_v17 }
 0x170   :  { %3547 = vmatpush1.bf16.msra.mxu1 %v5702_v37 }
 0x171   :  { %3549 = vmatprep.subr.bf16.mxu1 %v5708_v45 }
 0x172   :  { %3487 = vmatpush1.bf16.msra.mxu0 %v5693_v26 }
 0x173   :  { %3489 = vmatprep.subr.bf16.mxu0 %v5697_v30 }
 0x174   :  { %3551 = vmatpush1.bf16.msra.mxu1 %v5714_v48 }
 0x175   :  { %3553 = vmatprep.subr.bf16.mxu1 %v5717_v52 }
 0x176   :  { %3491 = vmatpush1.bf16.msra.mxu0 %v5706_v42 }
 0x177   :  { %3493 = vmatprep.subr.bf16.mxu0 %v5711_v46 }
 0x178   :  { %3555 = vmatpush1.bf16.msra.mxu1 %v5726_v62 }
 0x179   :  { %3557 = vmatprep.subr.bf16.mxu1 %v5729_v1 }
 0x17a   :  { %3495 = vmatpush1.bf16.msra.mxu0 %v5720_v55 }
 0x17b   :  { %3497 = vmatprep.subr.bf16.mxu0 %v5723_v58 }
 0x17c   :  { %3559 = vmatpush1.bf16.msra.mxu1 %v5738_v15 }
 0x17d   :  { %3561 = vmatprep.subr.bf16.mxu1 %v5741_v18 }
 0x17e   :  { %3499 = vmatpush1.bf16.msra.mxu0 %v5732_v7 }
 0x17f   :  { %3501 = vmatprep.subr.bf16.mxu0 %v5735_v10 }
 0x180   :  { %3563 = vmatpush1.bf16.msra.mxu1 %v5750_v32 }
 0x181   :  { %3565 = vmatprep.subr.bf16.mxu1 %v5753_v35 }
 0x182   :  { %3503 = vmatpush1.bf16.msra.mxu0 %v5744_v24 }
 0x183   :  { %3505 = vmatprep.subr.bf16.mxu0 %v5747_v27 }
 0x184   :  { %3567 = vmatpush1.bf16.msra.mxu1 %v5762_v50 }
 0x185   :  { %3569 = vmatprep.subr.bf16.mxu1 %v5765_v53 }
 0x186   :  { %3507 = vmatpush1.bf16.msra.mxu0 %v5756_v41 }
 0x187   :  { %3509 = vmatprep.subr.bf16.mxu0 %v5759_v43 }
 0x188   :  { %3571 = vmatpush1.bf16.msra.mxu1 %v5774_v5 }
 0x189   :  { %3573 = vmatprep.subr.bf16.mxu1 %v5777_v11 }
 0x18a   :  { %3511 = vmatpush1.bf16.msra.mxu0 %v5768_v60 }
 0x18b   :  { %3513 = vmatprep.subr.bf16.mxu0 %v5771_v61 }
 0x18c   :  { %3575 = vmatpush1.bf16.msra.mxu1 %v5786_v31 }
 0x18d   :  { %3577 = vmatprep.subr.bf16.mxu1 %v5789_v36 }
 0x18e   :  { %3515 = vmatpush1.bf16.msra.mxu0 %v5780_v20 }
 0x18f   :  { %3517 = vmatprep.subr.bf16.mxu0 %v5783_v21 }
 0x190   :  { %3579 = vmatpush1.bf16.msra.mxu1 %v5798_v57 }
 0x191   :  { %3581 = vmatprep.subr.bf16.mxu1 %v7418_v4 }
 0x192   :  { %3519 = vmatpush1.bf16.msra.mxu0 %v7419_v22 }
 0x193   :  { %3521 = vmatprep.subr.bf16.mxu0 %v7420_v54 }
 0x194   :  { %3583 = vmatpush1.bf16.msra.mxu1 %v7421_v6 }
 0x195   :  { %3585 = vmatprep.subr.bf16.mxu1 %v7422_v63  ;;  %v7433_v63 = vld [vmem:[#allocation27_spill] sm:$0xff] }
 0x196   :  { %3523 = vmatpush1.bf16.msra.mxu0 %v7423_v2  ;;  %v7434_v2 = vld [vmem:[#allocation28_spill] sm:$0xff] }
 0x197   :  { %3525 = vmatprep.subr.bf16.mxu0 %v7424_v44  ;;  %v7435_v44 = vld [vmem:[#allocation25_spill] sm:$0xff] }
 0x198   :  { %3587 = vmatpush1.bf16.msra.mxu1 %v7425_v51  ;;  %v7436_v51 = vld [vmem:[#allocation26_spill] sm:$0xff] }
 0x199   :  { %3589 = vmatprep.subr.bf16.mxu1 %v7426_v40  ;;  %v7437_v40 = vld [vmem:[#allocation30_spill] sm:$0xff] }
 0x19a   :  { %3527 = vmatpush1.bf16.msra.mxu0 %v7427_v59  ;;  %v7438_v59 = vld [vmem:[#allocation32_spill] sm:$0xff] }
 0x19b   :  { %3529 = vmatprep.subr.bf16.mxu0 %v7428_v13  ;;  %v7439_v13 = vld [vmem:[#allocation29_spill] sm:$0xff] }
 0x19c   :  { %3591 = vmatpush1.bf16.msra.mxu1 %v7429_v34 }
 0x19d   :  { %3593 = vmatprep.subr.bf16.mxu1 %v7430_v23  ;;  %v7440_v23 = vld [vmem:[#allocation31_spill] sm:$0xff] }
 0x19e   :  { %3531 = vmatpush1.bf16.msra.mxu0 %v7431_v19  ;;  %v3118_v19 = vld [vmem:[%s7138_s0 + $0x8] sm:$0xff] }
 0x19f   :  { %3533 = vmatprep.subr.bf16.mxu0 %v7432_v29 }
 0x1a0   :  { %3595 = vmatpush1.bf16.msra.mxu1 %v7433_v63 }
 0x1a1   :  { %3597 = vmatprep.subr.bf16.mxu1 %v7434_v2  ;;  %v7441_v2 = vld [vmem:[#allocation36_spill] sm:$0xff] }
 0x1a2   :  { %3535 = vmatpush1.bf16.msra.mxu0 %v7435_v44  ;;  %v7442_v44 = vld [vmem:[#allocation33_spill] sm:$0xff] }
 0x1a3   :  { %3537 = vmatprep.subr.bf16.mxu0 %v7436_v51  ;;  %v7443_v51 = vld [vmem:[#allocation35_spill] sm:$0xff] }
 0x1a4   :  { %3599 = vmatpush1.bf16.msra.mxu1 %v7437_v40  ;;  %v7446_v40 = vld [vmem:[#allocation39_spill] sm:$0xff] }
 0x1a5   :  { %3601 = vmatprep.subr.bf16.mxu1 %v7438_v59  ;;  %v7444_v59 = vld [vmem:[#allocation40_spill] sm:$0xff] }
 0x1a6   :  { %3539 = vmatpush1.bf16.msra.mxu0 %v7439_v13  ;;  %v7445_v13 = vld [vmem:[#allocation37_spill] sm:$0xff] }
 0x1a7   :  { %3605 = vmatprep.subr.bf16.mxu0 %v7440_v23 }
 0x1a8   :  { %3603 = vmatpush1.bf16.msra.mxu1 %v5870_v0  ;;  %v7447_v0 = vld [vmem:[#allocation41_spill] sm:$0xff] }
 0x1a9   :  { %729 = vmatmul.mubr.f32.vlgmr.msra.gmra.mrb[4].mxu0 %v3118_v19  ;;  %3669 = vmatprep.subr.bf16.mxu1 %v7441_v2 }
 0x1aa   :  { %3607 = vmatpush1.bf16.msra.mxu0 %v7442_v44 }
 0x1ab   :  { %800 = vmatmul.mubr.f32.vlgmr.msra.gmra.mrb[4].mxu1 %v3118_v19  ;;  %3609 = vmatprep.subr.bf16.mxu0 %v7443_v51  ;;  %v7448_v19 = vld [vmem:[#allocation48_spill] sm:$0xff]  ;;  %v7449_v51 = vld [vmem:[#allocation45_spill] sm:$0xff] }
 0x1ac   :  { %3671 = vmatpush1.bf16.msra.mxu1 %v5883_v38  ;;  %v7450_v38 = vld [vmem:[#allocation47_spill] sm:$0xff] }
 0x1ad   :  { %3673 = vmatprep.subr.bf16.mxu1 %v7444_v59  ;;  %v7451_v59 = vld [vmem:[#allocation50_spill] sm:$0xff] }
 0x1ae   :  { %3611 = vmatpush1.bf16.msra.mxu0 %v7445_v13  ;;  %v7452_v13 = vld [vmem:[#allocation51_spill] sm:$0xff] }
 0x1af   :  { %3613 = vmatprep.subr.bf16.mxu0 %v7446_v40  ;;  %v7453_v40 = vld [vmem:[#allocation49_spill] sm:$0xff] }
 0x1b0   :  { %3675 = vmatpush1.bf16.msra.mxu1 %v5895_v47  ;;  %v7454_v47 = vld [vmem:[#allocation53_spill] sm:$0xff] }
 0x1b1   :  { %3677 = vmatprep.subr.bf16.mxu1 %v5901_v16  ;;  %v7455_v16 = vld [vmem:[#allocation52_spill] sm:$0xff] }
 0x1b2   :  { %3615 = vmatpush1.bf16.msra.mxu0 %v7447_v0  ;;  %v7456_v0 = vld [vmem:[#allocation55_spill] sm:$0xff] }
 0x1b3   :  { %3617 = vmatprep.subr.bf16.mxu0 %v5898_v28  ;;  %v7457_v28 = vld [vmem:[#allocation54_spill] sm:$0xff] }
 0x1b4   :  { %3679 = vmatpush1.bf16.msra.mxu1 %v5908_v3  ;;  %v7458_v3 = vld [vmem:[#allocation57_spill] sm:$0xff] }
 0x1b5   :  { %3681 = vmatprep.subr.bf16.mxu1 %v7448_v19  ;;  %v7459_v19 = vld [vmem:[#allocation56_spill] sm:$0xff] }
 0x1b6   :  { %3619 = vmatpush1.bf16.msra.mxu0 %v7449_v51  ;;  %v7460_v51 = vld [vmem:[#allocation59_spill] sm:$0xff] }
 0x1b7   :  { %3621 = vmatprep.subr.bf16.mxu0 %v7450_v38  ;;  %v7461_v38 = vld [vmem:[#allocation58_spill] sm:$0xff] }
 0x1b8   :  { %3683 = vmatpush1.bf16.msra.mxu1 %v7451_v59  ;;  %v7462_v59 = vld [vmem:[#allocation61_spill] sm:$0xff] }
 0x1b9   :  { %3685 = vmatprep.subr.bf16.mxu1 %v7452_v13  ;;  %v7463_v13 = vld [vmem:[#allocation60_spill] sm:$0xff] }
 0x1ba   :  { %3623 = vmatpush1.bf16.msra.mxu0 %v7453_v40  ;;  %v7464_v40 = vld [vmem:[#allocation63_spill] sm:$0xff] }
 0x1bb   :  { %3625 = vmatprep.subr.bf16.mxu0 %v7454_v47  ;;  %v7465_v47 = vld [vmem:[#allocation62_spill] sm:$0xff] }
 0x1bc   :  { %3687 = vmatpush1.bf16.msra.mxu1 %v7455_v16  ;;  %v7466_v16 = vld [vmem:[#allocation65_spill] sm:$0xff] }
 0x1bd   :  { %3689 = vmatprep.subr.bf16.mxu1 %v7456_v0  ;;  %v7467_v0 = vld [vmem:[#allocation64_spill] sm:$0xff] }
 0x1be   :  { %3627 = vmatpush1.bf16.msra.mxu0 %v7457_v28  ;;  %v7468_v28 = vld [vmem:[#allocation67_spill] sm:$0xff] }
 0x1bf   :  { %3629 = vmatprep.subr.bf16.mxu0 %v7458_v3  ;;  %v7469_v3 = vld [vmem:[#allocation66_spill] sm:$0xff] }
 0x1c0   :  { %3691 = vmatpush1.bf16.msra.mxu1 %v7459_v19  ;;  %v7470_v19 = vld [vmem:[#allocation69_spill] sm:$0xff] }
 0x1c1   :  { %3693 = vmatprep.subr.bf16.mxu1 %v7460_v51  ;;  %v7471_v51 = vld [vmem:[#allocation68_spill] sm:$0xff] }
 0x1c2   :  { %3631 = vmatpush1.bf16.msra.mxu0 %v7461_v38  ;;  %v7472_v38 = vld [vmem:[#allocation71_spill] sm:$0xff] }
 0x1c3   :  { %3633 = vmatprep.subr.bf16.mxu0 %v7462_v59  ;;  %v7473_v59 = vld [vmem:[#allocation70_spill] sm:$0xff] }
 0x1c4   :  { %3695 = vmatpush1.bf16.msra.mxu1 %v7463_v13  ;;  %v7474_v13 = vld [vmem:[#allocation73_spill] sm:$0xff] }
 0x1c5   :  { %3697 = vmatprep.subr.bf16.mxu1 %v7464_v40  ;;  %v7475_v40 = vld [vmem:[#allocation72_spill] sm:$0xff] }
 0x1c6   :  { %3635 = vmatpush1.bf16.msra.mxu0 %v7465_v47  ;;  %v7476_v47 = vld [vmem:[#allocation75_spill] sm:$0xff] }
 0x1c7   :  { %3637 = vmatprep.subr.bf16.mxu0 %v7466_v16  ;;  %v7477_v16 = vld [vmem:[#allocation74_spill] sm:$0xff] }
 0x1c8   :  { %3699 = vmatpush1.bf16.msra.mxu1 %v7467_v0  ;;  %v7478_v0 = vld [vmem:[#allocation77_spill] sm:$0xff] }
 0x1c9   :  { %3701 = vmatprep.subr.bf16.mxu1 %v7468_v28  ;;  %v7479_v28 = vld [vmem:[#allocation76_spill] sm:$0xff] }
 0x1ca   :  { %3639 = vmatpush1.bf16.msra.mxu0 %v7469_v3  ;;  %v7480_v3 = vld [vmem:[#allocation79_spill] sm:$0xff] }
 0x1cb   :  { %3641 = vmatprep.subr.bf16.mxu0 %v7470_v19  ;;  %v7481_v19 = vld [vmem:[#allocation78_spill] sm:$0xff] }
 0x1cc   :  { %3703 = vmatpush1.bf16.msra.mxu1 %v7471_v51  ;;  %v7482_v51 = vld [vmem:[#allocation81_spill] sm:$0xff] }
 0x1cd   :  { %3705 = vmatprep.subr.bf16.mxu1 %v7472_v38  ;;  %v7483_v38 = vld [vmem:[#allocation80_spill] sm:$0xff] }
 0x1ce   :  { %3643 = vmatpush1.bf16.msra.mxu0 %v7473_v59  ;;  %v7484_v59 = vld [vmem:[#allocation83_spill] sm:$0xff] }
 0x1cf   :  { %3645 = vmatprep.subr.bf16.mxu0 %v7474_v13  ;;  %v7485_v13 = vld [vmem:[#allocation82_spill] sm:$0xff] }
 0x1d0   :  { %3707 = vmatpush1.bf16.msra.mxu1 %v7475_v40  ;;  %v7486_v40 = vld [vmem:[#allocation85_spill] sm:$0xff] }
 0x1d1   :  { %3709 = vmatprep.subr.bf16.mxu1 %v7476_v47  ;;  %v7487_v47 = vld [vmem:[#allocation84_spill] sm:$0xff] }
 0x1d2   :  { %3647 = vmatpush1.bf16.msra.mxu0 %v7477_v16  ;;  %v7488_v16 = vld [vmem:[#allocation87_spill] sm:$0xff] }
 0x1d3   :  { %3649 = vmatprep.subr.bf16.mxu0 %v7478_v0  ;;  %v7489_v0 = vld [vmem:[#allocation86_spill] sm:$0xff] }
 0x1d4   :  { %3711 = vmatpush1.bf16.msra.mxu1 %v7479_v28 }
 0x1d5   :  { %3713 = vmatprep.subr.bf16.mxu1 %v7480_v3  ;;  %v7490_v3 = vld [vmem:[#allocation88_spill] sm:$0xff] }
 0x1d6   :  { %3651 = vmatpush1.bf16.msra.mxu0 %v7481_v19 }
 0x1d7   :  { %3653 = vmatprep.subr.bf16.mxu0 %v7482_v51 }
 0x1d8   :  { %3715 = vmatpush1.bf16.msra.mxu1 %v7483_v38  ;;  %v7491_v38 = vld [vmem:[#allocation93_spill] sm:$0xff] }
 0x1d9   :  { %3717 = vmatprep.subr.bf16.mxu1 %v7484_v59  ;;  %v7492_v59 = vld [vmem:[#allocation92_spill] sm:$0xff] }
 0x1da   :  { %3655 = vmatpush1.bf16.msra.mxu0 %v7485_v13  ;;  %v7493_v13 = vld [vmem:[#allocation95_spill] sm:$0xff] }
 0x1db   :  { %3657 = vmatprep.subr.bf16.mxu0 %v7486_v40  ;;  %v7494_v40 = vld [vmem:[#allocation94_spill] sm:$0xff] }
 0x1dc   :  { %3719 = vmatpush1.bf16.msra.mxu1 %v7487_v47  ;;  %v7495_v47 = vld [vmem:[#allocation8_spill] sm:$0xff] }
 0x1dd   :  { %3721 = vmatprep.subr.bf16.mxu1 %v7488_v16  ;;  %v7496_v16 = vld [vmem:[#allocation96_spill] sm:$0xff] }
 0x1de   :  { %3659 = vmatpush1.bf16.msra.mxu0 %v7489_v0  ;;  %v7497_v0 = vld [vmem:[#allocation9_spill] sm:$0xff] }
 0x1df   :  { %3661 = vmatprep.subr.bf16.mxu0 %v6038_v12  ;;  %v53_v12 = vlaneseq }
 0x1e0   :  { %3723 = vmatpush1.bf16.msra.mxu1 %v7490_v3 }
 0x1e1   :  { %3725 = vmatprep.subr.bf16.mxu1 %v6043_v39  ;;  %v54_v3 = vshrl.u32 %v53_v12, 7 }
 0x1e2   :  { %3663 = vmatpush1.bf16.msra.mxu0 %v6041_v56  ;;  %v51_v56 = vld [vmem:[%s7141_s3] sm:$0xf] }
 0x1e3   :  { %3665 = vmatprep.subr.bf16.mxu0 %v7491_v38  ;;  %v55_v51 = vsub.s32 0, %v54_v3  ;;  %v59_v38 = vsub.s32 1, %v54_v3  ;;  %v67_v19 = vsub.s32 3, %v54_v3  ;;  %v63_v23 = vsub.s32 2, %v54_v3 }
 0x1e4   :  { %3727 = vmatpush1.bf16.msra.mxu1 %v7492_v59 }
 0x1e5   :  { %3729 = vmatprep.subr.bf16.mxu1 %v7493_v13  ;;  %v6203_v39 = vrot.slane %v51_v56, %v55_v51  ;;  %v6205_v59 = vrot.slane %v51_v56, %v59_v38  ;;  %v6209_v2 = vrot.slane %v51_v56, %v67_v19  ;;  %v6212_v38 = vrot.slane %v51_v56, %v63_v23 }
 0x1e6   :  { %3667 = vmatpush1.bf16.msra.mxu0 %v7494_v40 }
 0x1e7   :  { %3733 = vmatprep.subr.bf16.mxu0 %v7495_v47  ;;  %7498 = vst [vmem:[#allocation12_spill] sm:$0xff] %v6203_v39 }
 0x1e8   :  { %3731 = vmatpush1.bf16.msra.mxu1 %v7496_v16 }
 0x1e9   :  { %3797 = vmatprep.subr.bf16.mxu1 %v7497_v0 }
 0x23c   :  { %v562_v13 = vpop.f32.mrb[2].mxu0  ;;  %v633_v40 = vpop.f32.mrb[2].mxu1 }
 0x23d   :  { %v563_v47 = vadd.f32 %v562_v13, %v6203_v39  ;;  %v564_v16 = vpop.f32.mrb[3].mxu0  ;;  %v635_v28 = vpop.f32.mrb[3].mxu1  ;;  %v634_v29 = vadd.f32 %v633_v40, %v6212_v38 }
 0x23e   :  { %v565_v0 = vadd.f32 %v564_v16, %v6205_v59  ;;  %v636_v51 = vadd.f32 %v635_v28, %v6209_v2 }
 0x23f   :  { %v3115_v12 = vmul.f32 -1.442695, %v563_v47 }
 0x240   :  { %v3116_v44 = vmul.f32 -1.442695, %v565_v0  ;;  %v3117_v63 = vmul.f32 -1.442695, %v636_v51 }
 0x241   :  { %5315 = vpow2.f32 %v3115_v12 }
 0x242   :  { %5317 = vpow2.f32 %v3116_v44 }
 0x243   :  { %5319 = vpow2.f32 %v3117_v63 }
 0x244   :  { %5321 = vtanh.f32 %v634_v29 }
 0x24b   :  { %v5316_v34 = vpop.eup %5315 }
 0x24c   :  { %v5318_v13 = vpop.eup %5317  ;;  %v641_v39 = vadd.f32 1.0, %v5316_v34 }
 0x24d   :  { %v647_v16 = vadd.f32 1.0, %v5318_v13  ;;  %v5320_v0 = vpop.eup %5319 }
 0x24e   :  { %5323 = vrcp.f32 %v641_v39  ;;  %v5322_v47 = vpop.eup %5321  ;;  %v654_v12 = vadd.f32 1.0, %v5320_v0 }
 0x24f   :  { %5325 = vrcp.f32 %v647_v16 }
 0x250   :  { %5327 = vrcp.f32 %v654_v12 }
 0x258   :  { %v5324_v19 = vpop.eup %5323 }
 0x259   :  { %v5326_v3 = vpop.eup %5325  ;;  %v658_v44 = vmul.f32 %v5324_v19, %v5322_v47 }
 0x25a   :  { %v657_v28 = vmul.f32 0.0, %v5326_v3  ;;  %v5328_v40 = vpop.eup %5327 }
 0x25c   :  { %v6215_v56 = vadd.f32 %v658_v44, %v657_v28 }
 0x25e   :  { %5329 = vtanh.f32 %v6215_v56 }
 0x268   :  { %v5330_v23 = vpop.eup %5329 }
 0x269   :  { %v661_v34 = vmul.f32 %v5330_v23, %v5328_v40 }
 0x26b   :  { %894 = vmatprep.mubr.f32.mxu0 %v661_v34  ;;  %965 = vmatprep.mubr.f32.mxu1 %v661_v34 }
 0x27c   :  { %v730_v63 = vpop.f32.mrb[4].mxu0 }
 0x27d   :  { %v3119_v39 = vmul.f32 -1.442695, %v730_v63  ;;  %v732_v29 = vpop.f32.mrb[5].mxu0 }
 0x27e   :  { %v3120_v51 = vmul.f32 -1.442695, %v732_v29  ;;  %v801_v13 = vpop.f32.mrb[4].mxu1 }
 0x27f   :  { %5331 = vpow2.f32 %v3119_v39  ;;  %v803_v16 = vpop.f32.mrb[5].mxu1 }
 0x280   :  { %5333 = vpow2.f32 %v3120_v51  ;;  %v3121_v0 = vmul.f32 -1.442695, %v803_v16 }
 0x282   :  { %5335 = vpow2.f32 %v3121_v0 }
 0x283   :  { %5337 = vtanh.f32 %v801_v13  ;;  %v7500_v13 = vld [vmem:[#allocation13_spill] sm:$0xff] }
 0x289   :  { %v5332_v47 = vpop.eup %5331 }
 0x28a   :  { %v5334_v19 = vpop.eup %5333  ;;  %v809_v3 = vadd.f32 1.0, %v5332_v47  ;;  %v7501_v47 = vld [vmem:[#allocation14_spill] sm:$0xff] }
 0x28b   :  { %v815_v44 = vadd.f32 1.0, %v5334_v19  ;;  %v7502_v19 = vld [vmem:[#allocation19_spill] sm:$0xff] }
 0x28c   :  { %5339 = vrcp.f32 %v809_v3  ;;  %v5336_v12 = vpop.eup %5335  ;;  %v7503_v3 = vld [vmem:[#allocation20_spill] sm:$0xff] }
 0x28d   :  { %5341 = vrcp.f32 %v815_v44  ;;  %v5338_v28 = vpop.eup %5337  ;;  %v822_v23 = vadd.f32 1.0, %v5336_v12  ;;  %v7504_v44 = vld [vmem:[#allocation17_spill] sm:$0xff]  ;;  %v7505_v12 = vld [vmem:[#allocation18_spill] sm:$0xff] }
 0x28f   :  { %5343 = vrcp.f32 %v822_v23  ;;  %v7508_v23 = vld [vmem:[#allocation21_spill] sm:$0xff] }
 0x296   :  { %v5340_v40 = vpop.eup %5339 }
 0x297   :  { %v5342_v34 = vpop.eup %5341  ;;  %v826_v63 = vmul.f32 %v5340_v40, %v5338_v28  ;;  %v7506_v28 = vld [vmem:[#allocation23_spill] sm:$0xff]  ;;  %v7507_v40 = vld [vmem:[#allocation24_spill] sm:$0xff] }
 0x298   :  { %v825_v29 = vmul.f32 %v5342_v34, %v6066_v49  ;;  %v7499_v49 = vld [vmem:[#allocation16_spill] sm:$0xff]  ;;  %v7509_v34 = vld [vmem:[#allocation22_spill] sm:$0xff] }
 0x299   :  { %v5344_v51 = vpop.eup %5343 }
 0x29a   :  { %v6219_v39 = vadd.f32 %v826_v63, %v825_v29  ;;  %v7510_v63 = vld [vmem:[#allocation27_spill] sm:$0xff]  ;;  %v7511_v29 = vld [vmem:[#allocation28_spill] sm:$0xff] }
 0x29c   :  { %5345 = vtanh.f32 %v6219_v39 }
 0x2a6   :  { %v5346_v16 = vpop.eup %5345 }
 0x2a7   :  { %v829_v0 = vmul.f32 %v5346_v16, %v5344_v51  ;;  %v7512_v51 = vld [vmem:[#allocation25_spill] sm:$0xff]  ;;  %v7513_v16 = vld [vmem:[#allocation26_spill] sm:$0xff] }
 0x2a9   :  { %895 = vmatmul.mubr.f32.vlgmr.msra.gmra.mrb[6].mxu0 %v829_v0  ;;  %966 = vmatmul.mubr.f32.vlgmr.msra.gmra.mrb[6].mxu1 %v829_v0 }
 0x2aa   :  { %3735 = vmatpush1.bf16.msra.mxu0 %v5677_v8  ;;  %1062 = vmatprep.mubr.f32.mxu0 %v829_v0 }
 0x2ab   :  { %1133 = vmatprep.mubr.f32.mxu1 %v829_v0  ;;  %3737 = vmatprep.subr.bf16.mxu0 %v5679_v9  ;;  %v7514_v0 = vld [vmem:[#allocation30_spill] sm:$0xff] }
 0x2ac   :  { %3799 = vmatpush1.bf16.msra.mxu1 %v5690_v25 }
 0x2ad   :  { %3801 = vmatprep.subr.bf16.mxu1 %v5700_v33 }
 0x2ae   :  { %3739 = vmatpush1.bf16.msra.mxu0 %v5683_v14 }
 0x2af   :  { %3741 = vmatprep.subr.bf16.mxu0 %v5686_v17 }
 0x2b0   :  { %3803 = vmatpush1.bf16.msra.mxu1 %v5702_v37 }
 0x2b1   :  { %3805 = vmatprep.subr.bf16.mxu1 %v5708_v45 }
 0x2b2   :  { %3743 = vmatpush1.bf16.msra.mxu0 %v5693_v26 }
 0x2b3   :  { %3745 = vmatprep.subr.bf16.mxu0 %v5697_v30 }
 0x2b4   :  { %3807 = vmatpush1.bf16.msra.mxu1 %v5714_v48 }
 0x2b5   :  { %3809 = vmatprep.subr.bf16.mxu1 %v5717_v52 }
 0x2b6   :  { %3747 = vmatpush1.bf16.msra.mxu0 %v5706_v42 }
 0x2b7   :  { %3749 = vmatprep.subr.bf16.mxu0 %v5711_v46 }
 0x2b8   :  { %3811 = vmatpush1.bf16.msra.mxu1 %v5726_v62 }
 0x2b9   :  { %3813 = vmatprep.subr.bf16.mxu1 %v5729_v1 }
 0x2ba   :  { %3751 = vmatpush1.bf16.msra.mxu0 %v5720_v55 }
 0x2bb   :  { %3753 = vmatprep.subr.bf16.mxu0 %v5723_v58 }
 0x2bc   :  { %3815 = vmatpush1.bf16.msra.mxu1 %v5738_v15 }
 0x2bd   :  { %3817 = vmatprep.subr.bf16.mxu1 %v5741_v18 }
 0x2be   :  { %3755 = vmatpush1.bf16.msra.mxu0 %v5732_v7 }
 0x2bf   :  { %3757 = vmatprep.subr.bf16.mxu0 %v5735_v10 }
 0x2c0   :  { %3819 = vmatpush1.bf16.msra.mxu1 %v5750_v32 }
 0x2c1   :  { %3821 = vmatprep.subr.bf16.mxu1 %v5753_v35 }
 0x2c2   :  { %3759 = vmatpush1.bf16.msra.mxu0 %v5744_v24 }
 0x2c3   :  { %3761 = vmatprep.subr.bf16.mxu0 %v5747_v27 }
 0x2c4   :  { %3823 = vmatpush1.bf16.msra.mxu1 %v5762_v50 }
 0x2c5   :  { %3825 = vmatprep.subr.bf16.mxu1 %v5765_v53 }
 0x2c6   :  { %3763 = vmatpush1.bf16.msra.mxu0 %v5756_v41 }
 0x2c7   :  { %3765 = vmatprep.subr.bf16.mxu0 %v5759_v43 }
 0x2c8   :  { %3827 = vmatpush1.bf16.msra.mxu1 %v5774_v5 }
 0x2c9   :  { %3829 = vmatprep.subr.bf16.mxu1 %v5777_v11 }
 0x2ca   :  { %3767 = vmatpush1.bf16.msra.mxu0 %v5768_v60 }
 0x2cb   :  { %3769 = vmatprep.subr.bf16.mxu0 %v5771_v61 }
 0x2cc   :  { %3831 = vmatpush1.bf16.msra.mxu1 %v5786_v31 }
 0x2cd   :  { %3833 = vmatprep.subr.bf16.mxu1 %v5789_v36 }
 0x2ce   :  { %3771 = vmatpush1.bf16.msra.mxu0 %v5780_v20 }
 0x2cf   :  { %3773 = vmatprep.subr.bf16.mxu0 %v5783_v21 }
 0x2d0   :  { %3835 = vmatpush1.bf16.msra.mxu1 %v5798_v57 }
 0x2d1   :  { %3837 = vmatprep.subr.bf16.mxu1 %v7418_v4 }
 0x2d2   :  { %3775 = vmatpush1.bf16.msra.mxu0 %v7419_v22 }
 0x2d3   :  { %3777 = vmatprep.subr.bf16.mxu0 %v7420_v54 }
 0x2d4   :  { %3839 = vmatpush1.bf16.msra.mxu1 %v7421_v6 }
 0x2d5   :  { %3841 = vmatprep.subr.bf16.mxu1 %v7499_v49 }
 0x2d6   :  { %3779 = vmatpush1.bf16.msra.mxu0 %v7500_v13 }
 0x2d7   :  { %3781 = vmatprep.subr.bf16.mxu0 %v7501_v47 }
 0x2d8   :  { %3843 = vmatpush1.bf16.msra.mxu1 %v7502_v19 }
 0x2d9   :  { %3845 = vmatprep.subr.bf16.mxu1 %v7503_v3  ;;  %v7584_v3 = vld [vmem:[#allocation12_spill] sm:$0xff] }
 0x2da   :  { %3783 = vmatpush1.bf16.msra.mxu0 %v7504_v44  ;;  %v7515_v44 = vld [vmem:[#allocation32_spill] sm:$0xff] }
 0x2db   :  { %3785 = vmatprep.subr.bf16.mxu0 %v7505_v12  ;;  %v7516_v12 = vld [vmem:[#allocation29_spill] sm:$0xff] }
 0x2dc   :  { %3847 = vmatpush1.bf16.msra.mxu1 %v7506_v28  ;;  %v7526_v28 = vld [vmem:[#allocation42_spill] sm:$0xff] }
 0x2dd   :  { %3849 = vmatprep.subr.bf16.mxu1 %v7507_v40  ;;  %v7517_v40 = vld [vmem:[#allocation31_spill] sm:$0xff] }
 0x2de   :  { %3787 = vmatpush1.bf16.msra.mxu0 %v7508_v23  ;;  %v3125_v23 = vld [vmem:[%s7138_s0 + $0x10] sm:$0xff] }
 0x2df   :  { %3789 = vmatprep.subr.bf16.mxu0 %v7509_v34  ;;  %v7518_v34 = vld [vmem:[#allocation34_spill] sm:$0xff] }
 0x2e0   :  { %3851 = vmatpush1.bf16.msra.mxu1 %v7510_v63  ;;  %v7525_v63 = vld [vmem:[#allocation39_spill] sm:$0xff] }
 0x2e1   :  { %3853 = vmatprep.subr.bf16.mxu1 %v7511_v29  ;;  %v7519_v29 = vld [vmem:[#allocation36_spill] sm:$0xff] }
 0x2e2   :  { %3791 = vmatpush1.bf16.msra.mxu0 %v7512_v51  ;;  %v7520_v51 = vld [vmem:[#allocation33_spill] sm:$0xff] }
 0x2e3   :  { %3793 = vmatprep.subr.bf16.mxu0 %v7513_v16  ;;  %v7521_v16 = vld [vmem:[#allocation35_spill] sm:$0xff] }
 0x2e4   :  { %3855 = vmatpush1.bf16.msra.mxu1 %v7514_v0  ;;  %v7522_v0 = vld [vmem:[#allocation38_spill] sm:$0xff] }
 0x2e5   :  { %3857 = vmatprep.subr.bf16.mxu1 %v7515_v44  ;;  %v7523_v44 = vld [vmem:[#allocation40_spill] sm:$0xff] }
 0x2e6   :  { %3795 = vmatpush1.bf16.msra.mxu0 %v7516_v12  ;;  %v7524_v12 = vld [vmem:[#allocation37_spill] sm:$0xff] }
 0x2e7   :  { %3861 = vmatprep.subr.bf16.mxu0 %v7517_v40  ;;  %v7527_v40 = vld [vmem:[#allocation44_spill] sm:$0xff] }
 0x2e8   :  { %3859 = vmatpush1.bf16.msra.mxu1 %v7518_v34  ;;  %v7528_v34 = vld [vmem:[#allocation41_spill] sm:$0xff] }
 0x2e9   :  { %1063 = vmatmul.mubr.f32.vlgmr.msra.gmra.mrb[8].mxu0 %v3125_v23  ;;  %3925 = vmatprep.subr.bf16.mxu1 %v7519_v29  ;;  %v7529_v29 = vld [vmem:[#allocation43_spill] sm:$0xff] }
 0x2ea   :  { %3863 = vmatpush1.bf16.msra.mxu0 %v7520_v51  ;;  %v7530_v51 = vld [vmem:[#allocation46_spill] sm:$0xff] }
 0x2eb   :  { %1134 = vmatmul.mubr.f32.vlgmr.msra.gmra.mrb[8].mxu1 %v3125_v23  ;;  %3865 = vmatprep.subr.bf16.mxu0 %v7521_v16  ;;  %v7531_v23 = vld [vmem:[#allocation48_spill] sm:$0xff]  ;;  %v7532_v16 = vld [vmem:[#allocation45_spill] sm:$0xff] }
 0x2ec   :  { %3927 = vmatpush1.bf16.msra.mxu1 %v7522_v0  ;;  %v7533_v0 = vld [vmem:[#allocation47_spill] sm:$0xff] }
 0x2ed   :  { %3929 = vmatprep.subr.bf16.mxu1 %v7523_v44  ;;  %v7534_v44 = vld [vmem:[#allocation50_spill] sm:$0xff] }
 0x2ee   :  { %3867 = vmatpush1.bf16.msra.mxu0 %v7524_v12  ;;  %v7535_v12 = vld [vmem:[#allocation51_spill] sm:$0xff] }
 0x2ef   :  { %3869 = vmatprep.subr.bf16.mxu0 %v7525_v63  ;;  %v7536_v63 = vld [vmem:[#allocation49_spill] sm:$0xff] }
 0x2f0   :  { %3931 = vmatpush1.bf16.msra.mxu1 %v7526_v28  ;;  %v7537_v28 = vld [vmem:[#allocation53_spill] sm:$0xff] }
 0x2f1   :  { %3933 = vmatprep.subr.bf16.mxu1 %v7527_v40  ;;  %v7538_v40 = vld [vmem:[#allocation52_spill] sm:$0xff] }
 0x2f2   :  { %3871 = vmatpush1.bf16.msra.mxu0 %v7528_v34  ;;  %v7539_v34 = vld [vmem:[#allocation55_spill] sm:$0xff] }
 0x2f3   :  { %3873 = vmatprep.subr.bf16.mxu0 %v7529_v29  ;;  %v7540_v29 = vld [vmem:[#allocation54_spill] sm:$0xff] }
 0x2f4   :  { %3935 = vmatpush1.bf16.msra.mxu1 %v7530_v51  ;;  %v7541_v51 = vld [vmem:[#allocation57_spill] sm:$0xff] }
 0x2f5   :  { %3937 = vmatprep.subr.bf16.mxu1 %v7531_v23  ;;  %v7542_v23 = vld [vmem:[#allocation56_spill] sm:$0xff] }
 0x2f6   :  { %3875 = vmatpush1.bf16.msra.mxu0 %v7532_v16  ;;  %v7543_v16 = vld [vmem:[#allocation59_spill] sm:$0xff] }
 0x2f7   :  { %3877 = vmatprep.subr.bf16.mxu0 %v7533_v0  ;;  %v7544_v0 = vld [vmem:[#allocation58_spill] sm:$0xff] }
 0x2f8   :  { %3939 = vmatpush1.bf16.msra.mxu1 %v7534_v44  ;;  %v7545_v44 = vld [vmem:[#allocation61_spill] sm:$0xff] }
 0x2f9   :  { %3941 = vmatprep.subr.bf16.mxu1 %v7535_v12  ;;  %v7546_v12 = vld [vmem:[#allocation60_spill] sm:$0xff] }
 0x2fa   :  { %3879 = vmatpush1.bf16.msra.mxu0 %v7536_v63  ;;  %v7547_v63 = vld [vmem:[#allocation63_spill] sm:$0xff] }
 0x2fb   :  { %3881 = vmatprep.subr.bf16.mxu0 %v7537_v28  ;;  %v7548_v28 = vld [vmem:[#allocation62_spill] sm:$0xff] }
 0x2fc   :  { %3943 = vmatpush1.bf16.msra.mxu1 %v7538_v40  ;;  %v7549_v40 = vld [vmem:[#allocation65_spill] sm:$0xff] }
 0x2fd   :  { %3945 = vmatprep.subr.bf16.mxu1 %v7539_v34  ;;  %v7550_v34 = vld [vmem:[#allocation64_spill] sm:$0xff] }
 0x2fe   :  { %3883 = vmatpush1.bf16.msra.mxu0 %v7540_v29  ;;  %v7551_v29 = vld [vmem:[#allocation67_spill] sm:$0xff] }
 0x2ff   :  { %3885 = vmatprep.subr.bf16.mxu0 %v7541_v51  ;;  %v7552_v51 = vld [vmem:[#allocation66_spill] sm:$0xff] }
 0x300   :  { %3947 = vmatpush1.bf16.msra.mxu1 %v7542_v23  ;;  %v7553_v23 = vld [vmem:[#allocation69_spill] sm:$0xff] }
 0x301   :  { %3949 = vmatprep.subr.bf16.mxu1 %v7543_v16  ;;  %v7554_v16 = vld [vmem:[#allocation68_spill] sm:$0xff] }
 0x302   :  { %3887 = vmatpush1.bf16.msra.mxu0 %v7544_v0  ;;  %v7555_v0 = vld [vmem:[#allocation71_spill] sm:$0xff] }
 0x303   :  { %3889 = vmatprep.subr.bf16.mxu0 %v7545_v44  ;;  %v7556_v44 = vld [vmem:[#allocation70_spill] sm:$0xff] }
 0x304   :  { %3951 = vmatpush1.bf16.msra.mxu1 %v7546_v12  ;;  %v7557_v12 = vld [vmem:[#allocation73_spill] sm:$0xff] }
 0x305   :  { %3953 = vmatprep.subr.bf16.mxu1 %v7547_v63  ;;  %v7558_v63 = vld [vmem:[#allocation72_spill] sm:$0xff] }
 0x306   :  { %3891 = vmatpush1.bf16.msra.mxu0 %v7548_v28  ;;  %v7559_v28 = vld [vmem:[#allocation75_spill] sm:$0xff] }
 0x307   :  { %3893 = vmatprep.subr.bf16.mxu0 %v7549_v40  ;;  %v7560_v40 = vld [vmem:[#allocation74_spill] sm:$0xff] }
 0x308   :  { %3955 = vmatpush1.bf16.msra.mxu1 %v7550_v34  ;;  %v7561_v34 = vld [vmem:[#allocation77_spill] sm:$0xff] }
 0x309   :  { %3957 = vmatprep.subr.bf16.mxu1 %v7551_v29  ;;  %v7562_v29 = vld [vmem:[#allocation76_spill] sm:$0xff] }
 0x30a   :  { %3895 = vmatpush1.bf16.msra.mxu0 %v7552_v51  ;;  %v7563_v51 = vld [vmem:[#allocation79_spill] sm:$0xff] }
 0x30b   :  { %3897 = vmatprep.subr.bf16.mxu0 %v7553_v23  ;;  %v7564_v23 = vld [vmem:[#allocation78_spill] sm:$0xff] }
 0x30c   :  { %3959 = vmatpush1.bf16.msra.mxu1 %v7554_v16  ;;  %v7565_v16 = vld [vmem:[#allocation81_spill] sm:$0xff] }
 0x30d   :  { %3961 = vmatprep.subr.bf16.mxu1 %v7555_v0  ;;  %v7566_v0 = vld [vmem:[#allocation80_spill] sm:$0xff] }
 0x30e   :  { %3899 = vmatpush1.bf16.msra.mxu0 %v7556_v44  ;;  %v7567_v44 = vld [vmem:[#allocation83_spill] sm:$0xff] }
 0x30f   :  { %3901 = vmatprep.subr.bf16.mxu0 %v7557_v12  ;;  %v7568_v12 = vld [vmem:[#allocation82_spill] sm:$0xff] }
 0x310   :  { %3963 = vmatpush1.bf16.msra.mxu1 %v7558_v63  ;;  %v7569_v63 = vld [vmem:[#allocation85_spill] sm:$0xff] }
 0x311   :  { %3965 = vmatprep.subr.bf16.mxu1 %v7559_v28  ;;  %v7570_v28 = vld [vmem:[#allocation84_spill] sm:$0xff] }
 0x312   :  { %3903 = vmatpush1.bf16.msra.mxu0 %v7560_v40  ;;  %v7571_v40 = vld [vmem:[#allocation87_spill] sm:$0xff] }
 0x313   :  { %3905 = vmatprep.subr.bf16.mxu0 %v7561_v34  ;;  %v7572_v34 = vld [vmem:[#allocation86_spill] sm:$0xff] }
 0x314   :  { %3967 = vmatpush1.bf16.msra.mxu1 %v7562_v29  ;;  %v7573_v29 = vld [vmem:[#allocation89_spill] sm:$0xff] }
 0x315   :  { %3969 = vmatprep.subr.bf16.mxu1 %v7563_v51  ;;  %v7574_v51 = vld [vmem:[#allocation88_spill] sm:$0xff] }
 0x316   :  { %3907 = vmatpush1.bf16.msra.mxu0 %v7564_v23  ;;  %v7575_v23 = vld [vmem:[#allocation91_spill] sm:$0xff] }
 0x317   :  { %3909 = vmatprep.subr.bf16.mxu0 %v7565_v16  ;;  %v7576_v16 = vld [vmem:[#allocation90_spill] sm:$0xff] }
 0x318   :  { %3971 = vmatpush1.bf16.msra.mxu1 %v7566_v0  ;;  %v7577_v0 = vld [vmem:[#allocation93_spill] sm:$0xff] }
 0x319   :  { %3973 = vmatprep.subr.bf16.mxu1 %v7567_v44  ;;  %v7578_v44 = vld [vmem:[#allocation92_spill] sm:$0xff] }
 0x31a   :  { %3911 = vmatpush1.bf16.msra.mxu0 %v7568_v12  ;;  %v7579_v12 = vld [vmem:[#allocation95_spill] sm:$0xff] }
 0x31b   :  { %3913 = vmatprep.subr.bf16.mxu0 %v7569_v63  ;;  %v7580_v63 = vld [vmem:[#allocation94_spill] sm:$0xff] }
 0x31c   :  { %3975 = vmatpush1.bf16.msra.mxu1 %v7570_v28  ;;  %v7581_v28 = vld [vmem:[#allocation8_spill] sm:$0xff] }
 0x31d   :  { %3977 = vmatprep.subr.bf16.mxu1 %v7571_v40  ;;  %v7582_v40 = vld [vmem:[#allocation96_spill] sm:$0xff] }
 0x31e   :  { %3915 = vmatpush1.bf16.msra.mxu0 %v7572_v34  ;;  %v7583_v34 = vld [vmem:[#allocation9_spill] sm:$0xff] }
 0x31f   :  { %3917 = vmatprep.subr.bf16.mxu0 %v7573_v29 }
 0x320   :  { %3979 = vmatpush1.bf16.msra.mxu1 %v7574_v51 }
 0x321   :  { %3981 = vmatprep.subr.bf16.mxu1 %v7575_v23 }
 0x322   :  { %3919 = vmatpush1.bf16.msra.mxu0 %v7576_v16 }
 0x323   :  { %3921 = vmatprep.subr.bf16.mxu0 %v7577_v0 }
 0x324   :  { %3983 = vmatpush1.bf16.msra.mxu1 %v7578_v44 }
 0x325   :  { %3985 = vmatprep.subr.bf16.mxu1 %v7579_v12 }
 0x326   :  { %3923 = vmatpush1.bf16.msra.mxu0 %v7580_v63 }
 0x327   :  { %3989 = vmatprep.subr.bf16.mxu0 %v7581_v28 }
 0x328   :  { %3987 = vmatpush1.bf16.msra.mxu1 %v7582_v40 }
 0x329   :  { %4053 = vmatprep.subr.bf16.mxu1 %v7583_v34 }
 0x37c   :  { %v896_v29 = vpop.f32.mrb[6].mxu0  ;;  %v967_v51 = vpop.f32.mrb[6].mxu1 }
 0x37d   :  { %v897_v23 = vadd.f32 %v896_v29, %v7584_v3  ;;  %v898_v19 = vpop.f32.mrb[7].mxu0  ;;  %v969_v16 = vpop.f32.mrb[7].mxu1  ;;  %v968_v28 = vadd.f32 %v967_v51, %v6212_v38 }
 0x37e   :  { %v899_v0 = vadd.f32 %v898_v19, %v6205_v59  ;;  %v970_v63 = vadd.f32 %v969_v16, %v6209_v2 }
 0x37f   :  { %v3122_v47 = vmul.f32 -1.442695, %v897_v23 }
 0x380   :  { %v3123_v44 = vmul.f32 -1.442695, %v899_v0  ;;  %v3124_v12 = vmul.f32 -1.442695, %v970_v63 }
 0x381   :  { %5347 = vpow2.f32 %v3122_v47 }
 0x382   :  { %5349 = vpow2.f32 %v3123_v44 }
 0x383   :  { %5351 = vpow2.f32 %v3124_v12 }
 0x384   :  { %5353 = vtanh.f32 %v968_v28 }
 0x38b   :  { %v5348_v40 = vpop.eup %5347 }
 0x38c   :  { %v5350_v13 = vpop.eup %5349  ;;  %v975_v34 = vadd.f32 1.0, %v5348_v40 }
 0x38d   :  { %v981_v49 = vadd.f32 1.0, %v5350_v13  ;;  %v5352_v29 = vpop.eup %5351 }
 0x38e   :  { %5355 = vrcp.f32 %v975_v34  ;;  %v5354_v3 = vpop.eup %5353  ;;  %v988_v47 = vadd.f32 1.0, %v5352_v29 }
 0x38f   :  { %5357 = vrcp.f32 %v981_v49 }
 0x390   :  { %5359 = vrcp.f32 %v988_v47 }
 0x398   :  { %v5356_v19 = vpop.eup %5355 }
 0x399   :  { %v5358_v23 = vpop.eup %5357  ;;  %v992_v0 = vmul.f32 %v5356_v19, %v5354_v3 }
 0x39a   :  { %v991_v44 = vmul.f32 %v5358_v23, %v6215_v56  ;;  %v5360_v63 = vpop.eup %5359 }
 0x39c   :  { %v6358_v16 = vadd.f32 %v992_v0, %v991_v44 }
 0x39e   :  { %5361 = vtanh.f32 %v6358_v16 }
 0x3a8   :  { %v5362_v40 = vpop.eup %5361 }
 0x3a9   :  { %v995_v12 = vmul.f32 %v5362_v40, %v5360_v63 }
 0x3ab   :  { %1228 = vmatprep.mubr.f32.mxu0 %v995_v12  ;;  %1299 = vmatprep.mubr.f32.mxu1 %v995_v12 }
 0x3bc   :  { %v1064_v13 = vpop.f32.mrb[8].mxu0 }
 0x3bd   :  { %v3126_v49 = vmul.f32 -1.442695, %v1064_v13  ;;  %v1066_v28 = vpop.f32.mrb[9].mxu0 }
 0x3be   :  { %v3127_v34 = vmul.f32 -1.442695, %v1066_v28  ;;  %v1135_v51 = vpop.f32.mrb[8].mxu1 }
 0x3bf   :  { %5363 = vpow2.f32 %v3126_v49  ;;  %v1137_v3 = vpop.f32.mrb[9].mxu1 }
 0x3c0   :  { %5365 = vpow2.f32 %v3127_v34  ;;  %v3128_v29 = vmul.f32 -1.442695, %v1137_v3 }
 0x3c2   :  { %5367 = vpow2.f32 %v3128_v29 }
 0x3c3   :  { %5369 = vtanh.f32 %v1135_v51  ;;  %v7586_v51 = vld [vmem:[#allocation13_spill] sm:$0xff] }
 0x3c9   :  { %v5364_v56 = vpop.eup %5363 }
 0x3ca   :  { %v5366_v19 = vpop.eup %5365  ;;  %v1143_v23 = vadd.f32 1.0, %v5364_v56  ;;  %v7587_v56 = vld [vmem:[#allocation14_spill] sm:$0xff] }
 0x3cb   :  { %v1149_v0 = vadd.f32 1.0, %v5366_v19  ;;  %v7588_v19 = vld [vmem:[#allocation19_spill] sm:$0xff] }
 0x3cc   :  { %5371 = vrcp.f32 %v1143_v23  ;;  %v5368_v47 = vpop.eup %5367  ;;  %v7589_v23 = vld [vmem:[#allocation20_spill] sm:$0xff] }
 0x3cd   :  { %5373 = vrcp.f32 %v1149_v0  ;;  %v5370_v44 = vpop.eup %5369  ;;  %v1156_v40 = vadd.f32 1.0, %v5368_v47  ;;  %v7590_v0 = vld [vmem:[#allocation17_spill] sm:$0xff]  ;;  %v7591_v47 = vld [vmem:[#allocation18_spill] sm:$0xff] }
 0x3cf   :  { %5375 = vrcp.f32 %v1156_v40  ;;  %v7594_v40 = vld [vmem:[#allocation21_spill] sm:$0xff] }
 0x3d6   :  { %v5372_v63 = vpop.eup %5371 }
 0x3d7   :  { %v5374_v12 = vpop.eup %5373  ;;  %v1160_v13 = vmul.f32 %v5372_v63, %v5370_v44  ;;  %v7592_v44 = vld [vmem:[#allocation23_spill] sm:$0xff]  ;;  %v7593_v63 = vld [vmem:[#allocation24_spill] sm:$0xff] }
 0x3d8   :  { %v1159_v28 = vmul.f32 %v5374_v12, %v6219_v39  ;;  %v7585_v39 = vld [vmem:[#allocation16_spill] sm:$0xff]  ;;  %v7595_v12 = vld [vmem:[#allocation22_spill] sm:$0xff] }
 0x3d9   :  { %v5376_v34 = vpop.eup %5375 }
 0x3da   :  { %v6362_v49 = vadd.f32 %v1160_v13, %v1159_v28  ;;  %v7596_v13 = vld [vmem:[#allocation27_spill] sm:$0xff]  ;;  %v7597_v28 = vld [vmem:[#allocation28_spill] sm:$0xff] }
 0x3dc   :  { %5377 = vtanh.f32 %v6362_v49 }
 0x3e6   :  { %v5378_v3 = vpop.eup %5377 }
 0x3e7   :  { %v1163_v29 = vmul.f32 %v5378_v3, %v5376_v34  ;;  %v7598_v34 = vld [vmem:[#allocation25_spill] sm:$0xff]  ;;  %v7599_v3 = vld [vmem:[#allocation26_spill] sm:$0xff] }
 0x3e9   :  { %1229 = vmatmul.mubr.f32.vlgmr.msra.gmra.mrb[10].mxu0 %v1163_v29  ;;  %1300 = vmatmul.mubr.f32.vlgmr.msra.gmra.mrb[10].mxu1 %v1163_v29 }
 0x3ea   :  { %3991 = vmatpush1.bf16.msra.mxu0 %v5677_v8  ;;  %1396 = vmatprep.mubr.f32.mxu0 %v1163_v29 }
 0x3eb   :  { %1467 = vmatprep.mubr.f32.mxu1 %v1163_v29  ;;  %3993 = vmatprep.subr.bf16.mxu0 %v5679_v9  ;;  %v7600_v29 = vld [vmem:[#allocation30_spill] sm:$0xff] }
 0x3ec   :  { %4055 = vmatpush1.bf16.msra.mxu1 %v5690_v25 }
 0x3ed   :  { %4057 = vmatprep.subr.bf16.mxu1 %v5700_v33 }
 0x3ee   :  { %3995 = vmatpush1.bf16.msra.mxu0 %v5683_v14 }
 0x3ef   :  { %3997 = vmatprep.subr.bf16.mxu0 %v5686_v17 }
 0x3f0   :  { %4059 = vmatpush1.bf16.msra.mxu1 %v5702_v37 }
 0x3f1   :  { %4061 = vmatprep.subr.bf16.mxu1 %v5708_v45 }
 0x3f2   :  { %3999 = vmatpush1.bf16.msra.mxu0 %v5693_v26 }
 0x3f3   :  { %4001 = vmatprep.subr.bf16.mxu0 %v5697_v30 }
 0x3f4   :  { %4063 = vmatpush1.bf16.msra.mxu1 %v5714_v48 }
 0x3f5   :  { %4065 = vmatprep.subr.bf16.mxu1 %v5717_v52 }
 0x3f6   :  { %4003 = vmatpush1.bf16.msra.mxu0 %v5706_v42 }
 0x3f7   :  { %4005 = vmatprep.subr.bf16.mxu0 %v5711_v46 }
 0x3f8   :  { %4067 = vmatpush1.bf16.msra.mxu1 %v5726_v62 }
 0x3f9   :  { %4069 = vmatprep.subr.bf16.mxu1 %v5729_v1 }
 0x3fa   :  { %4007 = vmatpush1.bf16.msra.mxu0 %v5720_v55 }
 0x3fb   :  { %4009 = vmatprep.subr.bf16.mxu0 %v5723_v58 }
 0x3fc   :  { %4071 = vmatpush1.bf16.msra.mxu1 %v5738_v15 }
 0x3fd   :  { %4073 = vmatprep.subr.bf16.mxu1 %v5741_v18 }
 0x3fe   :  { %4011 = vmatpush1.bf16.msra.mxu0 %v5732_v7 }
 0x3ff   :  { %4013 = vmatprep.subr.bf16.mxu0 %v5735_v10 }
 0x400   :  { %4075 = vmatpush1.bf16.msra.mxu1 %v5750_v32 }
 0x401   :  { %4077 = vmatprep.subr.bf16.mxu1 %v5753_v35 }
 0x402   :  { %4015 = vmatpush1.bf16.msra.mxu0 %v5744_v24 }
 0x403   :  { %4017 = vmatprep.subr.bf16.mxu0 %v5747_v27 }
 0x404   :  { %4079 = vmatpush1.bf16.msra.mxu1 %v5762_v50 }
 0x405   :  { %4081 = vmatprep.subr.bf16.mxu1 %v5765_v53 }
 0x406   :  { %4019 = vmatpush1.bf16.msra.mxu0 %v5756_v41 }
 0x407   :  { %4021 = vmatprep.subr.bf16.mxu0 %v5759_v43 }
 0x408   :  { %4083 = vmatpush1.bf16.msra.mxu1 %v5774_v5 }
 0x409   :  { %4085 = vmatprep.subr.bf16.mxu1 %v5777_v11 }
 0x40a   :  { %4023 = vmatpush1.bf16.msra.mxu0 %v5768_v60 }
 0x40b   :  { %4025 = vmatprep.subr.bf16.mxu0 %v5771_v61 }
 0x40c   :  { %4087 = vmatpush1.bf16.msra.mxu1 %v5786_v31 }
 0x40d   :  { %4089 = vmatprep.subr.bf16.mxu1 %v5789_v36 }
 0x40e   :  { %4027 = vmatpush1.bf16.msra.mxu0 %v5780_v20 }
 0x40f   :  { %4029 = vmatprep.subr.bf16.mxu0 %v5783_v21 }
 0x410   :  { %4091 = vmatpush1.bf16.msra.mxu1 %v5798_v57 }
 0x411   :  { %4093 = vmatprep.subr.bf16.mxu1 %v7418_v4 }
 0x412   :  { %4031 = vmatpush1.bf16.msra.mxu0 %v7419_v22 }
 0x413   :  { %4033 = vmatprep.subr.bf16.mxu0 %v7420_v54 }
 0x414   :  { %4095 = vmatpush1.bf16.msra.mxu1 %v7421_v6 }
 0x415   :  { %4097 = vmatprep.subr.bf16.mxu1 %v7585_v39 }
 0x416   :  { %4035 = vmatpush1.bf16.msra.mxu0 %v7586_v51 }
 0x417   :  { %4037 = vmatprep.subr.bf16.mxu0 %v7587_v56 }
 0x418   :  { %4099 = vmatpush1.bf16.msra.mxu1 %v7588_v19 }
 0x419   :  { %4101 = vmatprep.subr.bf16.mxu1 %v7589_v23  ;;  %v7670_v23 = vld [vmem:[#allocation12_spill] sm:$0xff] }
 0x41a   :  { %4039 = vmatpush1.bf16.msra.mxu0 %v7590_v0  ;;  %v7601_v0 = vld [vmem:[#allocation32_spill] sm:$0xff] }
 0x41b   :  { %4041 = vmatprep.subr.bf16.mxu0 %v7591_v47  ;;  %v7602_v47 = vld [vmem:[#allocation29_spill] sm:$0xff] }
 0x41c   :  { %4103 = vmatpush1.bf16.msra.mxu1 %v7592_v44  ;;  %v7612_v44 = vld [vmem:[#allocation42_spill] sm:$0xff] }
 0x41d   :  { %4105 = vmatprep.subr.bf16.mxu1 %v7593_v63  ;;  %v7603_v63 = vld [vmem:[#allocation31_spill] sm:$0xff] }
 0x41e   :  { %4043 = vmatpush1.bf16.msra.mxu0 %v7594_v40  ;;  %v3132_v40 = vld [vmem:[%s7138_s0 + $0x18] sm:$0xff] }
 0x41f   :  { %4045 = vmatprep.subr.bf16.mxu0 %v7595_v12  ;;  %v7604_v12 = vld [vmem:[#allocation34_spill] sm:$0xff] }
 0x420   :  { %4107 = vmatpush1.bf16.msra.mxu1 %v7596_v13  ;;  %v7611_v13 = vld [vmem:[#allocation39_spill] sm:$0xff] }
 0x421   :  { %4109 = vmatprep.subr.bf16.mxu1 %v7597_v28  ;;  %v7605_v28 = vld [vmem:[#allocation36_spill] sm:$0xff] }
 0x422   :  { %4047 = vmatpush1.bf16.msra.mxu0 %v7598_v34  ;;  %v7606_v34 = vld [vmem:[#allocation33_spill] sm:$0xff] }
 0x423   :  { %4049 = vmatprep.subr.bf16.mxu0 %v7599_v3  ;;  %v7607_v3 = vld [vmem:[#allocation35_spill] sm:$0xff] }
 0x424   :  { %4111 = vmatpush1.bf16.msra.mxu1 %v7600_v29  ;;  %v7608_v29 = vld [vmem:[#allocation38_spill] sm:$0xff] }
 0x425   :  { %4113 = vmatprep.subr.bf16.mxu1 %v7601_v0  ;;  %v7609_v0 = vld [vmem:[#allocation40_spill] sm:$0xff] }
 0x426   :  { %4051 = vmatpush1.bf16.msra.mxu0 %v7602_v47  ;;  %v7610_v47 = vld [vmem:[#allocation37_spill] sm:$0xff] }
 0x427   :  { %4117 = vmatprep.subr.bf16.mxu0 %v7603_v63  ;;  %v7613_v63 = vld [vmem:[#allocation44_spill] sm:$0xff] }
 0x428   :  { %4115 = vmatpush1.bf16.msra.mxu1 %v7604_v12  ;;  %v7614_v12 = vld [vmem:[#allocation41_spill] sm:$0xff] }
 0x429   :  { %1397 = vmatmul.mubr.f32.vlgmr.msra.gmra.mrb[12].mxu0 %v3132_v40  ;;  %4181 = vmatprep.subr.bf16.mxu1 %v7605_v28  ;;  %v7615_v28 = vld [vmem:[#allocation43_spill] sm:$0xff] }
 0x42a   :  { %4119 = vmatpush1.bf16.msra.mxu0 %v7606_v34  ;;  %v7616_v34 = vld [vmem:[#allocation46_spill] sm:$0xff] }
 0x42b   :  { %1468 = vmatmul.mubr.f32.vlgmr.msra.gmra.mrb[12].mxu1 %v3132_v40  ;;  %4121 = vmatprep.subr.bf16.mxu0 %v7607_v3  ;;  %v7617_v40 = vld [vmem:[#allocation48_spill] sm:$0xff]  ;;  %v7618_v3 = vld [vmem:[#allocation45_spill] sm:$0xff] }
 0x42c   :  { %4183 = vmatpush1.bf16.msra.mxu1 %v7608_v29  ;;  %v7619_v29 = vld [vmem:[#allocation47_spill] sm:$0xff] }
 0x42d   :  { %4185 = vmatprep.subr.bf16.mxu1 %v7609_v0  ;;  %v7620_v0 = vld [vmem:[#allocation50_spill] sm:$0xff] }
 0x42e   :  { %4123 = vmatpush1.bf16.msra.mxu0 %v7610_v47  ;;  %v7621_v47 = vld [vmem:[#allocation51_spill] sm:$0xff] }
 0x42f   :  { %4125 = vmatprep.subr.bf16.mxu0 %v7611_v13  ;;  %v7622_v13 = vld [vmem:[#allocation49_spill] sm:$0xff] }
 0x430   :  { %4187 = vmatpush1.bf16.msra.mxu1 %v7612_v44  ;;  %v7623_v44 = vld [vmem:[#allocation53_spill] sm:$0xff] }
 0x431   :  { %4189 = vmatprep.subr.bf16.mxu1 %v7613_v63  ;;  %v7624_v63 = vld [vmem:[#allocation52_spill] sm:$0xff] }
 0x432   :  { %4127 = vmatpush1.bf16.msra.mxu0 %v7614_v12  ;;  %v7625_v12 = vld [vmem:[#allocation55_spill] sm:$0xff] }
 0x433   :  { %4129 = vmatprep.subr.bf16.mxu0 %v7615_v28  ;;  %v7626_v28 = vld [vmem:[#allocation54_spill] sm:$0xff] }
 0x434   :  { %4191 = vmatpush1.bf16.msra.mxu1 %v7616_v34  ;;  %v7627_v34 = vld [vmem:[#allocation57_spill] sm:$0xff] }
 0x435   :  { %4193 = vmatprep.subr.bf16.mxu1 %v7617_v40  ;;  %v7628_v40 = vld [vmem:[#allocation56_spill] sm:$0xff] }
 0x436   :  { %4131 = vmatpush1.bf16.msra.mxu0 %v7618_v3  ;;  %v7629_v3 = vld [vmem:[#allocation59_spill] sm:$0xff] }
 0x437   :  { %4133 = vmatprep.subr.bf16.mxu0 %v7619_v29  ;;  %v7630_v29 = vld [vmem:[#allocation58_spill] sm:$0xff] }
 0x438   :  { %4195 = vmatpush1.bf16.msra.mxu1 %v7620_v0  ;;  %v7631_v0 = vld [vmem:[#allocation61_spill] sm:$0xff] }
 0x439   :  { %4197 = vmatprep.subr.bf16.mxu1 %v7621_v47  ;;  %v7632_v47 = vld [vmem:[#allocation60_spill] sm:$0xff] }
 0x43a   :  { %4135 = vmatpush1.bf16.msra.mxu0 %v7622_v13  ;;  %v7633_v13 = vld [vmem:[#allocation63_spill] sm:$0xff] }
 0x43b   :  { %4137 = vmatprep.subr.bf16.mxu0 %v7623_v44  ;;  %v7634_v44 = vld [vmem:[#allocation62_spill] sm:$0xff] }
 0x43c   :  { %4199 = vmatpush1.bf16.msra.mxu1 %v7624_v63  ;;  %v7635_v63 = vld [vmem:[#allocation65_spill] sm:$0xff] }
 0x43d   :  { %4201 = vmatprep.subr.bf16.mxu1 %v7625_v12  ;;  %v7636_v12 = vld [vmem:[#allocation64_spill] sm:$0xff] }
 0x43e   :  { %4139 = vmatpush1.bf16.msra.mxu0 %v7626_v28  ;;  %v7637_v28 = vld [vmem:[#allocation67_spill] sm:$0xff] }
 0x43f   :  { %4141 = vmatprep.subr.bf16.mxu0 %v7627_v34  ;;  %v7638_v34 = vld [vmem:[#allocation66_spill] sm:$0xff] }
 0x440   :  { %4203 = vmatpush1.bf16.msra.mxu1 %v7628_v40  ;;  %v7639_v40 = vld [vmem:[#allocation69_spill] sm:$0xff] }
 0x441   :  { %4205 = vmatprep.subr.bf16.mxu1 %v7629_v3  ;;  %v7640_v3 = vld [vmem:[#allocation68_spill] sm:$0xff] }
 0x442   :  { %4143 = vmatpush1.bf16.msra.mxu0 %v7630_v29  ;;  %v7641_v29 = vld [vmem:[#allocation71_spill] sm:$0xff] }
 0x443   :  { %4145 = vmatprep.subr.bf16.mxu0 %v7631_v0  ;;  %v7642_v0 = vld [vmem:[#allocation70_spill] sm:$0xff] }
 0x444   :  { %4207 = vmatpush1.bf16.msra.mxu1 %v7632_v47  ;;  %v7643_v47 = vld [vmem:[#allocation73_spill] sm:$0xff] }
 0x445   :  { %4209 = vmatprep.subr.bf16.mxu1 %v7633_v13  ;;  %v7644_v13 = vld [vmem:[#allocation72_spill] sm:$0xff] }
 0x446   :  { %4147 = vmatpush1.bf16.msra.mxu0 %v7634_v44  ;;  %v7645_v44 = vld [vmem:[#allocation75_spill] sm:$0xff] }
 0x447   :  { %4149 = vmatprep.subr.bf16.mxu0 %v7635_v63  ;;  %v7646_v63 = vld [vmem:[#allocation74_spill] sm:$0xff] }
 0x448   :  { %4211 = vmatpush1.bf16.msra.mxu1 %v7636_v12  ;;  %v7647_v12 = vld [vmem:[#allocation77_spill] sm:$0xff] }
 0x449   :  { %4213 = vmatprep.subr.bf16.mxu1 %v7637_v28  ;;  %v7648_v28 = vld [vmem:[#allocation76_spill] sm:$0xff] }
 0x44a   :  { %4151 = vmatpush1.bf16.msra.mxu0 %v7638_v34  ;;  %v7649_v34 = vld [vmem:[#allocation79_spill] sm:$0xff] }
 0x44b   :  { %4153 = vmatprep.subr.bf16.mxu0 %v7639_v40  ;;  %v7650_v40 = vld [vmem:[#allocation78_spill] sm:$0xff] }
 0x44c   :  { %4215 = vmatpush1.bf16.msra.mxu1 %v7640_v3  ;;  %v7651_v3 = vld [vmem:[#allocation81_spill] sm:$0xff] }
 0x44d   :  { %4217 = vmatprep.subr.bf16.mxu1 %v7641_v29  ;;  %v7652_v29 = vld [vmem:[#allocation80_spill] sm:$0xff] }
 0x44e   :  { %4155 = vmatpush1.bf16.msra.mxu0 %v7642_v0  ;;  %v7653_v0 = vld [vmem:[#allocation83_spill] sm:$0xff] }
 0x44f   :  { %4157 = vmatprep.subr.bf16.mxu0 %v7643_v47  ;;  %v7654_v47 = vld [vmem:[#allocation82_spill] sm:$0xff] }
 0x450   :  { %4219 = vmatpush1.bf16.msra.mxu1 %v7644_v13  ;;  %v7655_v13 = vld [vmem:[#allocation85_spill] sm:$0xff] }
 0x451   :  { %4221 = vmatprep.subr.bf16.mxu1 %v7645_v44  ;;  %v7656_v44 = vld [vmem:[#allocation84_spill] sm:$0xff] }
 0x452   :  { %4159 = vmatpush1.bf16.msra.mxu0 %v7646_v63  ;;  %v7657_v63 = vld [vmem:[#allocation87_spill] sm:$0xff] }
 0x453   :  { %4161 = vmatprep.subr.bf16.mxu0 %v7647_v12  ;;  %v7658_v12 = vld [vmem:[#allocation86_spill] sm:$0xff] }
 0x454   :  { %4223 = vmatpush1.bf16.msra.mxu1 %v7648_v28  ;;  %v7659_v28 = vld [vmem:[#allocation89_spill] sm:$0xff] }
 0x455   :  { %4225 = vmatprep.subr.bf16.mxu1 %v7649_v34  ;;  %v7660_v34 = vld [vmem:[#allocation88_spill] sm:$0xff] }
 0x456   :  { %4163 = vmatpush1.bf16.msra.mxu0 %v7650_v40  ;;  %v7661_v40 = vld [vmem:[#allocation91_spill] sm:$0xff] }
 0x457   :  { %4165 = vmatprep.subr.bf16.mxu0 %v7651_v3  ;;  %v7662_v3 = vld [vmem:[#allocation90_spill] sm:$0xff] }
 0x458   :  { %4227 = vmatpush1.bf16.msra.mxu1 %v7652_v29  ;;  %v7663_v29 = vld [vmem:[#allocation93_spill] sm:$0xff] }
 0x459   :  { %4229 = vmatprep.subr.bf16.mxu1 %v7653_v0  ;;  %v7664_v0 = vld [vmem:[#allocation92_spill] sm:$0xff] }
 0x45a   :  { %4167 = vmatpush1.bf16.msra.mxu0 %v7654_v47  ;;  %v7665_v47 = vld [vmem:[#allocation95_spill] sm:$0xff] }
 0x45b   :  { %4169 = vmatprep.subr.bf16.mxu0 %v7655_v13  ;;  %v7666_v13 = vld [vmem:[#allocation94_spill] sm:$0xff] }
 0x45c   :  { %4231 = vmatpush1.bf16.msra.mxu1 %v7656_v44  ;;  %v7667_v44 = vld [vmem:[#allocation8_spill] sm:$0xff] }
 0x45d   :  { %4233 = vmatprep.subr.bf16.mxu1 %v7657_v63  ;;  %v7668_v63 = vld [vmem:[#allocation96_spill] sm:$0xff] }
 0x45e   :  { %4171 = vmatpush1.bf16.msra.mxu0 %v7658_v12  ;;  %v7669_v12 = vld [vmem:[#allocation9_spill] sm:$0xff] }
 0x45f   :  { %4173 = vmatprep.subr.bf16.mxu0 %v7659_v28 }
 0x460   :  { %4235 = vmatpush1.bf16.msra.mxu1 %v7660_v34 }
 0x461   :  { %4237 = vmatprep.subr.bf16.mxu1 %v7661_v40 }
 0x462   :  { %4175 = vmatpush1.bf16.msra.mxu0 %v7662_v3 }
 0x463   :  { %4177 = vmatprep.subr.bf16.mxu0 %v7663_v29 }
 0x464   :  { %4239 = vmatpush1.bf16.msra.mxu1 %v7664_v0 }
 0x465   :  { %4241 = vmatprep.subr.bf16.mxu1 %v7665_v47 }
 0x466   :  { %4179 = vmatpush1.bf16.msra.mxu0 %v7666_v13 }
 0x467   :  { %4245 = vmatprep.subr.bf16.mxu0 %v7667_v44 }
 0x468   :  { %4243 = vmatpush1.bf16.msra.mxu1 %v7668_v63 }
 0x469   :  { %4309 = vmatprep.subr.bf16.mxu1 %v7669_v12 }
 0x4bc   :  { %v1230_v28 = vpop.f32.mrb[10].mxu0  ;;  %v1301_v34 = vpop.f32.mrb[10].mxu1 }
 0x4bd   :  { %v1231_v40 = vadd.f32 %v1230_v28, %v7670_v23  ;;  %v1232_v19 = vpop.f32.mrb[11].mxu0  ;;  %v1303_v3 = vpop.f32.mrb[11].mxu1  ;;  %v1302_v44 = vadd.f32 %v1301_v34, %v6212_v38 }
 0x4be   :  { %v1233_v29 = vadd.f32 %v1232_v19, %v6205_v59  ;;  %v1304_v13 = vadd.f32 %v1303_v3, %v6209_v2 }
 0x4bf   :  { %v3129_v56 = vmul.f32 -1.442695, %v1231_v40 }
 0x4c0   :  { %v3130_v0 = vmul.f32 -1.442695, %v1233_v29  ;;  %v3131_v47 = vmul.f32 -1.442695, %v1304_v13 }
 0x4c1   :  { %5379 = vpow2.f32 %v3129_v56 }
 0x4c2   :  { %5381 = vpow2.f32 %v3130_v0 }
 0x4c3   :  { %5383 = vpow2.f32 %v3131_v47 }
 0x4c4   :  { %5385 = vtanh.f32 %v1302_v44 }
 0x4cb   :  { %v5380_v63 = vpop.eup %5379 }
 0x4cc   :  { %v5382_v51 = vpop.eup %5381  ;;  %v1309_v12 = vadd.f32 1.0, %v5380_v63 }
 0x4cd   :  { %v1315_v39 = vadd.f32 1.0, %v5382_v51  ;;  %v5384_v28 = vpop.eup %5383 }
 0x4ce   :  { %5387 = vrcp.f32 %v1309_v12  ;;  %v5386_v23 = vpop.eup %5385  ;;  %v1322_v56 = vadd.f32 1.0, %v5384_v28 }
 0x4cf   :  { %5389 = vrcp.f32 %v1315_v39 }
 0x4d0   :  { %5391 = vrcp.f32 %v1322_v56 }
 0x4d8   :  { %v5388_v19 = vpop.eup %5387 }
 0x4d9   :  { %v5390_v40 = vpop.eup %5389  ;;  %v1326_v29 = vmul.f32 %v5388_v19, %v5386_v23 }
 0x4da   :  { %v1325_v0 = vmul.f32 %v5390_v40, %v6358_v16  ;;  %v5392_v13 = vpop.eup %5391 }
 0x4dc   :  { %v6501_v3 = vadd.f32 %v1326_v29, %v1325_v0 }
 0x4de   :  { %5393 = vtanh.f32 %v6501_v3 }
 0x4e8   :  { %v5394_v63 = vpop.eup %5393 }
 0x4e9   :  { %v1329_v47 = vmul.f32 %v5394_v63, %v5392_v13 }
 0x4eb   :  { %1562 = vmatprep.mubr.f32.mxu0 %v1329_v47  ;;  %1633 = vmatprep.mubr.f32.mxu1 %v1329_v47 }
 0x4fc   :  { %v1398_v51 = vpop.f32.mrb[12].mxu0 }
 0x4fd   :  { %v3133_v39 = vmul.f32 -1.442695, %v1398_v51  ;;  %v1400_v44 = vpop.f32.mrb[13].mxu0 }
 0x4fe   :  { %v3134_v12 = vmul.f32 -1.442695, %v1400_v44  ;;  %v1469_v34 = vpop.f32.mrb[12].mxu1 }
 0x4ff   :  { %5395 = vpow2.f32 %v3133_v39  ;;  %v1471_v23 = vpop.f32.mrb[13].mxu1 }
 0x500   :  { %5397 = vpow2.f32 %v3134_v12  ;;  %v3135_v28 = vmul.f32 -1.442695, %v1471_v23 }
 0x502   :  { %5399 = vpow2.f32 %v3135_v28 }
 0x503   :  { %5401 = vtanh.f32 %v1469_v34  ;;  %v7672_v34 = vld [vmem:[#allocation13_spill] sm:$0xff] }
 0x509   :  { %v5396_v16 = vpop.eup %5395 }
 0x50a   :  { %v5398_v19 = vpop.eup %5397  ;;  %v1477_v40 = vadd.f32 1.0, %v5396_v16  ;;  %v7673_v16 = vld [vmem:[#allocation14_spill] sm:$0xff] }
 0x50b   :  { %v1483_v29 = vadd.f32 1.0, %v5398_v19  ;;  %v7674_v19 = vld [vmem:[#allocation19_spill] sm:$0xff] }
 0x50c   :  { %5403 = vrcp.f32 %v1477_v40  ;;  %v5400_v56 = vpop.eup %5399  ;;  %v7675_v40 = vld [vmem:[#allocation20_spill] sm:$0xff] }
 0x50d   :  { %5405 = vrcp.f32 %v1483_v29  ;;  %v5402_v0 = vpop.eup %5401  ;;  %v1490_v63 = vadd.f32 1.0, %v5400_v56  ;;  %v7676_v29 = vld [vmem:[#allocation17_spill] sm:$0xff]  ;;  %v7677_v56 = vld [vmem:[#allocation18_spill] sm:$0xff] }
 0x50f   :  { %5407 = vrcp.f32 %v1490_v63  ;;  %v7680_v63 = vld [vmem:[#allocation21_spill] sm:$0xff] }
 0x516   :  { %v5404_v13 = vpop.eup %5403 }
 0x517   :  { %v5406_v47 = vpop.eup %5405  ;;  %v1494_v51 = vmul.f32 %v5404_v13, %v5402_v0  ;;  %v7678_v0 = vld [vmem:[#allocation23_spill] sm:$0xff]  ;;  %v7679_v13 = vld [vmem:[#allocation24_spill] sm:$0xff] }
 0x518   :  { %v1493_v44 = vmul.f32 %v5406_v47, %v6362_v49  ;;  %v7671_v49 = vld [vmem:[#allocation16_spill] sm:$0xff]  ;;  %v7681_v47 = vld [vmem:[#allocation22_spill] sm:$0xff] }
 0x519   :  { %v5408_v12 = vpop.eup %5407 }
 0x51a   :  { %v6505_v39 = vadd.f32 %v1494_v51, %v1493_v44  ;;  %v7682_v51 = vld [vmem:[#allocation27_spill] sm:$0xff]  ;;  %v7683_v44 = vld [vmem:[#allocation28_spill] sm:$0xff] }
 0x51c   :  { %5409 = vtanh.f32 %v6505_v39 }
 0x526   :  { %v5410_v23 = vpop.eup %5409 }
 0x527   :  { %v1497_v28 = vmul.f32 %v5410_v23, %v5408_v12  ;;  %v7684_v12 = vld [vmem:[#allocation25_spill] sm:$0xff]  ;;  %v7685_v23 = vld [vmem:[#allocation26_spill] sm:$0xff] }
 0x529   :  { %1563 = vmatmul.mubr.f32.vlgmr.msra.gmra.mrb[14].mxu0 %v1497_v28  ;;  %1634 = vmatmul.mubr.f32.vlgmr.msra.gmra.mrb[14].mxu1 %v1497_v28 }
 0x52a   :  { %4247 = vmatpush1.bf16.msra.mxu0 %v5677_v8  ;;  %1730 = vmatprep.mubr.f32.mxu0 %v1497_v28 }
 0x52b   :  { %1801 = vmatprep.mubr.f32.mxu1 %v1497_v28  ;;  %4249 = vmatprep.subr.bf16.mxu0 %v5679_v9  ;;  %v7686_v28 = vld [vmem:[#allocation30_spill] sm:$0xff] }
 0x52c   :  { %4311 = vmatpush1.bf16.msra.mxu1 %v5690_v25 }
 0x52d   :  { %4313 = vmatprep.subr.bf16.mxu1 %v5700_v33 }
 0x52e   :  { %4251 = vmatpush1.bf16.msra.mxu0 %v5683_v14 }
 0x52f   :  { %4253 = vmatprep.subr.bf16.mxu0 %v5686_v17 }
 0x530   :  { %4315 = vmatpush1.bf16.msra.mxu1 %v5702_v37 }
 0x531   :  { %4317 = vmatprep.subr.bf16.mxu1 %v5708_v45 }
 0x532   :  { %4255 = vmatpush1.bf16.msra.mxu0 %v5693_v26 }
 0x533   :  { %4257 = vmatprep.subr.bf16.mxu0 %v5697_v30 }
 0x534   :  { %4319 = vmatpush1.bf16.msra.mxu1 %v5714_v48 }
 0x535   :  { %4321 = vmatprep.subr.bf16.mxu1 %v5717_v52 }
 0x536   :  { %4259 = vmatpush1.bf16.msra.mxu0 %v5706_v42 }
 0x537   :  { %4261 = vmatprep.subr.bf16.mxu0 %v5711_v46 }
 0x538   :  { %4323 = vmatpush1.bf16.msra.mxu1 %v5726_v62 }
 0x539   :  { %4325 = vmatprep.subr.bf16.mxu1 %v5729_v1 }
 0x53a   :  { %4263 = vmatpush1.bf16.msra.mxu0 %v5720_v55 }
 0x53b   :  { %4265 = vmatprep.subr.bf16.mxu0 %v5723_v58 }
 0x53c   :  { %4327 = vmatpush1.bf16.msra.mxu1 %v5738_v15 }
 0x53d   :  { %4329 = vmatprep.subr.bf16.mxu1 %v5741_v18 }
 0x53e   :  { %4267 = vmatpush1.bf16.msra.mxu0 %v5732_v7 }
 0x53f   :  { %4269 = vmatprep.subr.bf16.mxu0 %v5735_v10 }
 0x540   :  { %4331 = vmatpush1.bf16.msra.mxu1 %v5750_v32 }
 0x541   :  { %4333 = vmatprep.subr.bf16.mxu1 %v5753_v35 }
 0x542   :  { %4271 = vmatpush1.bf16.msra.mxu0 %v5744_v24 }
 0x543   :  { %4273 = vmatprep.subr.bf16.mxu0 %v5747_v27 }
 0x544   :  { %4335 = vmatpush1.bf16.msra.mxu1 %v5762_v50 }
 0x545   :  { %4337 = vmatprep.subr.bf16.mxu1 %v5765_v53 }
 0x546   :  { %4275 = vmatpush1.bf16.msra.mxu0 %v5756_v41 }
 0x547   :  { %4277 = vmatprep.subr.bf16.mxu0 %v5759_v43 }
 0x548   :  { %4339 = vmatpush1.bf16.msra.mxu1 %v5774_v5 }
 0x549   :  { %4341 = vmatprep.subr.bf16.mxu1 %v5777_v11 }
 0x54a   :  { %4279 = vmatpush1.bf16.msra.mxu0 %v5768_v60 }
 0x54b   :  { %4281 = vmatprep.subr.bf16.mxu0 %v5771_v61 }
 0x54c   :  { %4343 = vmatpush1.bf16.msra.mxu1 %v5786_v31 }
 0x54d   :  { %4345 = vmatprep.subr.bf16.mxu1 %v5789_v36 }
 0x54e   :  { %4283 = vmatpush1.bf16.msra.mxu0 %v5780_v20 }
 0x54f   :  { %4285 = vmatprep.subr.bf16.mxu0 %v5783_v21 }
 0x550   :  { %4347 = vmatpush1.bf16.msra.mxu1 %v5798_v57 }
 0x551   :  { %4349 = vmatprep.subr.bf16.mxu1 %v7418_v4 }
 0x552   :  { %4287 = vmatpush1.bf16.msra.mxu0 %v7419_v22 }
 0x553   :  { %4289 = vmatprep.subr.bf16.mxu0 %v7420_v54 }
 0x554   :  { %4351 = vmatpush1.bf16.msra.mxu1 %v7421_v6 }
 0x555   :  { %4353 = vmatprep.subr.bf16.mxu1 %v7671_v49 }
 0x556   :  { %4291 = vmatpush1.bf16.msra.mxu0 %v7672_v34 }
 0x557   :  { %4293 = vmatprep.subr.bf16.mxu0 %v7673_v16 }
 0x558   :  { %4355 = vmatpush1.bf16.msra.mxu1 %v7674_v19 }
 0x559   :  { %4357 = vmatprep.subr.bf16.mxu1 %v7675_v40  ;;  %v7756_v40 = vld [vmem:[#allocation12_spill] sm:$0xff] }
 0x55a   :  { %4295 = vmatpush1.bf16.msra.mxu0 %v7676_v29  ;;  %v7687_v29 = vld [vmem:[#allocation32_spill] sm:$0xff] }
 0x55b   :  { %4297 = vmatprep.subr.bf16.mxu0 %v7677_v56  ;;  %v7688_v56 = vld [vmem:[#allocation29_spill] sm:$0xff] }
 0x55c   :  { %4359 = vmatpush1.bf16.msra.mxu1 %v7678_v0  ;;  %v7698_v0 = vld [vmem:[#allocation42_spill] sm:$0xff] }
 0x55d   :  { %4361 = vmatprep.subr.bf16.mxu1 %v7679_v13  ;;  %v7689_v13 = vld [vmem:[#allocation31_spill] sm:$0xff] }
 0x55e   :  { %4299 = vmatpush1.bf16.msra.mxu0 %v7680_v63  ;;  %v3139_v63 = vld [vmem:[%s7138_s0 + $0x20] sm:$0xff] }
 0x55f   :  { %4301 = vmatprep.subr.bf16.mxu0 %v7681_v47  ;;  %v7690_v47 = vld [vmem:[#allocation34_spill] sm:$0xff] }
 0x560   :  { %4363 = vmatpush1.bf16.msra.mxu1 %v7682_v51  ;;  %v7697_v51 = vld [vmem:[#allocation39_spill] sm:$0xff] }
 0x561   :  { %4365 = vmatprep.subr.bf16.mxu1 %v7683_v44  ;;  %v7691_v44 = vld [vmem:[#allocation36_spill] sm:$0xff] }
 0x562   :  { %4303 = vmatpush1.bf16.msra.mxu0 %v7684_v12  ;;  %v7692_v12 = vld [vmem:[#allocation33_spill] sm:$0xff] }
 0x563   :  { %4305 = vmatprep.subr.bf16.mxu0 %v7685_v23  ;;  %v7693_v23 = vld [vmem:[#allocation35_spill] sm:$0xff] }
 0x564   :  { %4367 = vmatpush1.bf16.msra.mxu1 %v7686_v28  ;;  %v7694_v28 = vld [vmem:[#allocation38_spill] sm:$0xff] }
 0x565   :  { %4369 = vmatprep.subr.bf16.mxu1 %v7687_v29  ;;  %v7695_v29 = vld [vmem:[#allocation40_spill] sm:$0xff] }
 0x566   :  { %4307 = vmatpush1.bf16.msra.mxu0 %v7688_v56  ;;  %v7696_v56 = vld [vmem:[#allocation37_spill] sm:$0xff] }
 0x567   :  { %4373 = vmatprep.subr.bf16.mxu0 %v7689_v13  ;;  %v7699_v13 = vld [vmem:[#allocation44_spill] sm:$0xff] }
 0x568   :  { %4371 = vmatpush1.bf16.msra.mxu1 %v7690_v47  ;;  %v7700_v47 = vld [vmem:[#allocation41_spill] sm:$0xff] }
 0x569   :  { %1731 = vmatmul.mubr.f32.vlgmr.msra.gmra.mrb[16].mxu0 %v3139_v63  ;;  %4437 = vmatprep.subr.bf16.mxu1 %v7691_v44  ;;  %v7701_v44 = vld [vmem:[#allocation43_spill] sm:$0xff] }
 0x56a   :  { %4375 = vmatpush1.bf16.msra.mxu0 %v7692_v12  ;;  %v7702_v12 = vld [vmem:[#allocation46_spill] sm:$0xff] }
 0x56b   :  { %1802 = vmatmul.mubr.f32.vlgmr.msra.gmra.mrb[16].mxu1 %v3139_v63  ;;  %4377 = vmatprep.subr.bf16.mxu0 %v7693_v23  ;;  %v7703_v63 = vld [vmem:[#allocation48_spill] sm:$0xff]  ;;  %v7704_v23 = vld [vmem:[#allocation45_spill] sm:$0xff] }
 0x56c   :  { %4439 = vmatpush1.bf16.msra.mxu1 %v7694_v28  ;;  %v7705_v28 = vld [vmem:[#allocation47_spill] sm:$0xff] }
 0x56d   :  { %4441 = vmatprep.subr.bf16.mxu1 %v7695_v29  ;;  %v7706_v29 = vld [vmem:[#allocation50_spill] sm:$0xff] }
 0x56e   :  { %4379 = vmatpush1.bf16.msra.mxu0 %v7696_v56  ;;  %v7707_v56 = vld [vmem:[#allocation51_spill] sm:$0xff] }
 0x56f   :  { %4381 = vmatprep.subr.bf16.mxu0 %v7697_v51  ;;  %v7708_v51 = vld [vmem:[#allocation49_spill] sm:$0xff] }
 0x570   :  { %4443 = vmatpush1.bf16.msra.mxu1 %v7698_v0  ;;  %v7709_v0 = vld [vmem:[#allocation53_spill] sm:$0xff] }
 0x571   :  { %4445 = vmatprep.subr.bf16.mxu1 %v7699_v13  ;;  %v7710_v13 = vld [vmem:[#allocation52_spill] sm:$0xff] }
 0x572   :  { %4383 = vmatpush1.bf16.msra.mxu0 %v7700_v47  ;;  %v7711_v47 = vld [vmem:[#allocation55_spill] sm:$0xff] }
 0x573   :  { %4385 = vmatprep.subr.bf16.mxu0 %v7701_v44  ;;  %v7712_v44 = vld [vmem:[#allocation54_spill] sm:$0xff] }
 0x574   :  { %4447 = vmatpush1.bf16.msra.mxu1 %v7702_v12  ;;  %v7713_v12 = vld [vmem:[#allocation57_spill] sm:$0xff] }
 0x575   :  { %4449 = vmatprep.subr.bf16.mxu1 %v7703_v63  ;;  %v7714_v63 = vld [vmem:[#allocation56_spill] sm:$0xff] }
 0x576   :  { %4387 = vmatpush1.bf16.msra.mxu0 %v7704_v23  ;;  %v7715_v23 = vld [vmem:[#allocation59_spill] sm:$0xff] }
 0x577   :  { %4389 = vmatprep.subr.bf16.mxu0 %v7705_v28  ;;  %v7716_v28 = vld [vmem:[#allocation58_spill] sm:$0xff] }
 0x578   :  { %4451 = vmatpush1.bf16.msra.mxu1 %v7706_v29  ;;  %v7717_v29 = vld [vmem:[#allocation61_spill] sm:$0xff] }
 0x579   :  { %4453 = vmatprep.subr.bf16.mxu1 %v7707_v56  ;;  %v7718_v56 = vld [vmem:[#allocation60_spill] sm:$0xff] }
 0x57a   :  { %4391 = vmatpush1.bf16.msra.mxu0 %v7708_v51  ;;  %v7719_v51 = vld [vmem:[#allocation63_spill] sm:$0xff] }
 0x57b   :  { %4393 = vmatprep.subr.bf16.mxu0 %v7709_v0  ;;  %v7720_v0 = vld [vmem:[#allocation62_spill] sm:$0xff] }
 0x57c   :  { %4455 = vmatpush1.bf16.msra.mxu1 %v7710_v13  ;;  %v7721_v13 = vld [vmem:[#allocation65_spill] sm:$0xff] }
 0x57d   :  { %4457 = vmatprep.subr.bf16.mxu1 %v7711_v47  ;;  %v7722_v47 = vld [vmem:[#allocation64_spill] sm:$0xff] }
 0x57e   :  { %4395 = vmatpush1.bf16.msra.mxu0 %v7712_v44  ;;  %v7723_v44 = vld [vmem:[#allocation67_spill] sm:$0xff] }
 0x57f   :  { %4397 = vmatprep.subr.bf16.mxu0 %v7713_v12  ;;  %v7724_v12 = vld [vmem:[#allocation66_spill] sm:$0xff] }
 0x580   :  { %4459 = vmatpush1.bf16.msra.mxu1 %v7714_v63  ;;  %v7725_v63 = vld [vmem:[#allocation69_spill] sm:$0xff] }
 0x581   :  { %4461 = vmatprep.subr.bf16.mxu1 %v7715_v23  ;;  %v7726_v23 = vld [vmem:[#allocation68_spill] sm:$0xff] }
 0x582   :  { %4399 = vmatpush1.bf16.msra.mxu0 %v7716_v28  ;;  %v7727_v28 = vld [vmem:[#allocation71_spill] sm:$0xff] }
 0x583   :  { %4401 = vmatprep.subr.bf16.mxu0 %v7717_v29  ;;  %v7728_v29 = vld [vmem:[#allocation70_spill] sm:$0xff] }
 0x584   :  { %4463 = vmatpush1.bf16.msra.mxu1 %v7718_v56  ;;  %v7729_v56 = vld [vmem:[#allocation73_spill] sm:$0xff] }
 0x585   :  { %4465 = vmatprep.subr.bf16.mxu1 %v7719_v51  ;;  %v7730_v51 = vld [vmem:[#allocation72_spill] sm:$0xff] }
 0x586   :  { %4403 = vmatpush1.bf16.msra.mxu0 %v7720_v0  ;;  %v7731_v0 = vld [vmem:[#allocation75_spill] sm:$0xff] }
 0x587   :  { %4405 = vmatprep.subr.bf16.mxu0 %v7721_v13  ;;  %v7732_v13 = vld [vmem:[#allocation74_spill] sm:$0xff] }
 0x588   :  { %4467 = vmatpush1.bf16.msra.mxu1 %v7722_v47  ;;  %v7733_v47 = vld [vmem:[#allocation77_spill] sm:$0xff] }
 0x589   :  { %4469 = vmatprep.subr.bf16.mxu1 %v7723_v44  ;;  %v7734_v44 = vld [vmem:[#allocation76_spill] sm:$0xff] }
 0x58a   :  { %4407 = vmatpush1.bf16.msra.mxu0 %v7724_v12  ;;  %v7735_v12 = vld [vmem:[#allocation79_spill] sm:$0xff] }
 0x58b   :  { %4409 = vmatprep.subr.bf16.mxu0 %v7725_v63  ;;  %v7736_v63 = vld [vmem:[#allocation78_spill] sm:$0xff] }
 0x58c   :  { %4471 = vmatpush1.bf16.msra.mxu1 %v7726_v23  ;;  %v7737_v23 = vld [vmem:[#allocation81_spill] sm:$0xff] }
 0x58d   :  { %4473 = vmatprep.subr.bf16.mxu1 %v7727_v28  ;;  %v7738_v28 = vld [vmem:[#allocation80_spill] sm:$0xff] }
 0x58e   :  { %4411 = vmatpush1.bf16.msra.mxu0 %v7728_v29  ;;  %v7739_v29 = vld [vmem:[#allocation83_spill] sm:$0xff] }
 0x58f   :  { %4413 = vmatprep.subr.bf16.mxu0 %v7729_v56  ;;  %v7740_v56 = vld [vmem:[#allocation82_spill] sm:$0xff] }
 0x590   :  { %4475 = vmatpush1.bf16.msra.mxu1 %v7730_v51  ;;  %v7741_v51 = vld [vmem:[#allocation85_spill] sm:$0xff] }
 0x591   :  { %4477 = vmatprep.subr.bf16.mxu1 %v7731_v0  ;;  %v7742_v0 = vld [vmem:[#allocation84_spill] sm:$0xff] }
 0x592   :  { %4415 = vmatpush1.bf16.msra.mxu0 %v7732_v13  ;;  %v7743_v13 = vld [vmem:[#allocation87_spill] sm:$0xff] }
 0x593   :  { %4417 = vmatprep.subr.bf16.mxu0 %v7733_v47  ;;  %v7744_v47 = vld [vmem:[#allocation86_spill] sm:$0xff] }
 0x594   :  { %4479 = vmatpush1.bf16.msra.mxu1 %v7734_v44  ;;  %v7745_v44 = vld [vmem:[#allocation89_spill] sm:$0xff] }
 0x595   :  { %4481 = vmatprep.subr.bf16.mxu1 %v7735_v12  ;;  %v7746_v12 = vld [vmem:[#allocation88_spill] sm:$0xff] }
 0x596   :  { %4419 = vmatpush1.bf16.msra.mxu0 %v7736_v63  ;;  %v7747_v63 = vld [vmem:[#allocation91_spill] sm:$0xff] }
 0x597   :  { %4421 = vmatprep.subr.bf16.mxu0 %v7737_v23  ;;  %v7748_v23 = vld [vmem:[#allocation90_spill] sm:$0xff] }
 0x598   :  { %4483 = vmatpush1.bf16.msra.mxu1 %v7738_v28  ;;  %v7749_v28 = vld [vmem:[#allocation93_spill] sm:$0xff] }
 0x599   :  { %4485 = vmatprep.subr.bf16.mxu1 %v7739_v29  ;;  %v7750_v29 = vld [vmem:[#allocation92_spill] sm:$0xff] }
 0x59a   :  { %4423 = vmatpush1.bf16.msra.mxu0 %v7740_v56  ;;  %v7751_v56 = vld [vmem:[#allocation95_spill] sm:$0xff] }
 0x59b   :  { %4425 = vmatprep.subr.bf16.mxu0 %v7741_v51  ;;  %v7752_v51 = vld [vmem:[#allocation94_spill] sm:$0xff] }
 0x59c   :  { %4487 = vmatpush1.bf16.msra.mxu1 %v7742_v0  ;;  %v7753_v0 = vld [vmem:[#allocation8_spill] sm:$0xff] }
 0x59d   :  { %4489 = vmatprep.subr.bf16.mxu1 %v7743_v13  ;;  %v7754_v13 = vld [vmem:[#allocation96_spill] sm:$0xff] }
 0x59e   :  { %4427 = vmatpush1.bf16.msra.mxu0 %v7744_v47  ;;  %v7755_v47 = vld [vmem:[#allocation9_spill] sm:$0xff] }
 0x59f   :  { %4429 = vmatprep.subr.bf16.mxu0 %v7745_v44 }
 0x5a0   :  { %4491 = vmatpush1.bf16.msra.mxu1 %v7746_v12 }
 0x5a1   :  { %4493 = vmatprep.subr.bf16.mxu1 %v7747_v63 }
 0x5a2   :  { %4431 = vmatpush1.bf16.msra.mxu0 %v7748_v23 }
 0x5a3   :  { %4433 = vmatprep.subr.bf16.mxu0 %v7749_v28 }
 0x5a4   :  { %4495 = vmatpush1.bf16.msra.mxu1 %v7750_v29 }
 0x5a5   :  { %4497 = vmatprep.subr.bf16.mxu1 %v7751_v56 }
 0x5a6   :  { %4435 = vmatpush1.bf16.msra.mxu0 %v7752_v51 }
 0x5a7   :  { %4501 = vmatprep.subr.bf16.mxu0 %v7753_v0 }
 0x5a8   :  { %4499 = vmatpush1.bf16.msra.mxu1 %v7754_v13 }
 0x5a9   :  { %4565 = vmatprep.subr.bf16.mxu1 %v7755_v47 }
 0x5fc   :  { %v1564_v44 = vpop.f32.mrb[14].mxu0  ;;  %v1635_v12 = vpop.f32.mrb[14].mxu1 }
 0x5fd   :  { %v1565_v63 = vadd.f32 %v1564_v44, %v7756_v40  ;;  %v1566_v19 = vpop.f32.mrb[15].mxu0  ;;  %v1637_v23 = vpop.f32.mrb[15].mxu1  ;;  %v1636_v0 = vadd.f32 %v1635_v12, %v6212_v38 }
 0x5fe   :  { %v1567_v28 = vadd.f32 %v1566_v19, %v6205_v59  ;;  %v1638_v51 = vadd.f32 %v1637_v23, %v6209_v2 }
 0x5ff   :  { %v3136_v16 = vmul.f32 -1.442695, %v1565_v63 }
 0x600   :  { %v3137_v29 = vmul.f32 -1.442695, %v1567_v28  ;;  %v3138_v56 = vmul.f32 -1.442695, %v1638_v51 }
 0x601   :  { %5411 = vpow2.f32 %v3136_v16 }
 0x602   :  { %5413 = vpow2.f32 %v3137_v29 }
 0x603   :  { %5415 = vpow2.f32 %v3138_v56 }
 0x604   :  { %5417 = vtanh.f32 %v1636_v0 }
 0x60b   :  { %v5412_v13 = vpop.eup %5411 }
 0x60c   :  { %v5414_v34 = vpop.eup %5413  ;;  %v1643_v47 = vadd.f32 1.0, %v5412_v13 }
 0x60d   :  { %v1649_v49 = vadd.f32 1.0, %v5414_v34  ;;  %v5416_v44 = vpop.eup %5415 }
 0x60e   :  { %5419 = vrcp.f32 %v1643_v47  ;;  %v5418_v40 = vpop.eup %5417  ;;  %v1656_v16 = vadd.f32 1.0, %v5416_v44 }
 0x60f   :  { %5421 = vrcp.f32 %v1649_v49 }
 0x610   :  { %5423 = vrcp.f32 %v1656_v16 }
 0x618   :  { %v5420_v19 = vpop.eup %5419 }
 0x619   :  { %v5422_v63 = vpop.eup %5421  ;;  %v1660_v28 = vmul.f32 %v5420_v19, %v5418_v40 }
 0x61a   :  { %v1659_v29 = vmul.f32 %v5422_v63, %v6501_v3  ;;  %v5424_v51 = vpop.eup %5423 }
 0x61c   :  { %v6644_v23 = vadd.f32 %v1660_v28, %v1659_v29 }
 0x61e   :  { %5425 = vtanh.f32 %v6644_v23 }
 0x628   :  { %v5426_v13 = vpop.eup %5425 }
 0x629   :  { %v1663_v56 = vmul.f32 %v5426_v13, %v5424_v51 }
 0x62b   :  { %1896 = vmatprep.mubr.f32.mxu0 %v1663_v56  ;;  %1967 = vmatprep.mubr.f32.mxu1 %v1663_v56 }
 0x63c   :  { %v1732_v34 = vpop.f32.mrb[16].mxu0 }
 0x63d   :  { %v3140_v49 = vmul.f32 -1.442695, %v1732_v34  ;;  %v1734_v0 = vpop.f32.mrb[17].mxu0 }
 0x63e   :  { %v3141_v47 = vmul.f32 -1.442695, %v1734_v0  ;;  %v1803_v12 = vpop.f32.mrb[16].mxu1 }
 0x63f   :  { %5427 = vpow2.f32 %v3140_v49  ;;  %v1805_v40 = vpop.f32.mrb[17].mxu1 }
 0x640   :  { %5429 = vpow2.f32 %v3141_v47  ;;  %v3142_v44 = vmul.f32 -1.442695, %v1805_v40 }
 0x642   :  { %5431 = vpow2.f32 %v3142_v44 }
 0x643   :  { %5433 = vtanh.f32 %v1803_v12  ;;  %v7758_v12 = vld [vmem:[#allocation13_spill] sm:$0xff] }
 0x649   :  { %v5428_v3 = vpop.eup %5427 }
 0x64a   :  { %v5430_v19 = vpop.eup %5429  ;;  %v1811_v63 = vadd.f32 1.0, %v5428_v3  ;;  %v7759_v3 = vld [vmem:[#allocation14_spill] sm:$0xff] }
 0x64b   :  { %v1817_v28 = vadd.f32 1.0, %v5430_v19  ;;  %v7760_v19 = vld [vmem:[#allocation19_spill] sm:$0xff] }
 0x64c   :  { %5435 = vrcp.f32 %v1811_v63  ;;  %v5432_v16 = vpop.eup %5431  ;;  %v7761_v63 = vld [vmem:[#allocation20_spill] sm:$0xff] }
 0x64d   :  { %5437 = vrcp.f32 %v1817_v28  ;;  %v5434_v29 = vpop.eup %5433  ;;  %v1824_v13 = vadd.f32 1.0, %v5432_v16  ;;  %v7762_v28 = vld [vmem:[#allocation17_spill] sm:$0xff]  ;;  %v7763_v16 = vld [vmem:[#allocation18_spill] sm:$0xff] }
 0x64f   :  { %5439 = vrcp.f32 %v1824_v13  ;;  %v7766_v13 = vld [vmem:[#allocation21_spill] sm:$0xff] }
 0x656   :  { %v5436_v51 = vpop.eup %5435 }
 0x657   :  { %v5438_v56 = vpop.eup %5437  ;;  %v1828_v34 = vmul.f32 %v5436_v51, %v5434_v29  ;;  %v7764_v29 = vld [vmem:[#allocation23_spill] sm:$0xff]  ;;  %v7765_v51 = vld [vmem:[#allocation24_spill] sm:$0xff] }
 0x658   :  { %v1827_v0 = vmul.f32 %v5438_v56, %v6505_v39  ;;  %v7757_v39 = vld [vmem:[#allocation16_spill] sm:$0xff]  ;;  %v7767_v56 = vld [vmem:[#allocation22_spill] sm:$0xff] }
 0x659   :  { %v5440_v47 = vpop.eup %5439 }
 0x65a   :  { %v6648_v49 = vadd.f32 %v1828_v34, %v1827_v0  ;;  %v7768_v34 = vld [vmem:[#allocation27_spill] sm:$0xff]  ;;  %v7769_v0 = vld [vmem:[#allocation28_spill] sm:$0xff] }
 0x65c   :  { %5441 = vtanh.f32 %v6648_v49 }
 0x666   :  { %v5442_v40 = vpop.eup %5441 }
 0x667   :  { %v1831_v44 = vmul.f32 %v5442_v40, %v5440_v47  ;;  %v7770_v47 = vld [vmem:[#allocation25_spill] sm:$0xff]  ;;  %v7771_v40 = vld [vmem:[#allocation26_spill] sm:$0xff] }
 0x669   :  { %1897 = vmatmul.mubr.f32.vlgmr.msra.gmra.mrb[18].mxu0 %v1831_v44  ;;  %1968 = vmatmul.mubr.f32.vlgmr.msra.gmra.mrb[18].mxu1 %v1831_v44 }
 0x66a   :  { %4503 = vmatpush1.bf16.msra.mxu0 %v5677_v8  ;;  %2064 = vmatprep.mubr.f32.mxu0 %v1831_v44 }
 0x66b   :  { %2135 = vmatprep.mubr.f32.mxu1 %v1831_v44  ;;  %4505 = vmatprep.subr.bf16.mxu0 %v5679_v9  ;;  %v7772_v44 = vld [vmem:[#allocation30_spill] sm:$0xff] }
 0x66c   :  { %4567 = vmatpush1.bf16.msra.mxu1 %v5690_v25 }
 0x66d   :  { %4569 = vmatprep.subr.bf16.mxu1 %v5700_v33 }
 0x66e   :  { %4507 = vmatpush1.bf16.msra.mxu0 %v5683_v14 }
 0x66f   :  { %4509 = vmatprep.subr.bf16.mxu0 %v5686_v17 }
 0x670   :  { %4571 = vmatpush1.bf16.msra.mxu1 %v5702_v37 }
 0x671   :  { %4573 = vmatprep.subr.bf16.mxu1 %v5708_v45 }
 0x672   :  { %4511 = vmatpush1.bf16.msra.mxu0 %v5693_v26 }
 0x673   :  { %4513 = vmatprep.subr.bf16.mxu0 %v5697_v30 }
 0x674   :  { %4575 = vmatpush1.bf16.msra.mxu1 %v5714_v48 }
 0x675   :  { %4577 = vmatprep.subr.bf16.mxu1 %v5717_v52 }
 0x676   :  { %4515 = vmatpush1.bf16.msra.mxu0 %v5706_v42 }
 0x677   :  { %4517 = vmatprep.subr.bf16.mxu0 %v5711_v46 }
 0x678   :  { %4579 = vmatpush1.bf16.msra.mxu1 %v5726_v62 }
 0x679   :  { %4581 = vmatprep.subr.bf16.mxu1 %v5729_v1 }
 0x67a   :  { %4519 = vmatpush1.bf16.msra.mxu0 %v5720_v55 }
 0x67b   :  { %4521 = vmatprep.subr.bf16.mxu0 %v5723_v58 }
 0x67c   :  { %4583 = vmatpush1.bf16.msra.mxu1 %v5738_v15 }
 0x67d   :  { %4585 = vmatprep.subr.bf16.mxu1 %v5741_v18 }
 0x67e   :  { %4523 = vmatpush1.bf16.msra.mxu0 %v5732_v7 }
 0x67f   :  { %4525 = vmatprep.subr.bf16.mxu0 %v5735_v10 }
 0x680   :  { %4587 = vmatpush1.bf16.msra.mxu1 %v5750_v32 }
 0x681   :  { %4589 = vmatprep.subr.bf16.mxu1 %v5753_v35 }
 0x682   :  { %4527 = vmatpush1.bf16.msra.mxu0 %v5744_v24 }
 0x683   :  { %4529 = vmatprep.subr.bf16.mxu0 %v5747_v27 }
 0x684   :  { %4591 = vmatpush1.bf16.msra.mxu1 %v5762_v50 }
 0x685   :  { %4593 = vmatprep.subr.bf16.mxu1 %v5765_v53 }
 0x686   :  { %4531 = vmatpush1.bf16.msra.mxu0 %v5756_v41 }
 0x687   :  { %4533 = vmatprep.subr.bf16.mxu0 %v5759_v43 }
 0x688   :  { %4595 = vmatpush1.bf16.msra.mxu1 %v5774_v5 }
 0x689   :  { %4597 = vmatprep.subr.bf16.mxu1 %v5777_v11 }
 0x68a   :  { %4535 = vmatpush1.bf16.msra.mxu0 %v5768_v60 }
 0x68b   :  { %4537 = vmatprep.subr.bf16.mxu0 %v5771_v61 }
 0x68c   :  { %4599 = vmatpush1.bf16.msra.mxu1 %v5786_v31 }
 0x68d   :  { %4601 = vmatprep.subr.bf16.mxu1 %v5789_v36 }
 0x68e   :  { %4539 = vmatpush1.bf16.msra.mxu0 %v5780_v20 }
 0x68f   :  { %4541 = vmatprep.subr.bf16.mxu0 %v5783_v21 }
 0x690   :  { %4603 = vmatpush1.bf16.msra.mxu1 %v5798_v57 }
 0x691   :  { %4605 = vmatprep.subr.bf16.mxu1 %v7418_v4 }
 0x692   :  { %4543 = vmatpush1.bf16.msra.mxu0 %v7419_v22 }
 0x693   :  { %4545 = vmatprep.subr.bf16.mxu0 %v7420_v54 }
 0x694   :  { %4607 = vmatpush1.bf16.msra.mxu1 %v7421_v6 }
 0x695   :  { %4609 = vmatprep.subr.bf16.mxu1 %v7757_v39 }
 0x696   :  { %4547 = vmatpush1.bf16.msra.mxu0 %v7758_v12 }
 0x697   :  { %4549 = vmatprep.subr.bf16.mxu0 %v7759_v3 }
 0x698   :  { %4611 = vmatpush1.bf16.msra.mxu1 %v7760_v19 }
 0x699   :  { %4613 = vmatprep.subr.bf16.mxu1 %v7761_v63  ;;  %v7842_v63 = vld [vmem:[#allocation12_spill] sm:$0xff] }
 0x69a   :  { %4551 = vmatpush1.bf16.msra.mxu0 %v7762_v28  ;;  %v7773_v28 = vld [vmem:[#allocation32_spill] sm:$0xff] }
 0x69b   :  { %4553 = vmatprep.subr.bf16.mxu0 %v7763_v16  ;;  %v7774_v16 = vld [vmem:[#allocation29_spill] sm:$0xff] }
 0x69c   :  { %4615 = vmatpush1.bf16.msra.mxu1 %v7764_v29  ;;  %v7784_v29 = vld [vmem:[#allocation42_spill] sm:$0xff] }
 0x69d   :  { %4617 = vmatprep.subr.bf16.mxu1 %v7765_v51  ;;  %v7775_v51 = vld [vmem:[#allocation31_spill] sm:$0xff] }
 0x69e   :  { %4555 = vmatpush1.bf16.msra.mxu0 %v7766_v13  ;;  %v3146_v13 = vld [vmem:[%s7138_s0 + $0x28] sm:$0xff] }
 0x69f   :  { %4557 = vmatprep.subr.bf16.mxu0 %v7767_v56  ;;  %v7776_v56 = vld [vmem:[#allocation34_spill] sm:$0xff] }
 0x6a0   :  { %4619 = vmatpush1.bf16.msra.mxu1 %v7768_v34  ;;  %v7783_v34 = vld [vmem:[#allocation39_spill] sm:$0xff] }
 0x6a1   :  { %4621 = vmatprep.subr.bf16.mxu1 %v7769_v0  ;;  %v7777_v0 = vld [vmem:[#allocation36_spill] sm:$0xff] }
 0x6a2   :  { %4559 = vmatpush1.bf16.msra.mxu0 %v7770_v47  ;;  %v7778_v47 = vld [vmem:[#allocation33_spill] sm:$0xff] }
 0x6a3   :  { %4561 = vmatprep.subr.bf16.mxu0 %v7771_v40  ;;  %v7779_v40 = vld [vmem:[#allocation35_spill] sm:$0xff] }
 0x6a4   :  { %4623 = vmatpush1.bf16.msra.mxu1 %v7772_v44  ;;  %v7780_v44 = vld [vmem:[#allocation38_spill] sm:$0xff] }
 0x6a5   :  { %4625 = vmatprep.subr.bf16.mxu1 %v7773_v28  ;;  %v7781_v28 = vld [vmem:[#allocation40_spill] sm:$0xff] }
 0x6a6   :  { %4563 = vmatpush1.bf16.msra.mxu0 %v7774_v16  ;;  %v7782_v16 = vld [vmem:[#allocation37_spill] sm:$0xff] }
 0x6a7   :  { %4629 = vmatprep.subr.bf16.mxu0 %v7775_v51  ;;  %v7785_v51 = vld [vmem:[#allocation44_spill] sm:$0xff] }
 0x6a8   :  { %4627 = vmatpush1.bf16.msra.mxu1 %v7776_v56  ;;  %v7786_v56 = vld [vmem:[#allocation41_spill] sm:$0xff] }
 0x6a9   :  { %2065 = vmatmul.mubr.f32.vlgmr.msra.gmra.mrb[20].mxu0 %v3146_v13  ;;  %4693 = vmatprep.subr.bf16.mxu1 %v7777_v0  ;;  %v7787_v0 = vld [vmem:[#allocation43_spill] sm:$0xff] }
 0x6aa   :  { %4631 = vmatpush1.bf16.msra.mxu0 %v7778_v47  ;;  %v7788_v47 = vld [vmem:[#allocation46_spill] sm:$0xff] }
 0x6ab   :  { %2136 = vmatmul.mubr.f32.vlgmr.msra.gmra.mrb[20].mxu1 %v3146_v13  ;;  %4633 = vmatprep.subr.bf16.mxu0 %v7779_v40  ;;  %v7789_v13 = vld [vmem:[#allocation48_spill] sm:$0xff]  ;;  %v7790_v40 = vld [vmem:[#allocation45_spill] sm:$0xff] }
 0x6ac   :  { %4695 = vmatpush1.bf16.msra.mxu1 %v7780_v44  ;;  %v7791_v44 = vld [vmem:[#allocation47_spill] sm:$0xff] }
 0x6ad   :  { %4697 = vmatprep.subr.bf16.mxu1 %v7781_v28  ;;  %v7792_v28 = vld [vmem:[#allocation50_spill] sm:$0xff] }
 0x6ae   :  { %4635 = vmatpush1.bf16.msra.mxu0 %v7782_v16  ;;  %v7793_v16 = vld [vmem:[#allocation51_spill] sm:$0xff] }
 0x6af   :  { %4637 = vmatprep.subr.bf16.mxu0 %v7783_v34  ;;  %v7794_v34 = vld [vmem:[#allocation49_spill] sm:$0xff] }
 0x6b0   :  { %4699 = vmatpush1.bf16.msra.mxu1 %v7784_v29  ;;  %v7795_v29 = vld [vmem:[#allocation53_spill] sm:$0xff] }
 0x6b1   :  { %4701 = vmatprep.subr.bf16.mxu1 %v7785_v51  ;;  %v7796_v51 = vld [vmem:[#allocation52_spill] sm:$0xff] }
 0x6b2   :  { %4639 = vmatpush1.bf16.msra.mxu0 %v7786_v56  ;;  %v7797_v56 = vld [vmem:[#allocation55_spill] sm:$0xff] }
 0x6b3   :  { %4641 = vmatprep.subr.bf16.mxu0 %v7787_v0  ;;  %v7798_v0 = vld [vmem:[#allocation54_spill] sm:$0xff] }
 0x6b4   :  { %4703 = vmatpush1.bf16.msra.mxu1 %v7788_v47  ;;  %v7799_v47 = vld [vmem:[#allocation57_spill] sm:$0xff] }
 0x6b5   :  { %4705 = vmatprep.subr.bf16.mxu1 %v7789_v13  ;;  %v7800_v13 = vld [vmem:[#allocation56_spill] sm:$0xff] }
 0x6b6   :  { %4643 = vmatpush1.bf16.msra.mxu0 %v7790_v40  ;;  %v7801_v40 = vld [vmem:[#allocation59_spill] sm:$0xff] }
 0x6b7   :  { %4645 = vmatprep.subr.bf16.mxu0 %v7791_v44  ;;  %v7802_v44 = vld [vmem:[#allocation58_spill] sm:$0xff] }
 0x6b8   :  { %4707 = vmatpush1.bf16.msra.mxu1 %v7792_v28  ;;  %v7803_v28 = vld [vmem:[#allocation61_spill] sm:$0xff] }
 0x6b9   :  { %4709 = vmatprep.subr.bf16.mxu1 %v7793_v16  ;;  %v7804_v16 = vld [vmem:[#allocation60_spill] sm:$0xff] }
 0x6ba   :  { %4647 = vmatpush1.bf16.msra.mxu0 %v7794_v34  ;;  %v7805_v34 = vld [vmem:[#allocation63_spill] sm:$0xff] }
 0x6bb   :  { %4649 = vmatprep.subr.bf16.mxu0 %v7795_v29  ;;  %v7806_v29 = vld [vmem:[#allocation62_spill] sm:$0xff] }
 0x6bc   :  { %4711 = vmatpush1.bf16.msra.mxu1 %v7796_v51  ;;  %v7807_v51 = vld [vmem:[#allocation65_spill] sm:$0xff] }
 0x6bd   :  { %4713 = vmatprep.subr.bf16.mxu1 %v7797_v56  ;;  %v7808_v56 = vld [vmem:[#allocation64_spill] sm:$0xff] }
 0x6be   :  { %4651 = vmatpush1.bf16.msra.mxu0 %v7798_v0  ;;  %v7809_v0 = vld [vmem:[#allocation67_spill] sm:$0xff] }
 0x6bf   :  { %4653 = vmatprep.subr.bf16.mxu0 %v7799_v47  ;;  %v7810_v47 = vld [vmem:[#allocation66_spill] sm:$0xff] }
 0x6c0   :  { %4715 = vmatpush1.bf16.msra.mxu1 %v7800_v13  ;;  %v7811_v13 = vld [vmem:[#allocation69_spill] sm:$0xff] }
 0x6c1   :  { %4717 = vmatprep.subr.bf16.mxu1 %v7801_v40  ;;  %v7812_v40 = vld [vmem:[#allocation68_spill] sm:$0xff] }
 0x6c2   :  { %4655 = vmatpush1.bf16.msra.mxu0 %v7802_v44  ;;  %v7813_v44 = vld [vmem:[#allocation71_spill] sm:$0xff] }
 0x6c3   :  { %4657 = vmatprep.subr.bf16.mxu0 %v7803_v28  ;;  %v7814_v28 = vld [vmem:[#allocation70_spill] sm:$0xff] }
 0x6c4   :  { %4719 = vmatpush1.bf16.msra.mxu1 %v7804_v16  ;;  %v7815_v16 = vld [vmem:[#allocation73_spill] sm:$0xff] }
 0x6c5   :  { %4721 = vmatprep.subr.bf16.mxu1 %v7805_v34  ;;  %v7816_v34 = vld [vmem:[#allocation72_spill] sm:$0xff] }
 0x6c6   :  { %4659 = vmatpush1.bf16.msra.mxu0 %v7806_v29  ;;  %v7817_v29 = vld [vmem:[#allocation75_spill] sm:$0xff] }
 0x6c7   :  { %4661 = vmatprep.subr.bf16.mxu0 %v7807_v51  ;;  %v7818_v51 = vld [vmem:[#allocation74_spill] sm:$0xff] }
 0x6c8   :  { %4723 = vmatpush1.bf16.msra.mxu1 %v7808_v56  ;;  %v7819_v56 = vld [vmem:[#allocation77_spill] sm:$0xff] }
 0x6c9   :  { %4725 = vmatprep.subr.bf16.mxu1 %v7809_v0  ;;  %v7820_v0 = vld [vmem:[#allocation76_spill] sm:$0xff] }
 0x6ca   :  { %4663 = vmatpush1.bf16.msra.mxu0 %v7810_v47  ;;  %v7821_v47 = vld [vmem:[#allocation79_spill] sm:$0xff] }
 0x6cb   :  { %4665 = vmatprep.subr.bf16.mxu0 %v7811_v13  ;;  %v7822_v13 = vld [vmem:[#allocation78_spill] sm:$0xff] }
 0x6cc   :  { %4727 = vmatpush1.bf16.msra.mxu1 %v7812_v40  ;;  %v7823_v40 = vld [vmem:[#allocation81_spill] sm:$0xff] }
 0x6cd   :  { %4729 = vmatprep.subr.bf16.mxu1 %v7813_v44  ;;  %v7824_v44 = vld [vmem:[#allocation80_spill] sm:$0xff] }
 0x6ce   :  { %4667 = vmatpush1.bf16.msra.mxu0 %v7814_v28  ;;  %v7825_v28 = vld [vmem:[#allocation83_spill] sm:$0xff] }
 0x6cf   :  { %4669 = vmatprep.subr.bf16.mxu0 %v7815_v16  ;;  %v7826_v16 = vld [vmem:[#allocation82_spill] sm:$0xff] }
 0x6d0   :  { %4731 = vmatpush1.bf16.msra.mxu1 %v7816_v34  ;;  %v7827_v34 = vld [vmem:[#allocation85_spill] sm:$0xff] }
 0x6d1   :  { %4733 = vmatprep.subr.bf16.mxu1 %v7817_v29  ;;  %v7828_v29 = vld [vmem:[#allocation84_spill] sm:$0xff] }
 0x6d2   :  { %4671 = vmatpush1.bf16.msra.mxu0 %v7818_v51  ;;  %v7829_v51 = vld [vmem:[#allocation87_spill] sm:$0xff] }
 0x6d3   :  { %4673 = vmatprep.subr.bf16.mxu0 %v7819_v56  ;;  %v7830_v56 = vld [vmem:[#allocation86_spill] sm:$0xff] }
 0x6d4   :  { %4735 = vmatpush1.bf16.msra.mxu1 %v7820_v0  ;;  %v7831_v0 = vld [vmem:[#allocation89_spill] sm:$0xff] }
 0x6d5   :  { %4737 = vmatprep.subr.bf16.mxu1 %v7821_v47  ;;  %v7832_v47 = vld [vmem:[#allocation88_spill] sm:$0xff] }
 0x6d6   :  { %4675 = vmatpush1.bf16.msra.mxu0 %v7822_v13  ;;  %v7833_v13 = vld [vmem:[#allocation91_spill] sm:$0xff] }
 0x6d7   :  { %4677 = vmatprep.subr.bf16.mxu0 %v7823_v40  ;;  %v7834_v40 = vld [vmem:[#allocation90_spill] sm:$0xff] }
 0x6d8   :  { %4739 = vmatpush1.bf16.msra.mxu1 %v7824_v44  ;;  %v7835_v44 = vld [vmem:[#allocation93_spill] sm:$0xff] }
 0x6d9   :  { %4741 = vmatprep.subr.bf16.mxu1 %v7825_v28  ;;  %v7836_v28 = vld [vmem:[#allocation92_spill] sm:$0xff] }
 0x6da   :  { %4679 = vmatpush1.bf16.msra.mxu0 %v7826_v16  ;;  %v7837_v16 = vld [vmem:[#allocation95_spill] sm:$0xff] }
 0x6db   :  { %4681 = vmatprep.subr.bf16.mxu0 %v7827_v34  ;;  %v7838_v34 = vld [vmem:[#allocation94_spill] sm:$0xff] }
 0x6dc   :  { %4743 = vmatpush1.bf16.msra.mxu1 %v7828_v29  ;;  %v7839_v29 = vld [vmem:[#allocation8_spill] sm:$0xff] }
 0x6dd   :  { %4745 = vmatprep.subr.bf16.mxu1 %v7829_v51  ;;  %v7840_v51 = vld [vmem:[#allocation96_spill] sm:$0xff] }
 0x6de   :  { %4683 = vmatpush1.bf16.msra.mxu0 %v7830_v56  ;;  %v7841_v56 = vld [vmem:[#allocation9_spill] sm:$0xff] }
 0x6df   :  { %4685 = vmatprep.subr.bf16.mxu0 %v7831_v0 }
 0x6e0   :  { %4747 = vmatpush1.bf16.msra.mxu1 %v7832_v47 }
 0x6e1   :  { %4749 = vmatprep.subr.bf16.mxu1 %v7833_v13 }
 0x6e2   :  { %4687 = vmatpush1.bf16.msra.mxu0 %v7834_v40 }
 0x6e3   :  { %4689 = vmatprep.subr.bf16.mxu0 %v7835_v44 }
 0x6e4   :  { %4751 = vmatpush1.bf16.msra.mxu1 %v7836_v28 }
 0x6e5   :  { %4753 = vmatprep.subr.bf16.mxu1 %v7837_v16 }
 0x6e6   :  { %4691 = vmatpush1.bf16.msra.mxu0 %v7838_v34 }
 0x6e7   :  { %4757 = vmatprep.subr.bf16.mxu0 %v7839_v29 }
 0x6e8   :  { %4755 = vmatpush1.bf16.msra.mxu1 %v7840_v51 }
 0x6e9   :  { %4821 = vmatprep.subr.bf16.mxu1 %v7841_v56 }
 0x73c   :  { %v1898_v0 = vpop.f32.mrb[18].mxu0  ;;  %v1969_v47 = vpop.f32.mrb[18].mxu1 }
 0x73d   :  { %v1899_v13 = vadd.f32 %v1898_v0, %v7842_v63  ;;  %v1900_v19 = vpop.f32.mrb[19].mxu0  ;;  %v1971_v40 = vpop.f32.mrb[19].mxu1  ;;  %v1970_v29 = vadd.f32 %v1969_v47, %v6212_v38 }
 0x73e   :  { %v1901_v44 = vadd.f32 %v1900_v19, %v6205_v59  ;;  %v1972_v34 = vadd.f32 %v1971_v40, %v6209_v2 }
 0x73f   :  { %v3143_v3 = vmul.f32 -1.442695, %v1899_v13 }
 0x740   :  { %v3144_v28 = vmul.f32 -1.442695, %v1901_v44  ;;  %v3145_v16 = vmul.f32 -1.442695, %v1972_v34 }
 0x741   :  { %5443 = vpow2.f32 %v3143_v3 }
 0x742   :  { %5445 = vpow2.f32 %v3144_v28 }
 0x743   :  { %5447 = vpow2.f32 %v3145_v16 }
 0x744   :  { %5449 = vtanh.f32 %v1970_v29 }
 0x74b   :  { %v5444_v51 = vpop.eup %5443 }
 0x74c   :  { %v5446_v12 = vpop.eup %5445  ;;  %v1977_v56 = vadd.f32 1.0, %v5444_v51 }
 0x74d   :  { %v1983_v39 = vadd.f32 1.0, %v5446_v12  ;;  %v5448_v0 = vpop.eup %5447 }
 0x74e   :  { %5451 = vrcp.f32 %v1977_v56  ;;  %v5450_v63 = vpop.eup %5449  ;;  %v1990_v3 = vadd.f32 1.0, %v5448_v0 }
 0x74f   :  { %5453 = vrcp.f32 %v1983_v39 }
 0x750   :  { %5455 = vrcp.f32 %v1990_v3 }
 0x758   :  { %v5452_v19 = vpop.eup %5451 }
 0x759   :  { %v5454_v13 = vpop.eup %5453  ;;  %v1994_v44 = vmul.f32 %v5452_v19, %v5450_v63 }
 0x75a   :  { %v1993_v28 = vmul.f32 %v5454_v13, %v6644_v23  ;;  %v5456_v34 = vpop.eup %5455 }
 0x75c   :  { %v6787_v40 = vadd.f32 %v1994_v44, %v1993_v28 }
 0x75e   :  { %5457 = vtanh.f32 %v6787_v40 }
 0x768   :  { %v5458_v51 = vpop.eup %5457 }
 0x769   :  { %v1997_v16 = vmul.f32 %v5458_v51, %v5456_v34 }
 0x76b   :  { %2230 = vmatprep.mubr.f32.mxu0 %v1997_v16  ;;  %2301 = vmatprep.mubr.f32.mxu1 %v1997_v16 }
 0x77c   :  { %v2066_v12 = vpop.f32.mrb[20].mxu0 }
 0x77d   :  { %v3147_v39 = vmul.f32 -1.442695, %v2066_v12  ;;  %v2068_v29 = vpop.f32.mrb[21].mxu0 }
 0x77e   :  { %v3148_v56 = vmul.f32 -1.442695, %v2068_v29  ;;  %v2137_v47 = vpop.f32.mrb[20].mxu1 }
 0x77f   :  { %5459 = vpow2.f32 %v3147_v39  ;;  %v2139_v63 = vpop.f32.mrb[21].mxu1 }
 0x780   :  { %5461 = vpow2.f32 %v3148_v56  ;;  %v3149_v0 = vmul.f32 -1.442695, %v2139_v63 }
 0x782   :  { %5463 = vpow2.f32 %v3149_v0 }
 0x783   :  { %5465 = vtanh.f32 %v2137_v47  ;;  %v7844_v47 = vld [vmem:[#allocation13_spill] sm:$0xff] }
 0x789   :  { %v5460_v23 = vpop.eup %5459 }
 0x78a   :  { %v5462_v19 = vpop.eup %5461  ;;  %v2145_v13 = vadd.f32 1.0, %v5460_v23  ;;  %v7845_v23 = vld [vmem:[#allocation14_spill] sm:$0xff] }
 0x78b   :  { %v2151_v44 = vadd.f32 1.0, %v5462_v19  ;;  %v7846_v19 = vld [vmem:[#allocation19_spill] sm:$0xff] }
 0x78c   :  { %5467 = vrcp.f32 %v2145_v13  ;;  %v5464_v3 = vpop.eup %5463  ;;  %v7847_v13 = vld [vmem:[#allocation20_spill] sm:$0xff] }
 0x78d   :  { %5469 = vrcp.f32 %v2151_v44  ;;  %v5466_v28 = vpop.eup %5465  ;;  %v2158_v51 = vadd.f32 1.0, %v5464_v3  ;;  %v7848_v44 = vld [vmem:[#allocation17_spill] sm:$0xff]  ;;  %v7849_v3 = vld [vmem:[#allocation18_spill] sm:$0xff] }
 0x78f   :  { %5471 = vrcp.f32 %v2158_v51  ;;  %v7852_v51 = vld [vmem:[#allocation21_spill] sm:$0xff] }
 0x796   :  { %v5468_v34 = vpop.eup %5467 }
 0x797   :  { %v5470_v16 = vpop.eup %5469  ;;  %v2162_v12 = vmul.f32 %v5468_v34, %v5466_v28  ;;  %v7850_v28 = vld [vmem:[#allocation23_spill] sm:$0xff]  ;;  %v7851_v34 = vld [vmem:[#allocation24_spill] sm:$0xff] }
 0x798   :  { %v2161_v29 = vmul.f32 %v5470_v16, %v6648_v49  ;;  %v7843_v49 = vld [vmem:[#allocation16_spill] sm:$0xff]  ;;  %v7853_v16 = vld [vmem:[#allocation22_spill] sm:$0xff] }
 0x799   :  { %v5472_v56 = vpop.eup %5471 }
 0x79a   :  { %v6791_v39 = vadd.f32 %v2162_v12, %v2161_v29  ;;  %v7854_v12 = vld [vmem:[#allocation27_spill] sm:$0xff]  ;;  %v7855_v29 = vld [vmem:[#allocation28_spill] sm:$0xff] }
 0x79c   :  { %5473 = vtanh.f32 %v6791_v39 }
 0x7a6   :  { %v5474_v63 = vpop.eup %5473 }
 0x7a7   :  { %v2165_v0 = vmul.f32 %v5474_v63, %v5472_v56  ;;  %v7856_v56 = vld [vmem:[#allocation25_spill] sm:$0xff]  ;;  %v7857_v63 = vld [vmem:[#allocation26_spill] sm:$0xff] }
 0x7a9   :  { %2231 = vmatmul.mubr.f32.vlgmr.msra.gmra.mrb[22].mxu0 %v2165_v0  ;;  %2302 = vmatmul.mubr.f32.vlgmr.msra.gmra.mrb[22].mxu1 %v2165_v0 }
 0x7aa   :  { %4759 = vmatpush1.bf16.msra.mxu0 %v5677_v8  ;;  %2398 = vmatprep.mubr.f32.mxu0 %v2165_v0 }
 0x7ab   :  { %2469 = vmatprep.mubr.f32.mxu1 %v2165_v0  ;;  %4761 = vmatprep.subr.bf16.mxu0 %v5679_v9  ;;  %v7858_v0 = vld [vmem:[#allocation30_spill] sm:$0xff] }
 0x7ac   :  { %4823 = vmatpush1.bf16.msra.mxu1 %v5690_v25 }
 0x7ad   :  { %4825 = vmatprep.subr.bf16.mxu1 %v5700_v33 }
 0x7ae   :  { %4763 = vmatpush1.bf16.msra.mxu0 %v5683_v14 }
 0x7af   :  { %4765 = vmatprep.subr.bf16.mxu0 %v5686_v17 }
 0x7b0   :  { %4827 = vmatpush1.bf16.msra.mxu1 %v5702_v37 }
 0x7b1   :  { %4829 = vmatprep.subr.bf16.mxu1 %v5708_v45 }
 0x7b2   :  { %4767 = vmatpush1.bf16.msra.mxu0 %v5693_v26 }
 0x7b3   :  { %4769 = vmatprep.subr.bf16.mxu0 %v5697_v30 }
 0x7b4   :  { %4831 = vmatpush1.bf16.msra.mxu1 %v5714_v48 }
 0x7b5   :  { %4833 = vmatprep.subr.bf16.mxu1 %v5717_v52 }
 0x7b6   :  { %4771 = vmatpush1.bf16.msra.mxu0 %v5706_v42 }
 0x7b7   :  { %4773 = vmatprep.subr.bf16.mxu0 %v5711_v46 }
 0x7b8   :  { %4835 = vmatpush1.bf16.msra.mxu1 %v5726_v62 }
 0x7b9   :  { %4837 = vmatprep.subr.bf16.mxu1 %v5729_v1 }
 0x7ba   :  { %4775 = vmatpush1.bf16.msra.mxu0 %v5720_v55 }
 0x7bb   :  { %4777 = vmatprep.subr.bf16.mxu0 %v5723_v58 }
 0x7bc   :  { %4839 = vmatpush1.bf16.msra.mxu1 %v5738_v15 }
 0x7bd   :  { %4841 = vmatprep.subr.bf16.mxu1 %v5741_v18 }
 0x7be   :  { %4779 = vmatpush1.bf16.msra.mxu0 %v5732_v7 }
 0x7bf   :  { %4781 = vmatprep.subr.bf16.mxu0 %v5735_v10 }
 0x7c0   :  { %4843 = vmatpush1.bf16.msra.mxu1 %v5750_v32 }
 0x7c1   :  { %4845 = vmatprep.subr.bf16.mxu1 %v5753_v35 }
 0x7c2   :  { %4783 = vmatpush1.bf16.msra.mxu0 %v5744_v24 }
 0x7c3   :  { %4785 = vmatprep.subr.bf16.mxu0 %v5747_v27 }
 0x7c4   :  { %4847 = vmatpush1.bf16.msra.mxu1 %v5762_v50 }
 0x7c5   :  { %4849 = vmatprep.subr.bf16.mxu1 %v5765_v53 }
 0x7c6   :  { %4787 = vmatpush1.bf16.msra.mxu0 %v5756_v41 }
 0x7c7   :  { %4789 = vmatprep.subr.bf16.mxu0 %v5759_v43 }
 0x7c8   :  { %4851 = vmatpush1.bf16.msra.mxu1 %v5774_v5 }
 0x7c9   :  { %4853 = vmatprep.subr.bf16.mxu1 %v5777_v11 }
 0x7ca   :  { %4791 = vmatpush1.bf16.msra.mxu0 %v5768_v60 }
 0x7cb   :  { %4793 = vmatprep.subr.bf16.mxu0 %v5771_v61 }
 0x7cc   :  { %4855 = vmatpush1.bf16.msra.mxu1 %v5786_v31 }
 0x7cd   :  { %4857 = vmatprep.subr.bf16.mxu1 %v5789_v36 }
 0x7ce   :  { %4795 = vmatpush1.bf16.msra.mxu0 %v5780_v20 }
 0x7cf   :  { %4797 = vmatprep.subr.bf16.mxu0 %v5783_v21 }
 0x7d0   :  { %4859 = vmatpush1.bf16.msra.mxu1 %v5798_v57 }
 0x7d1   :  { %4861 = vmatprep.subr.bf16.mxu1 %v7418_v4 }
 0x7d2   :  { %4799 = vmatpush1.bf16.msra.mxu0 %v7419_v22 }
 0x7d3   :  { %4801 = vmatprep.subr.bf16.mxu0 %v7420_v54 }
 0x7d4   :  { %4863 = vmatpush1.bf16.msra.mxu1 %v7421_v6 }
 0x7d5   :  { %4865 = vmatprep.subr.bf16.mxu1 %v7843_v49 }
 0x7d6   :  { %4803 = vmatpush1.bf16.msra.mxu0 %v7844_v47 }
 0x7d7   :  { %4805 = vmatprep.subr.bf16.mxu0 %v7845_v23 }
 0x7d8   :  { %4867 = vmatpush1.bf16.msra.mxu1 %v7846_v19 }
 0x7d9   :  { %4869 = vmatprep.subr.bf16.mxu1 %v7847_v13  ;;  %v7928_v13 = vld [vmem:[#allocation12_spill] sm:$0xff] }
 0x7da   :  { %4807 = vmatpush1.bf16.msra.mxu0 %v7848_v44  ;;  %v7859_v44 = vld [vmem:[#allocation32_spill] sm:$0xff] }
 0x7db   :  { %4809 = vmatprep.subr.bf16.mxu0 %v7849_v3  ;;  %v7860_v3 = vld [vmem:[#allocation29_spill] sm:$0xff] }
 0x7dc   :  { %4871 = vmatpush1.bf16.msra.mxu1 %v7850_v28  ;;  %v7870_v28 = vld [vmem:[#allocation42_spill] sm:$0xff] }
 0x7dd   :  { %4873 = vmatprep.subr.bf16.mxu1 %v7851_v34  ;;  %v7861_v34 = vld [vmem:[#allocation31_spill] sm:$0xff] }
 0x7de   :  { %4811 = vmatpush1.bf16.msra.mxu0 %v7852_v51  ;;  %v3153_v51 = vld [vmem:[%s7138_s0 + $0x30] sm:$0xff] }
 0x7df   :  { %4813 = vmatprep.subr.bf16.mxu0 %v7853_v16  ;;  %v7862_v16 = vld [vmem:[#allocation34_spill] sm:$0xff] }
 0x7e0   :  { %4875 = vmatpush1.bf16.msra.mxu1 %v7854_v12  ;;  %v7869_v12 = vld [vmem:[#allocation39_spill] sm:$0xff] }
 0x7e1   :  { %4877 = vmatprep.subr.bf16.mxu1 %v7855_v29  ;;  %v7863_v29 = vld [vmem:[#allocation36_spill] sm:$0xff] }
 0x7e2   :  { %4815 = vmatpush1.bf16.msra.mxu0 %v7856_v56  ;;  %v7864_v56 = vld [vmem:[#allocation33_spill] sm:$0xff] }
 0x7e3   :  { %4817 = vmatprep.subr.bf16.mxu0 %v7857_v63  ;;  %v7865_v63 = vld [vmem:[#allocation35_spill] sm:$0xff] }
 0x7e4   :  { %4879 = vmatpush1.bf16.msra.mxu1 %v7858_v0  ;;  %v7866_v0 = vld [vmem:[#allocation38_spill] sm:$0xff] }
 0x7e5   :  { %4881 = vmatprep.subr.bf16.mxu1 %v7859_v44  ;;  %v7867_v44 = vld [vmem:[#allocation40_spill] sm:$0xff] }
 0x7e6   :  { %4819 = vmatpush1.bf16.msra.mxu0 %v7860_v3  ;;  %v7868_v3 = vld [vmem:[#allocation37_spill] sm:$0xff] }
 0x7e7   :  { %4885 = vmatprep.subr.bf16.mxu0 %v7861_v34  ;;  %v7871_v34 = vld [vmem:[#allocation44_spill] sm:$0xff] }
 0x7e8   :  { %4883 = vmatpush1.bf16.msra.mxu1 %v7862_v16  ;;  %v7872_v16 = vld [vmem:[#allocation41_spill] sm:$0xff] }
 0x7e9   :  { %2399 = vmatmul.mubr.f32.vlgmr.msra.gmra.mrb[24].mxu0 %v3153_v51  ;;  %4949 = vmatprep.subr.bf16.mxu1 %v7863_v29  ;;  %v7873_v29 = vld [vmem:[#allocation43_spill] sm:$0xff] }
 0x7ea   :  { %4887 = vmatpush1.bf16.msra.mxu0 %v7864_v56  ;;  %v7874_v56 = vld [vmem:[#allocation46_spill] sm:$0xff] }
 0x7eb   :  { %2470 = vmatmul.mubr.f32.vlgmr.msra.gmra.mrb[24].mxu1 %v3153_v51  ;;  %4889 = vmatprep.subr.bf16.mxu0 %v7865_v63  ;;  %v7875_v51 = vld [vmem:[#allocation48_spill] sm:$0xff]  ;;  %v7876_v63 = vld [vmem:[#allocation45_spill] sm:$0xff] }
 0x7ec   :  { %4951 = vmatpush1.bf16.msra.mxu1 %v7866_v0  ;;  %v7877_v0 = vld [vmem:[#allocation47_spill] sm:$0xff] }
 0x7ed   :  { %4953 = vmatprep.subr.bf16.mxu1 %v7867_v44  ;;  %v7878_v44 = vld [vmem:[#allocation50_spill] sm:$0xff] }
 0x7ee   :  { %4891 = vmatpush1.bf16.msra.mxu0 %v7868_v3  ;;  %v7879_v3 = vld [vmem:[#allocation51_spill] sm:$0xff] }
 0x7ef   :  { %4893 = vmatprep.subr.bf16.mxu0 %v7869_v12  ;;  %v7880_v12 = vld [vmem:[#allocation49_spill] sm:$0xff] }
 0x7f0   :  { %4955 = vmatpush1.bf16.msra.mxu1 %v7870_v28  ;;  %v7881_v28 = vld [vmem:[#allocation53_spill] sm:$0xff] }
 0x7f1   :  { %4957 = vmatprep.subr.bf16.mxu1 %v7871_v34  ;;  %v7882_v34 = vld [vmem:[#allocation52_spill] sm:$0xff] }
 0x7f2   :  { %4895 = vmatpush1.bf16.msra.mxu0 %v7872_v16  ;;  %v7883_v16 = vld [vmem:[#allocation55_spill] sm:$0xff] }
 0x7f3   :  { %4897 = vmatprep.subr.bf16.mxu0 %v7873_v29  ;;  %v7884_v29 = vld [vmem:[#allocation54_spill] sm:$0xff] }
 0x7f4   :  { %4959 = vmatpush1.bf16.msra.mxu1 %v7874_v56  ;;  %v7885_v56 = vld [vmem:[#allocation57_spill] sm:$0xff] }
 0x7f5   :  { %4961 = vmatprep.subr.bf16.mxu1 %v7875_v51  ;;  %v7886_v51 = vld [vmem:[#allocation56_spill] sm:$0xff] }
 0x7f6   :  { %4899 = vmatpush1.bf16.msra.mxu0 %v7876_v63  ;;  %v7887_v63 = vld [vmem:[#allocation59_spill] sm:$0xff] }
 0x7f7   :  { %4901 = vmatprep.subr.bf16.mxu0 %v7877_v0  ;;  %v7888_v0 = vld [vmem:[#allocation58_spill] sm:$0xff] }
 0x7f8   :  { %4963 = vmatpush1.bf16.msra.mxu1 %v7878_v44  ;;  %v7889_v44 = vld [vmem:[#allocation61_spill] sm:$0xff] }
 0x7f9   :  { %4965 = vmatprep.subr.bf16.mxu1 %v7879_v3  ;;  %v7890_v3 = vld [vmem:[#allocation60_spill] sm:$0xff] }
 0x7fa   :  { %4903 = vmatpush1.bf16.msra.mxu0 %v7880_v12  ;;  %v7891_v12 = vld [vmem:[#allocation63_spill] sm:$0xff] }
 0x7fb   :  { %4905 = vmatprep.subr.bf16.mxu0 %v7881_v28  ;;  %v7892_v28 = vld [vmem:[#allocation62_spill] sm:$0xff] }
 0x7fc   :  { %4967 = vmatpush1.bf16.msra.mxu1 %v7882_v34  ;;  %v7893_v34 = vld [vmem:[#allocation65_spill] sm:$0xff] }
 0x7fd   :  { %4969 = vmatprep.subr.bf16.mxu1 %v7883_v16  ;;  %v7894_v16 = vld [vmem:[#allocation64_spill] sm:$0xff] }
 0x7fe   :  { %4907 = vmatpush1.bf16.msra.mxu0 %v7884_v29  ;;  %v7895_v29 = vld [vmem:[#allocation67_spill] sm:$0xff] }
 0x7ff   :  { %4909 = vmatprep.subr.bf16.mxu0 %v7885_v56  ;;  %v7896_v56 = vld [vmem:[#allocation66_spill] sm:$0xff] }
 0x800   :  { %4971 = vmatpush1.bf16.msra.mxu1 %v7886_v51  ;;  %v7897_v51 = vld [vmem:[#allocation69_spill] sm:$0xff] }
 0x801   :  { %4973 = vmatprep.subr.bf16.mxu1 %v7887_v63  ;;  %v7898_v63 = vld [vmem:[#allocation68_spill] sm:$0xff] }
 0x802   :  { %4911 = vmatpush1.bf16.msra.mxu0 %v7888_v0  ;;  %v7899_v0 = vld [vmem:[#allocation71_spill] sm:$0xff] }
 0x803   :  { %4913 = vmatprep.subr.bf16.mxu0 %v7889_v44  ;;  %v7900_v44 = vld [vmem:[#allocation70_spill] sm:$0xff] }
 0x804   :  { %4975 = vmatpush1.bf16.msra.mxu1 %v7890_v3  ;;  %v7901_v3 = vld [vmem:[#allocation73_spill] sm:$0xff] }
 0x805   :  { %4977 = vmatprep.subr.bf16.mxu1 %v7891_v12  ;;  %v7902_v12 = vld [vmem:[#allocation72_spill] sm:$0xff] }
 0x806   :  { %4915 = vmatpush1.bf16.msra.mxu0 %v7892_v28  ;;  %v7903_v28 = vld [vmem:[#allocation75_spill] sm:$0xff] }
 0x807   :  { %4917 = vmatprep.subr.bf16.mxu0 %v7893_v34  ;;  %v7904_v34 = vld [vmem:[#allocation74_spill] sm:$0xff] }
 0x808   :  { %4979 = vmatpush1.bf16.msra.mxu1 %v7894_v16  ;;  %v7905_v16 = vld [vmem:[#allocation77_spill] sm:$0xff] }
 0x809   :  { %4981 = vmatprep.subr.bf16.mxu1 %v7895_v29  ;;  %v7906_v29 = vld [vmem:[#allocation76_spill] sm:$0xff] }
 0x80a   :  { %4919 = vmatpush1.bf16.msra.mxu0 %v7896_v56  ;;  %v7907_v56 = vld [vmem:[#allocation79_spill] sm:$0xff] }
 0x80b   :  { %4921 = vmatprep.subr.bf16.mxu0 %v7897_v51  ;;  %v7908_v51 = vld [vmem:[#allocation78_spill] sm:$0xff] }
 0x80c   :  { %4983 = vmatpush1.bf16.msra.mxu1 %v7898_v63  ;;  %v7909_v63 = vld [vmem:[#allocation81_spill] sm:$0xff] }
 0x80d   :  { %4985 = vmatprep.subr.bf16.mxu1 %v7899_v0  ;;  %v7910_v0 = vld [vmem:[#allocation80_spill] sm:$0xff] }
 0x80e   :  { %4923 = vmatpush1.bf16.msra.mxu0 %v7900_v44  ;;  %v7911_v44 = vld [vmem:[#allocation83_spill] sm:$0xff] }
 0x80f   :  { %4925 = vmatprep.subr.bf16.mxu0 %v7901_v3  ;;  %v7912_v3 = vld [vmem:[#allocation82_spill] sm:$0xff] }
 0x810   :  { %4987 = vmatpush1.bf16.msra.mxu1 %v7902_v12  ;;  %v7913_v12 = vld [vmem:[#allocation85_spill] sm:$0xff] }
 0x811   :  { %4989 = vmatprep.subr.bf16.mxu1 %v7903_v28  ;;  %v7914_v28 = vld [vmem:[#allocation84_spill] sm:$0xff] }
 0x812   :  { %4927 = vmatpush1.bf16.msra.mxu0 %v7904_v34  ;;  %v7915_v34 = vld [vmem:[#allocation87_spill] sm:$0xff] }
 0x813   :  { %4929 = vmatprep.subr.bf16.mxu0 %v7905_v16  ;;  %v7916_v16 = vld [vmem:[#allocation86_spill] sm:$0xff] }
 0x814   :  { %4991 = vmatpush1.bf16.msra.mxu1 %v7906_v29  ;;  %v7917_v29 = vld [vmem:[#allocation89_spill] sm:$0xff] }
 0x815   :  { %4993 = vmatprep.subr.bf16.mxu1 %v7907_v56  ;;  %v7918_v56 = vld [vmem:[#allocation88_spill] sm:$0xff] }
 0x816   :  { %4931 = vmatpush1.bf16.msra.mxu0 %v7908_v51  ;;  %v7919_v51 = vld [vmem:[#allocation91_spill] sm:$0xff] }
 0x817   :  { %4933 = vmatprep.subr.bf16.mxu0 %v7909_v63  ;;  %v7920_v63 = vld [vmem:[#allocation90_spill] sm:$0xff] }
 0x818   :  { %4995 = vmatpush1.bf16.msra.mxu1 %v7910_v0  ;;  %v7921_v0 = vld [vmem:[#allocation93_spill] sm:$0xff] }
 0x819   :  { %4997 = vmatprep.subr.bf16.mxu1 %v7911_v44  ;;  %v7922_v44 = vld [vmem:[#allocation92_spill] sm:$0xff] }
 0x81a   :  { %4935 = vmatpush1.bf16.msra.mxu0 %v7912_v3  ;;  %v7923_v3 = vld [vmem:[#allocation95_spill] sm:$0xff] }
 0x81b   :  { %4937 = vmatprep.subr.bf16.mxu0 %v7913_v12  ;;  %v7924_v12 = vld [vmem:[#allocation94_spill] sm:$0xff] }
 0x81c   :  { %4999 = vmatpush1.bf16.msra.mxu1 %v7914_v28  ;;  %v7925_v28 = vld [vmem:[#allocation8_spill] sm:$0xff] }
 0x81d   :  { %5001 = vmatprep.subr.bf16.mxu1 %v7915_v34  ;;  %v7926_v34 = vld [vmem:[#allocation96_spill] sm:$0xff] }
 0x81e   :  { %4939 = vmatpush1.bf16.msra.mxu0 %v7916_v16  ;;  %v7927_v16 = vld [vmem:[#allocation9_spill] sm:$0xff] }
 0x81f   :  { %4941 = vmatprep.subr.bf16.mxu0 %v7917_v29 }
 0x820   :  { %5003 = vmatpush1.bf16.msra.mxu1 %v7918_v56 }
 0x821   :  { %5005 = vmatprep.subr.bf16.mxu1 %v7919_v51 }
 0x822   :  { %4943 = vmatpush1.bf16.msra.mxu0 %v7920_v63 }
 0x823   :  { %4945 = vmatprep.subr.bf16.mxu0 %v7921_v0 }
 0x824   :  { %5007 = vmatpush1.bf16.msra.mxu1 %v7922_v44 }
 0x825   :  { %5009 = vmatprep.subr.bf16.mxu1 %v7923_v3 }
 0x826   :  { %4947 = vmatpush1.bf16.msra.mxu0 %v7924_v12 }
 0x827   :  { %5013 = vmatprep.subr.bf16.mxu0 %v7925_v28 }
 0x828   :  { %5011 = vmatpush1.bf16.msra.mxu1 %v7926_v34 }
 0x829   :  { %5077 = vmatprep.subr.bf16.mxu1 %v7927_v16 }
 0x87c   :  { %v2232_v29 = vpop.f32.mrb[22].mxu0  ;;  %v2303_v56 = vpop.f32.mrb[22].mxu1 }
 0x87d   :  { %v2233_v51 = vadd.f32 %v2232_v29, %v7928_v13  ;;  %v2234_v19 = vpop.f32.mrb[23].mxu0  ;;  %v2305_v63 = vpop.f32.mrb[23].mxu1  ;;  %v2304_v28 = vadd.f32 %v2303_v56, %v6212_v38 }
 0x87e   :  { %v2235_v0 = vadd.f32 %v2234_v19, %v6205_v59  ;;  %v2306_v12 = vadd.f32 %v2305_v63, %v6209_v2 }
 0x87f   :  { %v3150_v23 = vmul.f32 -1.442695, %v2233_v51 }
 0x880   :  { %v3151_v44 = vmul.f32 -1.442695, %v2235_v0  ;;  %v3152_v3 = vmul.f32 -1.442695, %v2306_v12 }
 0x881   :  { %5475 = vpow2.f32 %v3150_v23 }
 0x882   :  { %5477 = vpow2.f32 %v3151_v44 }
 0x883   :  { %5479 = vpow2.f32 %v3152_v3 }
 0x884   :  { %5481 = vtanh.f32 %v2304_v28 }
 0x88b   :  { %v5476_v34 = vpop.eup %5475 }
 0x88c   :  { %v5478_v47 = vpop.eup %5477  ;;  %v2311_v16 = vadd.f32 1.0, %v5476_v34 }
 0x88d   :  { %v2317_v49 = vadd.f32 1.0, %v5478_v47  ;;  %v5480_v29 = vpop.eup %5479 }
 0x88e   :  { %5483 = vrcp.f32 %v2311_v16  ;;  %v5482_v13 = vpop.eup %5481  ;;  %v2324_v23 = vadd.f32 1.0, %v5480_v29 }
 0x88f   :  { %5485 = vrcp.f32 %v2317_v49 }
 0x890   :  { %5487 = vrcp.f32 %v2324_v23 }
 0x898   :  { %v5484_v19 = vpop.eup %5483 }
 0x899   :  { %v5486_v51 = vpop.eup %5485  ;;  %v2328_v0 = vmul.f32 %v5484_v19, %v5482_v13 }
 0x89a   :  { %v2327_v44 = vmul.f32 %v5486_v51, %v6787_v40  ;;  %v5488_v12 = vpop.eup %5487 }
 0x89c   :  { %v6930_v63 = vadd.f32 %v2328_v0, %v2327_v44 }
 0x89e   :  { %5489 = vtanh.f32 %v6930_v63 }
 0x8a8   :  { %v5490_v34 = vpop.eup %5489 }
 0x8a9   :  { %v2331_v3 = vmul.f32 %v5490_v34, %v5488_v12 }
 0x8ab   :  { %2564 = vmatprep.mubr.f32.mxu0 %v2331_v3  ;;  %2635 = vmatprep.mubr.f32.mxu1 %v2331_v3 }
 0x8bc   :  { %v2400_v47 = vpop.f32.mrb[24].mxu0 }
 0x8bd   :  { %v3154_v49 = vmul.f32 -1.442695, %v2400_v47  ;;  %v2402_v56 = vpop.f32.mrb[25].mxu0 }
 0x8be   :  { %v3155_v28 = vmul.f32 -1.442695, %v2402_v56  ;;  %v2471_v16 = vpop.f32.mrb[24].mxu1 }
 0x8bf   :  { %5491 = vpow2.f32 %v3154_v49  ;;  %v2473_v13 = vpop.f32.mrb[25].mxu1 }
 0x8c0   :  { %5493 = vpow2.f32 %v3155_v28  ;;  %v3156_v29 = vmul.f32 -1.442695, %v2473_v13 }
 0x8c2   :  { %5495 = vpow2.f32 %v3156_v29 }
 0x8c3   :  { %5497 = vtanh.f32 %v2471_v16  ;;  %v7972_v16 = vld [vmem:[#allocation56_spill] sm:$0xff] }
 0x8c9   :  { %v5492_v40 = vpop.eup %5491 }
 0x8ca   :  { %v5494_v19 = vpop.eup %5493  ;;  %v2479_v51 = vadd.f32 1.0, %v5492_v40  ;;  %v7973_v40 = vld [vmem:[#allocation59_spill] sm:$0xff] }
 0x8cb   :  { %v2485_v0 = vadd.f32 1.0, %v5494_v19  ;;  %v7974_v19 = vld [vmem:[#allocation58_spill] sm:$0xff] }
 0x8cc   :  { %5499 = vrcp.f32 %v2479_v51  ;;  %v5496_v23 = vpop.eup %5495  ;;  %v7975_v51 = vld [vmem:[#allocation61_spill] sm:$0xff] }
 0x8cd   :  { %5501 = vrcp.f32 %v2485_v0  ;;  %v5498_v44 = vpop.eup %5497  ;;  %v2492_v34 = vadd.f32 1.0, %v5496_v23  ;;  %v7976_v0 = vld [vmem:[#allocation60_spill] sm:$0xff]  ;;  %v7977_v23 = vld [vmem:[#allocation63_spill] sm:$0xff] }
 0x8cf   :  { %5503 = vrcp.f32 %v2492_v34  ;;  %v7980_v34 = vld [vmem:[#allocation64_spill] sm:$0xff] }
 0x8d6   :  { %v5500_v12 = vpop.eup %5499 }
 0x8d7   :  { %v5502_v3 = vpop.eup %5501  ;;  %v2496_v47 = vmul.f32 %v5500_v12, %v5498_v44  ;;  %v7978_v44 = vld [vmem:[#allocation62_spill] sm:$0xff]  ;;  %v7979_v12 = vld [vmem:[#allocation65_spill] sm:$0xff] }
 0x8d8   :  { %v2495_v56 = vmul.f32 %v5502_v3, %v6791_v39  ;;  %v7971_v39 = vld [vmem:[#allocation57_spill] sm:$0xff]  ;;  %v7981_v3 = vld [vmem:[#allocation67_spill] sm:$0xff] }
 0x8d9   :  { %v5504_v28 = vpop.eup %5503 }
 0x8da   :  { %v6934_v49 = vadd.f32 %v2496_v47, %v2495_v56  ;;  %v7982_v47 = vld [vmem:[#allocation66_spill] sm:$0xff]  ;;  %v7983_v56 = vld [vmem:[#allocation69_spill] sm:$0xff] }
 0x8dc   :  { %5505 = vtanh.f32 %v6934_v49 }
 0x8e6   :  { %v5506_v13 = vpop.eup %5505 }
 0x8e7   :  { %v2499_v29 = vmul.f32 %v5506_v13, %v5504_v28  ;;  %v7984_v28 = vld [vmem:[#allocation68_spill] sm:$0xff]  ;;  %v7985_v13 = vld [vmem:[#allocation71_spill] sm:$0xff] }
 0x8e9   :  { %2565 = vmatmul.mubr.f32.vlgmr.msra.gmra.mrb[26].mxu0 %v2499_v29  ;;  %2636 = vmatmul.mubr.f32.vlgmr.msra.gmra.mrb[26].mxu1 %v2499_v29 }
 0x8ea   :  { %5015 = vmatpush1.bf16.msra.mxu0 %v5677_v8  ;;  %2732 = vmatprep.mubr.f32.mxu0 %v2499_v29  ;;  %v7929_v8 = vld [vmem:[#allocation16_spill] sm:$0xff] }
 0x8eb   :  { %2803 = vmatprep.mubr.f32.mxu1 %v2499_v29  ;;  %5017 = vmatprep.subr.bf16.mxu0 %v5679_v9  ;;  %v7930_v9 = vld [vmem:[#allocation13_spill] sm:$0xff]  ;;  %v7986_v29 = vld [vmem:[#allocation70_spill] sm:$0xff] }
 0x8ec   :  { %5079 = vmatpush1.bf16.msra.mxu1 %v5690_v25  ;;  %v7933_v25 = vld [vmem:[#allocation20_spill] sm:$0xff] }
 0x8ed   :  { %5081 = vmatprep.subr.bf16.mxu1 %v5700_v33  ;;  %v7936_v33 = vld [vmem:[#allocation23_spill] sm:$0xff] }
 0x8ee   :  { %5019 = vmatpush1.bf16.msra.mxu0 %v5683_v14  ;;  %v7931_v14 = vld [vmem:[#allocation14_spill] sm:$0xff] }
 0x8ef   :  { %5021 = vmatprep.subr.bf16.mxu0 %v5686_v17  ;;  %v7932_v17 = vld [vmem:[#allocation19_spill] sm:$0xff] }
 0x8f0   :  { %5083 = vmatpush1.bf16.msra.mxu1 %v5702_v37  ;;  %v7937_v37 = vld [vmem:[#allocation24_spill] sm:$0xff] }
 0x8f1   :  { %5085 = vmatprep.subr.bf16.mxu1 %v5708_v45  ;;  %v7939_v45 = vld [vmem:[#allocation22_spill] sm:$0xff] }
 0x8f2   :  { %5023 = vmatpush1.bf16.msra.mxu0 %v5693_v26  ;;  %v7934_v26 = vld [vmem:[#allocation17_spill] sm:$0xff] }
 0x8f3   :  { %5025 = vmatprep.subr.bf16.mxu0 %v5697_v30  ;;  %v7935_v30 = vld [vmem:[#allocation18_spill] sm:$0xff] }
 0x8f4   :  { %5087 = vmatpush1.bf16.msra.mxu1 %v5714_v48  ;;  %v7941_v48 = vld [vmem:[#allocation28_spill] sm:$0xff] }
 0x8f5   :  { %5089 = vmatprep.subr.bf16.mxu1 %v5717_v52  ;;  %v7942_v52 = vld [vmem:[#allocation25_spill] sm:$0xff] }
 0x8f6   :  { %5027 = vmatpush1.bf16.msra.mxu0 %v5706_v42  ;;  %v7938_v42 = vld [vmem:[#allocation21_spill] sm:$0xff] }
 0x8f7   :  { %5029 = vmatprep.subr.bf16.mxu0 %v5711_v46  ;;  %v7940_v46 = vld [vmem:[#allocation27_spill] sm:$0xff] }
 0x8f8   :  { %5091 = vmatpush1.bf16.msra.mxu1 %v5726_v62  ;;  %v7945_v62 = vld [vmem:[#allocation32_spill] sm:$0xff] }
 0x8f9   :  { %5093 = vmatprep.subr.bf16.mxu1 %v5729_v1  ;;  %v7946_v1 = vld [vmem:[#allocation29_spill] sm:$0xff] }
 0x8fa   :  { %5031 = vmatpush1.bf16.msra.mxu0 %v5720_v55  ;;  %v7943_v55 = vld [vmem:[#allocation26_spill] sm:$0xff] }
 0x8fb   :  { %5033 = vmatprep.subr.bf16.mxu0 %v5723_v58  ;;  %v7944_v58 = vld [vmem:[#allocation30_spill] sm:$0xff] }
 0x8fc   :  { %5095 = vmatpush1.bf16.msra.mxu1 %v5738_v15  ;;  %v7948_v15 = vld [vmem:[#allocation34_spill] sm:$0xff] }
 0x8fd   :  { %5097 = vmatprep.subr.bf16.mxu1 %v5741_v18  ;;  %v7949_v18 = vld [vmem:[#allocation36_spill] sm:$0xff] }
 0x8fe   :  { %5035 = vmatpush1.bf16.msra.mxu0 %v5732_v7  ;;  %v3160_v7 = vld [vmem:[%s7138_s0 + $0x38] sm:$0xff] }
 0x8ff   :  { %5037 = vmatprep.subr.bf16.mxu0 %v5735_v10  ;;  %v7947_v10 = vld [vmem:[#allocation31_spill] sm:$0xff] }
 0x900   :  { %5099 = vmatpush1.bf16.msra.mxu1 %v5750_v32  ;;  %v7952_v32 = vld [vmem:[#allocation38_spill] sm:$0xff] }
 0x901   :  { %5101 = vmatprep.subr.bf16.mxu1 %v5753_v35  ;;  %v7953_v35 = vld [vmem:[#allocation40_spill] sm:$0xff] }
 0x902   :  { %5039 = vmatpush1.bf16.msra.mxu0 %v5744_v24  ;;  %v7950_v24 = vld [vmem:[#allocation33_spill] sm:$0xff] }
 0x903   :  { %5041 = vmatprep.subr.bf16.mxu0 %v5747_v27  ;;  %v7951_v27 = vld [vmem:[#allocation35_spill] sm:$0xff] }
 0x904   :  { %5103 = vmatpush1.bf16.msra.mxu1 %v5762_v50  ;;  %v7956_v50 = vld [vmem:[#allocation42_spill] sm:$0xff] }
 0x905   :  { %5105 = vmatprep.subr.bf16.mxu1 %v5765_v53  ;;  %v7957_v53 = vld [vmem:[#allocation44_spill] sm:$0xff] }
 0x906   :  { %5043 = vmatpush1.bf16.msra.mxu0 %v5756_v41  ;;  %v7954_v41 = vld [vmem:[#allocation37_spill] sm:$0xff] }
 0x907   :  { %5045 = vmatprep.subr.bf16.mxu0 %v5759_v43  ;;  %v7955_v43 = vld [vmem:[#allocation39_spill] sm:$0xff] }
 0x908   :  { %5107 = vmatpush1.bf16.msra.mxu1 %v5774_v5  ;;  %v7960_v5 = vld [vmem:[#allocation46_spill] sm:$0xff] }
 0x909   :  { %5109 = vmatprep.subr.bf16.mxu1 %v5777_v11  ;;  %v7961_v11 = vld [vmem:[#allocation48_spill] sm:$0xff] }
 0x90a   :  { %5047 = vmatpush1.bf16.msra.mxu0 %v5768_v60  ;;  %v7958_v60 = vld [vmem:[#allocation41_spill] sm:$0xff] }
 0x90b   :  { %5049 = vmatprep.subr.bf16.mxu0 %v5771_v61  ;;  %v7959_v61 = vld [vmem:[#allocation43_spill] sm:$0xff] }
 0x90c   :  { %5111 = vmatpush1.bf16.msra.mxu1 %v5786_v31  ;;  %v7964_v31 = vld [vmem:[#allocation50_spill] sm:$0xff] }
 0x90d   :  { %5113 = vmatprep.subr.bf16.mxu1 %v5789_v36  ;;  %v7965_v36 = vld [vmem:[#allocation51_spill] sm:$0xff] }
 0x90e   :  { %5051 = vmatpush1.bf16.msra.mxu0 %v5780_v20  ;;  %v7962_v20 = vld [vmem:[#allocation45_spill] sm:$0xff] }
 0x90f   :  { %5053 = vmatprep.subr.bf16.mxu0 %v5783_v21  ;;  %v7963_v21 = vld [vmem:[#allocation47_spill] sm:$0xff] }
 0x910   :  { %5115 = vmatpush1.bf16.msra.mxu1 %v5798_v57  ;;  %v7966_v57 = vld [vmem:[#allocation49_spill] sm:$0xff] }
 0x911   :  { %5117 = vmatprep.subr.bf16.mxu1 %v7418_v4  ;;  %v7967_v4 = vld [vmem:[#allocation53_spill] sm:$0xff] }
 0x912   :  { %5055 = vmatpush1.bf16.msra.mxu0 %v7419_v22  ;;  %v7968_v22 = vld [vmem:[#allocation52_spill] sm:$0xff] }
 0x913   :  { %5057 = vmatprep.subr.bf16.mxu0 %v7420_v54  ;;  %v7969_v54 = vld [vmem:[#allocation55_spill] sm:$0xff] }
 0x914   :  { %5119 = vmatpush1.bf16.msra.mxu1 %v7421_v6  ;;  %v7970_v6 = vld [vmem:[#allocation54_spill] sm:$0xff] }
 0x915   :  { %5121 = vmatprep.subr.bf16.mxu1 %v7929_v8  ;;  %v7987_v8 = vld [vmem:[#allocation73_spill] sm:$0xff] }
 0x916   :  { %5059 = vmatpush1.bf16.msra.mxu0 %v7930_v9  ;;  %v7988_v9 = vld [vmem:[#allocation72_spill] sm:$0xff] }
 0x917   :  { %5061 = vmatprep.subr.bf16.mxu0 %v7931_v14  ;;  %v7989_v14 = vld [vmem:[#allocation75_spill] sm:$0xff] }
 0x918   :  { %5123 = vmatpush1.bf16.msra.mxu1 %v7932_v17  ;;  %v7990_v17 = vld [vmem:[#allocation74_spill] sm:$0xff] }
 0x919   :  { %5125 = vmatprep.subr.bf16.mxu1 %v7933_v25  ;;  %v7991_v25 = vld [vmem:[#allocation77_spill] sm:$0xff] }
 0x91a   :  { %5063 = vmatpush1.bf16.msra.mxu0 %v7934_v26  ;;  %v7992_v26 = vld [vmem:[#allocation76_spill] sm:$0xff] }
 0x91b   :  { %5065 = vmatprep.subr.bf16.mxu0 %v7935_v30  ;;  %v7993_v30 = vld [vmem:[#allocation79_spill] sm:$0xff] }
 0x91c   :  { %5127 = vmatpush1.bf16.msra.mxu1 %v7936_v33  ;;  %v7994_v33 = vld [vmem:[#allocation78_spill] sm:$0xff] }
 0x91d   :  { %5129 = vmatprep.subr.bf16.mxu1 %v7937_v37  ;;  %v7995_v37 = vld [vmem:[#allocation81_spill] sm:$0xff] }
 0x91e   :  { %5067 = vmatpush1.bf16.msra.mxu0 %v7938_v42  ;;  %v7996_v42 = vld [vmem:[#allocation80_spill] sm:$0xff] }
 0x91f   :  { %5069 = vmatprep.subr.bf16.mxu0 %v7939_v45  ;;  %v7997_v45 = vld [vmem:[#allocation83_spill] sm:$0xff] }
 0x920   :  { %5131 = vmatpush1.bf16.msra.mxu1 %v7940_v46  ;;  %v7998_v46 = vld [vmem:[#allocation82_spill] sm:$0xff] }
 0x921   :  { %5133 = vmatprep.subr.bf16.mxu1 %v7941_v48  ;;  %v7999_v48 = vld [vmem:[#allocation85_spill] sm:$0xff] }
 0x922   :  { %5071 = vmatpush1.bf16.msra.mxu0 %v7942_v52  ;;  %v8000_v52 = vld [vmem:[#allocation84_spill] sm:$0xff] }
 0x923   :  { %5073 = vmatprep.subr.bf16.mxu0 %v7943_v55  ;;  %v8001_v55 = vld [vmem:[#allocation87_spill] sm:$0xff] }
 0x924   :  { %5135 = vmatpush1.bf16.msra.mxu1 %v7944_v58  ;;  %v8002_v58 = vld [vmem:[#allocation86_spill] sm:$0xff] }
 0x925   :  { %5137 = vmatprep.subr.bf16.mxu1 %v7945_v62  ;;  %v8003_v62 = vld [vmem:[#allocation89_spill] sm:$0xff] }
 0x926   :  { %5075 = vmatpush1.bf16.msra.mxu0 %v7946_v1  ;;  %v8004_v1 = vld [vmem:[#allocation88_spill] sm:$0xff] }
 0x927   :  { %5141 = vmatprep.subr.bf16.mxu0 %v7947_v10  ;;  %v8006_v10 = vld [vmem:[#allocation90_spill] sm:$0xff] }
 0x928   :  { %5139 = vmatpush1.bf16.msra.mxu1 %v7948_v15  ;;  %v8007_v15 = vld [vmem:[#allocation93_spill] sm:$0xff] }
 0x929   :  { %2733 = vmatmul.mubr.f32.vlgmr.msra.gmra.mrb[28].mxu0 %v3160_v7  ;;  %5205 = vmatprep.subr.bf16.mxu1 %v7949_v18  ;;  %v8008_v18 = vld [vmem:[#allocation92_spill] sm:$0xff] }
 0x92a   :  { %5143 = vmatpush1.bf16.msra.mxu0 %v7950_v24  ;;  %v8009_v24 = vld [vmem:[#allocation95_spill] sm:$0xff] }
 0x92b   :  { %2804 = vmatmul.mubr.f32.vlgmr.msra.gmra.mrb[28].mxu1 %v3160_v7  ;;  %5145 = vmatprep.subr.bf16.mxu0 %v7951_v27  ;;  %v8005_v7 = vld [vmem:[#allocation91_spill] sm:$0xff]  ;;  %v8010_v27 = vld [vmem:[#allocation94_spill] sm:$0xff] }
 0x92c   :  { %5207 = vmatpush1.bf16.msra.mxu1 %v7952_v32  ;;  %v8011_v32 = vld [vmem:[#allocation96_spill] sm:$0xff] }
 0x92d   :  { %5209 = vmatprep.subr.bf16.mxu1 %v7953_v35 }
 0x92e   :  { %5147 = vmatpush1.bf16.msra.mxu0 %v7954_v41 }
 0x92f   :  { %5149 = vmatprep.subr.bf16.mxu0 %v7955_v43  ;;  %v8012_v43 = vld [vmem:[#allocation12_spill] sm:$0xff] }
 0x930   :  { %5211 = vmatpush1.bf16.msra.mxu1 %v7956_v50 }
 0x931   :  { %5213 = vmatprep.subr.bf16.mxu1 %v7957_v53 }
 0x932   :  { %5151 = vmatpush1.bf16.msra.mxu0 %v7958_v60 }
 0x933   :  { %5153 = vmatprep.subr.bf16.mxu0 %v7959_v61 }
 0x934   :  { %5215 = vmatpush1.bf16.msra.mxu1 %v7960_v5 }
 0x935   :  { %5217 = vmatprep.subr.bf16.mxu1 %v7961_v11 }
 0x936   :  { %5155 = vmatpush1.bf16.msra.mxu0 %v7962_v20 }
 0x937   :  { %5157 = vmatprep.subr.bf16.mxu0 %v7963_v21 }
 0x938   :  { %5219 = vmatpush1.bf16.msra.mxu1 %v7964_v31 }
 0x939   :  { %5221 = vmatprep.subr.bf16.mxu1 %v7965_v36 }
 0x93a   :  { %5159 = vmatpush1.bf16.msra.mxu0 %v7966_v57 }
 0x93b   :  { %5161 = vmatprep.subr.bf16.mxu0 %v7967_v4 }
 0x93c   :  { %5223 = vmatpush1.bf16.msra.mxu1 %v7968_v22 }
 0x93d   :  { %5225 = vmatprep.subr.bf16.mxu1 %v7969_v54 }
 0x93e   :  { %5163 = vmatpush1.bf16.msra.mxu0 %v7970_v6 }
 0x93f   :  { %5165 = vmatprep.subr.bf16.mxu0 %v7971_v39 }
 0x940   :  { %5227 = vmatpush1.bf16.msra.mxu1 %v7972_v16 }
 0x941   :  { %5229 = vmatprep.subr.bf16.mxu1 %v7973_v40 }
 0x942   :  { %5167 = vmatpush1.bf16.msra.mxu0 %v7974_v19 }
 0x943   :  { %5169 = vmatprep.subr.bf16.mxu0 %v7975_v51 }
 0x944   :  { %5231 = vmatpush1.bf16.msra.mxu1 %v7976_v0 }
 0x945   :  { %5233 = vmatprep.subr.bf16.mxu1 %v7977_v23 }
 0x946   :  { %5171 = vmatpush1.bf16.msra.mxu0 %v7978_v44 }
 0x947   :  { %5173 = vmatprep.subr.bf16.mxu0 %v7979_v12 }
 0x948   :  { %5235 = vmatpush1.bf16.msra.mxu1 %v7980_v34 }
 0x949   :  { %5237 = vmatprep.subr.bf16.mxu1 %v7981_v3 }
 0x94a   :  { %5175 = vmatpush1.bf16.msra.mxu0 %v7982_v47 }
 0x94b   :  { %5177 = vmatprep.subr.bf16.mxu0 %v7983_v56 }
 0x94c   :  { %5239 = vmatpush1.bf16.msra.mxu1 %v7984_v28 }
 0x94d   :  { %5241 = vmatprep.subr.bf16.mxu1 %v7985_v13 }
 0x94e   :  { %5179 = vmatpush1.bf16.msra.mxu0 %v7986_v29 }
 0x94f   :  { %5181 = vmatprep.subr.bf16.mxu0 %v7987_v8 }
 0x950   :  { %5243 = vmatpush1.bf16.msra.mxu1 %v7988_v9 }
 0x951   :  { %5245 = vmatprep.subr.bf16.mxu1 %v7989_v14 }
 0x952   :  { %5183 = vmatpush1.bf16.msra.mxu0 %v7990_v17 }
 0x953   :  { %5185 = vmatprep.subr.bf16.mxu0 %v7991_v25 }
 0x954   :  { %5247 = vmatpush1.bf16.msra.mxu1 %v7992_v26 }
 0x955   :  { %5249 = vmatprep.subr.bf16.mxu1 %v7993_v30 }
 0x956   :  { %5187 = vmatpush1.bf16.msra.mxu0 %v7994_v33 }
 0x957   :  { %5189 = vmatprep.subr.bf16.mxu0 %v7995_v37 }
 0x958   :  { %5251 = vmatpush1.bf16.msra.mxu1 %v7996_v42 }
 0x959   :  { %5253 = vmatprep.subr.bf16.mxu1 %v7997_v45 }
 0x95a   :  { %5191 = vmatpush1.bf16.msra.mxu0 %v7998_v46 }
 0x95b   :  { %5193 = vmatprep.subr.bf16.mxu0 %v7999_v48 }
 0x95c   :  { %5255 = vmatpush1.bf16.msra.mxu1 %v8000_v52 }
 0x95d   :  { %5257 = vmatprep.subr.bf16.mxu1 %v8001_v55  ;;  %v3000_v55 = vld [vmem:[%s7142_s4] sm:$0xff] }
 0x95e   :  { %5195 = vmatpush1.bf16.msra.mxu0 %v8002_v58  ;;  %v3001_v58 = vld [vmem:[%s7142_s4 + $0x8] sm:$0xff] }
 0x95f   :  { %5197 = vmatprep.subr.bf16.mxu0 %v8003_v62  ;;  %v5269_v62 = vpack.c.bf16 %v3001_v58, %v3000_v55 }
 0x960   :  { %5259 = vmatpush1.bf16.msra.mxu1 %v8004_v1  ;;  %v5612_v1 = vmov 0.0|0.0  }
 0x961   :  { %5261 = vmatprep.subr.bf16.mxu1 %v8005_v7  ;;  %v3003_v7 = vld [vmem:[%s7142_s4 + $0x18] sm:$0xff] }
 0x962   :  { %5199 = vmatpush1.bf16.msra.mxu0 %v8006_v10 }
 0x963   :  { %5201 = vmatprep.subr.bf16.mxu0 %v8007_v15  ;;  %v3004_v15 = vld [vmem:[%s7142_s4 + $0x20] sm:$0xff] }
 0x964   :  { %5263 = vmatpush1.bf16.msra.mxu1 %v8008_v18  ;;  %v3005_v18 = vld [vmem:[%s7142_s4 + $0x28] sm:$0xff] }
 0x965   :  { %5265 = vmatprep.subr.bf16.mxu1 %v8009_v24  ;;  %v5275_v24 = vpack.c.bf16 %v3005_v18, %v3004_v15 }
 0x966   :  { %5203 = vmatpush1.bf16.msra.mxu0 %v8010_v27  ;;  %v3006_v27 = vld [vmem:[%s7142_s4 + $0x30] sm:$0xff] }
 0x967   :  { %5268 = vmatprep.subr.bf16.mxu0 %v5612_v1 }
 0x968   :  { %5267 = vmatpush1.bf16.msra.mxu1 %v8011_v32  ;;  %v3007_v32 = vld [vmem:[%s7142_s4 + $0x38] sm:$0xff] }
 0x9bc   :  { %v2566_v35 = vpop.f32.mrb[26].mxu0  ;;  %v2637_v41 = vpop.f32.mrb[26].mxu1 }
 0x9bd   :  { %v2567_v50 = vadd.f32 %v2566_v35, %v8012_v43  ;;  %v2568_v53 = vpop.f32.mrb[27].mxu0  ;;  %v2639_v60 = vpop.f32.mrb[27].mxu1  ;;  %v2638_v31 = vadd.f32 %v2637_v41, %v6212_v38  ;;  %v5278_v35 = vpack.c.bf16 %v3007_v32, %v3006_v27  ;;  %v3008_v41 = vld [vmem:[%s7142_s4 + $0x40] sm:$0xff] }
 0x9be   :  { %v2569_v61 = vadd.f32 %v2568_v53, %v6205_v59  ;;  %v2640_v20 = vadd.f32 %v2639_v60, %v6209_v2  ;;  %v3010_v60 = vld [vmem:[%s7142_s4 + $0x50] sm:$0xff] }
 0x9bf   :  { %v3157_v5 = vmul.f32 -1.442695, %v2567_v50  ;;  %v3009_v50 = vld [vmem:[%s7142_s4 + $0x48] sm:$0xff] }
 0x9c0   :  { %v3158_v11 = vmul.f32 -1.442695, %v2569_v61  ;;  %v3159_v21 = vmul.f32 -1.442695, %v2640_v20  ;;  %v5281_v53 = vpack.c.bf16 %v3009_v50, %v3008_v41  ;;  %v3011_v61 = vld [vmem:[%s7142_s4 + $0x58] sm:$0xff]  ;;  %v3013_v20 = vld [vmem:[%s7142_s4 + $0x68] sm:$0xff] }
 0x9c1   :  { %5507 = vpow2.f32 %v3157_v5  ;;  %v3012_v5 = vld [vmem:[%s7142_s4 + $0x60] sm:$0xff] }
 0x9c2   :  { %5509 = vpow2.f32 %v3158_v11  ;;  %v5284_v11 = vpack.c.bf16 %v3011_v61, %v3010_v60 }
 0x9c3   :  { %5511 = vpow2.f32 %v3159_v21  ;;  %v8013_v21 = vmov 0.0  }
 0x9c4   :  { %5513 = vtanh.f32 %v2638_v31  ;;  %v5287_v31 = vpack.c.bf16 %v3013_v20, %v3012_v5 }
 0x9cb   :  { %v5508_v36 = vpop.eup %5507 }
 0x9cc   :  { %v5510_v57 = vpop.eup %5509  ;;  %v2645_v4 = vadd.f32 1.0, %v5508_v36  ;;  %v3014_v36 = vld [vmem:[%s7142_s4 + $0x70] sm:$0xff] }
 0x9cd   :  { %v2651_v22 = vadd.f32 1.0, %v5510_v57  ;;  %v5512_v54 = vpop.eup %5511  ;;  %v3015_v57 = vld [vmem:[%s7142_s4 + $0x78] sm:$0xff] }
 0x9ce   :  { %5515 = vrcp.f32 %v2645_v4  ;;  %v5514_v6 = vpop.eup %5513  ;;  %v2658_v19 = vadd.f32 1.0, %v5512_v54  ;;  %v5290_v4 = vpack.c.bf16 %v3015_v57, %v3014_v36 }
 0x9cf   :  { %5517 = vrcp.f32 %v2651_v22 }
 0x9d0   :  { %5519 = vrcp.f32 %v2658_v19 }
 0x9d8   :  { %v5516_v39 = vpop.eup %5515 }
 0x9d9   :  { %v5518_v16 = vpop.eup %5517  ;;  %v2662_v40 = vmul.f32 %v5516_v39, %v5514_v6 }
 0x9da   :  { %v2661_v51 = vmul.f32 %v5518_v16, %v6930_v63  ;;  %v5520_v23 = vpop.eup %5519 }
 0x9dc   :  { %v7071_v0 = vadd.f32 %v2662_v40, %v2661_v51 }
 0x9de   :  { %5521 = vtanh.f32 %v7071_v0 }
 0x9e8   :  { %v5522_v44 = vpop.eup %5521 }
 0x9e9   :  { %v2665_v12 = vmul.f32 %v5522_v44, %v5520_v23 }
 0x9eb   :  { %2898 = vmatprep.mubr.f32.mxu0 %v2665_v12  ;;  %2969 = vmatprep.mubr.f32.mxu1 %v2665_v12 }
 0x9fc   :  { %v2734_v34 = vpop.f32.mrb[28].mxu0 }
 0x9fd   :  { %v3161_v3 = vmul.f32 -1.442695, %v2734_v34  ;;  %v2736_v47 = vpop.f32.mrb[29].mxu0 }
 0x9fe   :  { %v3162_v56 = vmul.f32 -1.442695, %v2736_v47  ;;  %v2805_v28 = vpop.f32.mrb[28].mxu1 }
 0x9ff   :  { %5523 = vpow2.f32 %v3161_v3  ;;  %v2807_v13 = vpop.f32.mrb[29].mxu1 }
 0xa00   :  { %5525 = vpow2.f32 %v3162_v56  ;;  %v3163_v29 = vmul.f32 -1.442695, %v2807_v13 }
 0xa02   :  { %5527 = vpow2.f32 %v3163_v29 }
 0xa03   :  { %5529 = vtanh.f32 %v2805_v28 }
 0xa09   :  { %v5524_v63 = vpop.eup %5523 }
 0xa0a   :  { %v5526_v8 = vpop.eup %5525  ;;  %v2813_v9 = vadd.f32 1.0, %v5524_v63 }
 0xa0b   :  { %v2819_v14 = vadd.f32 1.0, %v5526_v8 }
 0xa0c   :  { %5531 = vrcp.f32 %v2813_v9  ;;  %v5528_v17 = vpop.eup %5527 }
 0xa0d   :  { %5533 = vrcp.f32 %v2819_v14  ;;  %v5530_v25 = vpop.eup %5529  ;;  %v2826_v30 = vadd.f32 1.0, %v5528_v17  ;;  %v3167_v17 = vld [vmem:[%s7143_s5] ss:$0 sm:$0xff] }
 0xa0f   :  { %5535 = vrcp.f32 %v2826_v30 }
 0xa16   :  { %v5532_v26 = vpop.eup %5531 }
 0xa17   :  { %v5534_v33 = vpop.eup %5533  ;;  %v2830_v37 = vmul.f32 %v5532_v26, %v5530_v25 }
 0xa18   :  { %v2829_v42 = vmul.f32 %v5534_v33, %v6934_v49  ;;  %v3002_v49 = vld [vmem:[%s7142_s4 + $0x10] sm:$0xff] }
 0xa19   :  { %v5536_v46 = vpop.eup %5535  ;;  %v5272_v10 = vpack.c.bf16 %v3003_v7, %v3002_v49 }
 0xa1a   :  { %v2831_v45 = vadd.f32 %v2830_v37, %v2829_v42 }
 0xa1c   :  { %5537 = vtanh.f32 %v2831_v45 }
 0xa26   :  { %v5538_v48 = vpop.eup %5537 }
 0xa27   :  { %v2833_v52 = vmul.f32 %v5538_v48, %v5536_v46 }
 0xa29   :  { %2899 = vmatmul.mubr.f32.vlgmr.msra.gmra.mrb[30].mxu0 %v2833_v52  ;;  %2970 = vmatmul.mubr.f32.vlgmr.msra.gmra.mrb[30].mxu1 %v2833_v52 }
 0xa2a   :  { %5270 = vmatpush3.bf16.msra.mxu0 %v5269_v62  ;;  %3217 = vmatprep.mubr.msk.f32.mxu0 %vm5613_vm0, %v8013_v21 }
 0xa2b   :  { %5271 = vmatprep.subr.bf16.mxu0 %v5612_v1 }
 0xa2e   :  { %5273 = vmatpush3.bf16.msra.mxu0 %v5272_v10 }
 0xa2f   :  { %5274 = vmatprep.subr.bf16.mxu0 %v5612_v1 }
 0xa32   :  { %5276 = vmatpush3.bf16.msra.mxu0 %v5275_v24 }
 0xa33   :  { %5277 = vmatprep.subr.bf16.mxu0 %v5612_v1 }
 0xa36   :  { %5279 = vmatpush3.bf16.msra.mxu0 %v5278_v35 }
 0xa37   :  { %5280 = vmatprep.subr.bf16.mxu0 %v5612_v1 }
 0xa3a   :  { %5282 = vmatpush3.bf16.msra.mxu0 %v5281_v53 }
 0xa3b   :  { %5283 = vmatprep.subr.bf16.mxu0 %v5612_v1 }
 0xa3e   :  { %5285 = vmatpush3.bf16.msra.mxu0 %v5284_v11 }
 0xa3f   :  { %5286 = vmatprep.subr.bf16.mxu0 %v5612_v1 }
 0xa42   :  { %5288 = vmatpush3.bf16.msra.mxu0 %v5287_v31 }
 0xa43   :  { %5289 = vmatprep.subr.bf16.mxu0 %v5612_v1 }
 0xa46   :  { %5291 = vmatpush3.bf16.msra.mxu0 %v5290_v4 }
 0xafc   :  { %v2900_v22 = vpop.f32.mrb[30].mxu0  ;;  %v2971_v54 = vpop.f32.mrb[30].mxu1 }
 0xafd   :  { %v2901_v6 = vadd.f32 %v2900_v22, %v8012_v43  ;;  %v2902_v39 = vpop.f32.mrb[31].mxu0  ;;  %v2973_v16 = vpop.f32.mrb[31].mxu1  ;;  %v2972_v12 = vadd.f32 %v2971_v54, %v6212_v38 }
 0xafe   :  { %v2903_v40 = vadd.f32 %v2902_v39, %v6205_v59  ;;  %v2974_v23 = vadd.f32 %v2973_v16, %v6209_v2 }
 0xaff   :  { %v3164_v19 = vmul.f32 -1.442695, %v2901_v6 }
 0xb00   :  { %v3165_v51 = vmul.f32 -1.442695, %v2903_v40  ;;  %v3166_v44 = vmul.f32 -1.442695, %v2974_v23 }
 0xb01   :  { %5539 = vpow2.f32 %v3164_v19 }
 0xb02   :  { %5541 = vpow2.f32 %v3165_v51 }
 0xb03   :  { %5543 = vpow2.f32 %v3166_v44 }
 0xb04   :  { %5545 = vtanh.f32 %v2972_v12 }
 0xb0b   :  { %v5540_v34 = vpop.eup %5539 }
 0xb0c   :  { %v5542_v3 = vpop.eup %5541  ;;  %v2979_v47 = vadd.f32 1.0, %v5540_v34 }
 0xb0d   :  { %v2985_v56 = vadd.f32 1.0, %v5542_v3  ;;  %v5544_v43 = vpop.eup %5543 }
 0xb0e   :  { %5547 = vrcp.f32 %v2979_v47  ;;  %v5546_v28 = vpop.eup %5545  ;;  %v2992_v63 = vadd.f32 1.0, %v5544_v43 }
 0xb0f   :  { %5549 = vrcp.f32 %v2985_v56 }
 0xb10   :  { %5551 = vrcp.f32 %v2992_v63 }
 0xb18   :  { %v5548_v59 = vpop.eup %5547 }
 0xb19   :  { %v5550_v13 = vpop.eup %5549  ;;  %v2996_v29 = vmul.f32 %v5548_v59, %v5546_v28 }
 0xb1a   :  { %v2995_v8 = vmul.f32 %v5550_v13, %v7071_v0  ;;  %v5552_v38 = vpop.eup %5551 }
 0xb1c   :  { %v2997_v2 = vadd.f32 %v2996_v29, %v2995_v8 }
 0xb1e   :  { %5553 = vtanh.f32 %v2997_v2 }
 0xb28   :  { %v5554_v9 = vpop.eup %5553 }
 0xb29   :  { %v2999_v14 = vmul.f32 %v5554_v9, %v5552_v38 }
 0xb2b   :  { %3218 = vmatmul.mubr.f32.vlgmr.msra.gmra.mrb[32].mxu0 %v2999_v14 }
 0xbfe   :  { %v3089_v25 = vpop.f32.mrb[32].mxu0 }
 0xbff   :  { %v3090_v26 = vadd.f32 %v3167_v17, %v3089_v25  ;;  %v3219_v30 = vpop.f32.mrb[33].mxu0 }
 0xc01   :  { %v3094_v33 = vsel %vm3093_vm1, %v3090_v26, -inf }
 0xc02   :  { %3095 = vmax.xlane.f32.xlu0 %v3094_v33 }
 0xc8f   :  { %v3096_v37 = vpop.xlane.xlu0 %3095 }
 0xc90   :  { %v3097_v0 = vsub.f32 %v3090_v26, %v3096_v37 }
 0xc92   :  { %v3098_v42 = vmul.f32 1.442695, %v3097_v0 }
 0xc94   :  { %5555 = vpow2.f32 %v3098_v42 }
 0xc9e   :  { %v5556_v45 = vpop.eup %5555 }
 0xc9f   :  { %v3100_v46 = vsel %vm3093_vm1, %v5556_v45, 0.0 }
 0xca0   :  { %3101 = vadd.xlane.f32.xlu0 %v3100_v46 }
 0xd2d   :  { %v3102_v48 = vpop.xlane.xlu0 %3101 }
 0xd2e   :  { %5557 = vrcp.f32 %v3102_v48 }
 0xd38   :  { %v5558_v52 = vpop.eup %5557 }
 0xd39   :  { %v3104_v55 = vmul.f32 %v5558_v52, %v5556_v45 }
 0xd3b   :  { %3105 = vst.msk [vmem:[%s7144_s6] sm:$0xff] %vm3093_vm1, %v3104_v55 }
 0xd3c   :  { %3110 = vsyncpa [#allocation3], 1 }
 0xd3d   :  { %3111 = vsyncpa [#allocation5], 1 }

</bundles_post_ra>
